<compile_context>
chip_gen: v5e
topology: v5e:2x2
jax: 0.10.0
libtpu: 0.0.40
codegen_flags: <defaults>
</compile_context>

<pallas_src>
import functools

import jax
import jax.numpy as jnp
from jax import lax
from jax.experimental import pallas as pl
from jax.experimental.pallas import tpu as pltpu


def _pick_row_tile(H, target=8):
    """Largest divisor of H that is <= target (falls back to H)."""
    for t in range(min(target, H), 0, -1):
        if H % t == 0:
            return t
    return H


def _rcu_kernel(x_hbm, w1_ref, b1_ref, w2_ref, b2_ref, o_ref,
                xbuf, zbuf, sem, *, TH, W, Cp, cdt):
    """One (batch, row-tile) step.

    x_hbm : (B, H+4, W+2, Cp) f32, HBM (memory_space=ANY), pre-zero-padded.
    w*_ref: (9*Cp, Cp) compute-dtype VMEM (flattened HWIO, resident).
    b*_ref: (1, Cp)  f32 VMEM.
    o_ref : (1, TH, W, Cp) VMEM output block.
    xbuf  : (TH+4, W+2, Cp) f32 VMEM scratch (input row slab, 2-row halo).
    zbuf  : (TH+2, W+2, Cp) compute-dtype VMEM scratch (relu(conv1), col-padded).
    sem   : DMA semaphore.
    """
    b = pl.program_id(0)
    r = pl.program_id(1)
    n_rt = pl.num_programs(1)
    r0 = pl.multiple_of(r * TH, TH)

    # --- fetch only this tile's row slab from HBM (bounded working set) -----
    # TODO(synk): double-buffer this slab fetch across row tiles to hide the
    # DMA; kept single-buffered here for simplicity/correctness under
    # parallel dimension semantics.
    slab_cp = pltpu.make_async_copy(x_hbm.at[b, pl.ds(r0, TH + 4)], xbuf, sem)
    slab_cp.start()
    slab_cp.wait()

    # --- conv1 as a single K=9*Cp matmul (im2col over the slab) -------------
    a = jnp.maximum(xbuf[...], 0.0).astype(cdt)          # relu(x), matmul operand
    p1 = jnp.concatenate(
        [a[dh:dh + TH + 2, dw:dw + W, :] for dh in range(3) for dw in range(3)],
        axis=-1)                                          # (TH+2, W, 9*Cp)
    y1 = lax.dot_general(p1, w1_ref[...], (((2,), (0,)), ((), ())),
                         preferred_element_type=jnp.float32)
    y1 = jnp.maximum(y1 + b1_ref[0][None, None, :], 0.0)  # bias + relu in f32

    # --- stage relu(conv1) into the column-padded scratch --------------------
    # Only the two 1-wide border columns are zeroed (not the whole buffer).
    zbuf[:, 0:1, :] = jnp.zeros((TH + 2, 1, Cp), cdt)
    zbuf[:, W + 1:W + 2, :] = jnp.zeros((TH + 2, 1, Cp), cdt)
    zbuf[:, 1:W + 1, :] = y1.astype(cdt)

    # conv2's zero row-padding only exists at the global image boundary.
    @pl.when(r == 0)
    def _():
        zbuf[0:1, :, :] = jnp.zeros((1, W + 2, Cp), cdt)

    @pl.when(r == n_rt - 1)
    def _():
        zbuf[TH + 1:TH + 2, :, :] = jnp.zeros((1, W + 2, Cp), cdt)

    # --- conv2 as a single K=9*Cp matmul + residual --------------------------
    p2 = jnp.concatenate(
        [zbuf[dh:dh + TH, dw:dw + W, :] for dh in range(3) for dw in range(3)],
        axis=-1)                                          # (TH, W, 9*Cp)
    y2 = lax.dot_general(p2, w2_ref[...], (((2,), (0,)), ((), ())),
                         preferred_element_type=jnp.float32)
    y2 = y2 + b2_ref[0][None, None, :]

    # Residual: re-read x rows from the VMEM slab (f32, exact) only now.
    xres = xbuf[2:TH + 2, 1:W + 1, :]
    o_ref[0] = (y2 + xres).astype(o_ref.dtype)


def residual_conv_unit(x_nchw, w1, b1, w2, b2, *, row_tile=8,
                       compute_dtype=jnp.bfloat16):
    """x_nchw: (B, C, H, W) f32. Weights HWIO (3,3,C,C), biases (C,)."""
    B, C, H, W = x_nchw.shape
    Cp = ((C + 127) // 128) * 128          # lane-dense channel padding
    TH = _pick_row_tile(H, row_tile)       # row tile (divides H)
    n_rt = H // TH

    # NCHW -> NHWC; pad channels to Cp and spatially by (2 rows, 1 col) per
    # side so the kernel never has to re-pad activations for either conv.
    x = jnp.transpose(x_nchw, (0, 2, 3, 1))
    x = jnp.pad(x, ((0, 0), (2, 2), (1, 1), (0, Cp - C)))

    def _prep_w(w):
        wp = jnp.pad(w, ((0, 0), (0, 0), (0, Cp - C), (0, Cp - C)))
        return wp.reshape(9 * Cp, Cp).astype(compute_dtype)   # (dh,dw,cin) major

    w1f = _prep_w(w1)
    w2f = _prep_w(w2)
    b1p = jnp.pad(b1, (0, Cp - C)).reshape(1, Cp)
    b2p = jnp.pad(b2, (0, Cp - C)).reshape(1, Cp)

    # Scoped-VMEM budget for the chosen tile, ~2x headroom (capped for v7x).
    cs = jnp.dtype(compute_dtype).itemsize
    est = ((TH + 4) * (W + 2) * Cp * 4                 # x slab scratch (f32)
           + (TH + 2) * (W + 2) * Cp * cs              # relu(conv1) scratch
           + 2 * TH * W * Cp * 4                       # double-buffered out block
           + 2 * 2 * 9 * Cp * Cp * cs                  # both flattened weights
           + (TH + 4) * (W + 2) * Cp * cs              # relu(x) operand
           + (TH + 2) * W * 9 * Cp * cs                # conv1 im2col patch
           + TH * W * 9 * Cp * cs                      # conv2 im2col patch
           + 2 * (TH + 2) * W * Cp * 4)                # f32 matmul accumulators
    vmem_limit = int(min(64 * 2**20, max(16 * 2**20, 2 * est)))

    kernel = functools.partial(_rcu_kernel, TH=TH, W=W, Cp=Cp, cdt=compute_dtype)

    out = pl.pallas_call(
        kernel,
        out_shape=jax.ShapeDtypeStruct((B, H, W, Cp), x_nchw.dtype),
        grid_spec=pltpu.PrefetchScalarGridSpec(
            num_scalar_prefetch=0,
            grid=(B, n_rt),
            in_specs=[
                pl.BlockSpec(memory_space=pl.ANY),                      # x (HBM)
                pl.BlockSpec((9 * Cp, Cp), lambda b, r: (0, 0)),        # w1 (resident)
                pl.BlockSpec((1, Cp), lambda b, r: (0, 0)),             # b1
                pl.BlockSpec((9 * Cp, Cp), lambda b, r: (0, 0)),        # w2 (resident)
                pl.BlockSpec((1, Cp), lambda b, r: (0, 0)),             # b2
            ],
            out_specs=pl.BlockSpec((1, TH, W, Cp), lambda b, r: (b, r, 0, 0)),
            scratch_shapes=[
                pltpu.VMEM((TH + 4, W + 2, Cp), x_nchw.dtype),          # x slab
                pltpu.VMEM((TH + 2, W + 2, Cp), compute_dtype),         # relu(conv1)
                pltpu.SemaphoreType.DMA,
            ],
        ),
        compiler_params=pltpu.CompilerParams(
            dimension_semantics=("parallel", "parallel"),
            vmem_limit_bytes=vmem_limit),
    )(x, w1f, b1p, w2f, b2p)

    out = out[..., :C]                                   # drop channel padding
    return jnp.transpose(out, (0, 3, 1, 2))              # NHWC -> NCHW


def _reference(x_nchw, w1, b1, w2, b2):
    """Pure-JAX reference of the PyTorch forward (for validation)."""
    x = jnp.transpose(x_nchw, (0, 2, 3, 1))
    dn = ("NHWC", "HWIO", "NHWC")
    a = jax.nn.relu(x)
    y = lax.conv_general_dilated(a, w1, (1, 1), "SAME",
                                 dimension_numbers=dn) + b1
    y = jax.nn.relu(y)
    y = lax.conv_general_dilated(y, w2, (1, 1), "SAME",
                                 dimension_numbers=dn) + b2
    out = y + x
    return jnp.transpose(out, (0, 3, 1, 2))


if __name__ == "__main__":
    B, C, H, W = 2, 4, 16, 16
    key = jax.random.PRNGKey(0)
    kx, kw1, kb1, kw2, kb2 = jax.random.split(key, 5)

    x = jax.random.normal(kx, (B, C, H, W), dtype=jnp.float32)
    # Deterministic param init (Kaiming-like scale for a 3x3xC fan-in).
    scale = 1.0 / jnp.sqrt(9.0 * C)
    w1 = jax.random.uniform(kw1, (3, 3, C, C), jnp.float32, -scale, scale)
    b1 = jax.random.uniform(kb1, (C,), jnp.float32, -scale, scale)
    w2 = jax.random.uniform(kw2, (3, 3, C, C), jnp.float32, -scale, scale)
    b2 = jax.random.uniform(kb2, (C,), jnp.float32, -scale, scale)

    ref = _reference(x, w1, b1, w2, b2)

    # Default path: bf16 matmul operands, f32 accumulation / residual.
    out_bf16 = jax.block_until_ready(residual_conv_unit(x, w1, b1, w2, b2))
    assert out_bf16.shape == (B, C, H, W)
    assert jnp.allclose(out_bf16, ref, atol=2e-2, rtol=2e-2), "bf16 mismatch"

    # Full-f32 path: matches the module's f32 semantics tightly.
    out_f32 = jax.block_until_ready(
        residual_conv_unit(x, w1, b1, w2, b2, compute_dtype=jnp.float32))
    assert jnp.allclose(out_f32, ref, atol=1e-4, rtol=1e-4), "f32 mismatch"

    print("KERNEL_OK")
</pallas_src>

<mosaic_0001>
module attributes {stable_mosaic.version = 11 : i64} {
  func.func @_rcu_kernel(%arg0: i32, %arg1: i32, %arg2: memref<2x20x18x128xf32, #tpu.memory_space<any>>, %arg3: memref<1152x128xbf16, #tpu.memory_space<vmem>>, %arg4: memref<1x128xf32, #tpu.memory_space<vmem>>, %arg5: memref<1152x128xbf16, #tpu.memory_space<vmem>>, %arg6: memref<1x128xf32, #tpu.memory_space<vmem>>, %arg7: memref<1x8x16x128xf32, #tpu.memory_space<vmem>>, %arg8: memref<12x18x128xf32, #tpu.memory_space<vmem>>, %arg9: memref<10x18x128xbf16, #tpu.memory_space<vmem>>, %arg10: memref<!tpu.dma_semaphore, #tpu.memory_space<semaphore_mem>>) attributes {dimension_semantics = [#tpu.dimension_semantics<parallel>, #tpu.dimension_semantics<parallel>], iteration_bounds = array<i64: 2, 2>, scalar_prefetch = 0 : i64, scratch_operands = 3 : i64, tpu.core_type = #tpu.core_type<tc>, window_params = [{}, {pipeline_mode = #tpu.pipeline_mode<synchronous>, transform_indices = @transform_1, window_bounds = array<i64: 1152, 128>}, {pipeline_mode = #tpu.pipeline_mode<synchronous>, transform_indices = @transform_2, window_bounds = array<i64: 1, 128>}, {pipeline_mode = #tpu.pipeline_mode<synchronous>, transform_indices = @transform_3, window_bounds = array<i64: 1152, 128>}, {pipeline_mode = #tpu.pipeline_mode<synchronous>, transform_indices = @transform_4, window_bounds = array<i64: 1, 128>}, {transform_indices = @transform_5, window_bounds = array<i64: 1, 8, 16, 128>}]} {
    %c8_i32 = arith.constant 8 : i32
    %0 = arith.muli %arg1, %c8_i32 : i32
    %1 = tpu.assume_multiple %0, 8 : i32
    %c0_i32 = arith.constant 0 : i32
    %c0_i32_0 = arith.constant 0 : i32
    %2 = tpu.memref_slice %arg2[%arg0, %1, %c0_i32, %c0_i32_0] : memref<2x20x18x128xf32, #tpu.memory_space<any>> -> memref<1x12x18x128xf32, #tpu.memory_space<any>>
    %3 = tpu.memref_squeeze %2 : memref<1x12x18x128xf32, #tpu.memory_space<any>> -> memref<12x18x128xf32, #tpu.memory_space<any>>
    tpu.enqueue_dma source(%3 : memref<12x18x128xf32, #tpu.memory_space<any>>) target(%arg8 : memref<12x18x128xf32, #tpu.memory_space<vmem>>) target_semaphore(%arg10 : memref<!tpu.dma_semaphore, #tpu.memory_space<semaphore_mem>>)
    %c0_i32_1 = arith.constant 0 : i32
    %c0_i32_2 = arith.constant 0 : i32
    %4 = tpu.memref_slice %arg2[%arg0, %1, %c0_i32_1, %c0_i32_2] : memref<2x20x18x128xf32, #tpu.memory_space<any>> -> memref<1x12x18x128xf32, #tpu.memory_space<any>>
    %5 = tpu.memref_squeeze %4 : memref<1x12x18x128xf32, #tpu.memory_space<any>> -> memref<12x18x128xf32, #tpu.memory_space<any>>
    tpu.wait_dma2 semaphore(%arg10 : memref<!tpu.dma_semaphore, #tpu.memory_space<semaphore_mem>>) src(%5 : memref<12x18x128xf32, #tpu.memory_space<any>>) dst(%arg8 : memref<12x18x128xf32, #tpu.memory_space<vmem>>)
    %c0 = arith.constant 0 : index
    %c0_3 = arith.constant 0 : index
    %c0_4 = arith.constant 0 : index
    %6 = vector.load %arg8[%c0, %c0_3, %c0_4] : memref<12x18x128xf32, #tpu.memory_space<vmem>>, vector<12x18x128xf32>
    %cst = arith.constant 0.000000e+00 : f32
    %7 = vector.broadcast %cst : f32 to vector<12x18x128xf32>
    %8 = arith.maximumf %6, %7 : vector<12x18x128xf32>
    %9 = arith.truncf %8 : vector<12x18x128xf32> to vector<12x18x128xbf16>
    %10 = vector.extract_strided_slice %9 {offsets = [0, 0, 0], sizes = [10, 16, 128], strides = [1, 1, 1]} : vector<12x18x128xbf16> to vector<10x16x128xbf16>
    %11 = vector.extract_strided_slice %9 {offsets = [0, 1, 0], sizes = [10, 16, 128], strides = [1, 1, 1]} : vector<12x18x128xbf16> to vector<10x16x128xbf16>
    %12 = vector.extract_strided_slice %9 {offsets = [0, 2, 0], sizes = [10, 16, 128], strides = [1, 1, 1]} : vector<12x18x128xbf16> to vector<10x16x128xbf16>
    %13 = vector.extract_strided_slice %9 {offsets = [1, 0, 0], sizes = [10, 16, 128], strides = [1, 1, 1]} : vector<12x18x128xbf16> to vector<10x16x128xbf16>
    %14 = vector.extract_strided_slice %9 {offsets = [1, 1, 0], sizes = [10, 16, 128], strides = [1, 1, 1]} : vector<12x18x128xbf16> to vector<10x16x128xbf16>
    %15 = vector.extract_strided_slice %9 {offsets = [1, 2, 0], sizes = [10, 16, 128], strides = [1, 1, 1]} : vector<12x18x128xbf16> to vector<10x16x128xbf16>
    %16 = vector.extract_strided_slice %9 {offsets = [2, 0, 0], sizes = [10, 16, 128], strides = [1, 1, 1]} : vector<12x18x128xbf16> to vector<10x16x128xbf16>
    %17 = vector.extract_strided_slice %9 {offsets = [2, 1, 0], sizes = [10, 16, 128], strides = [1, 1, 1]} : vector<12x18x128xbf16> to vector<10x16x128xbf16>
    %18 = vector.extract_strided_slice %9 {offsets = [2, 2, 0], sizes = [10, 16, 128], strides = [1, 1, 1]} : vector<12x18x128xbf16> to vector<10x16x128xbf16>
    %19 = tpu.concatenate %10, %11, %12, %13, %14, %15, %16, %17, %18 in 2 : vector<10x16x128xbf16>, vector<10x16x128xbf16>, vector<10x16x128xbf16>, vector<10x16x128xbf16>, vector<10x16x128xbf16>, vector<10x16x128xbf16>, vector<10x16x128xbf16>, vector<10x16x128xbf16>, vector<10x16x128xbf16> -> vector<10x16x1152xbf16>
    %c0_5 = arith.constant 0 : index
    %c0_6 = arith.constant 0 : index
    %20 = vector.load %arg3[%c0_5, %c0_6] : memref<1152x128xbf16, #tpu.memory_space<vmem>>, vector<1152x128xbf16>
    %cst_7 = arith.constant dense<0.000000e+00> : vector<10x16x128xf32>
    %21 = tpu.matmul %19, %20, %cst_7 {dimension_numbers = #tpu.dot_dimension_numbers<[2], [0], [0, 1], [1], [0, 0, 0, 1, 1, 1], [], []>} : vector<10x16x1152xbf16>, vector<1152x128xbf16>, vector<10x16x128xf32> -> vector<10x16x128xf32>
    %c0_8 = arith.constant 0 : index
    %c0_9 = arith.constant 0 : index
    %22 = vector.load %arg4[%c0_8, %c0_9] : memref<1x128xf32, #tpu.memory_space<vmem>>, vector<1x128xf32>
    %23 = vector.shape_cast %22 : vector<1x128xf32> to vector<128xf32>
    %24 = vector.shape_cast %23 : vector<128xf32> to vector<1x1x128xf32>
    %25 = vector.broadcast %24 : vector<1x1x128xf32> to vector<10x16x128xf32>
    %26 = arith.addf %21, %25 : vector<10x16x128xf32>
    %cst_10 = arith.constant 0.000000e+00 : f32
    %27 = vector.broadcast %cst_10 : f32 to vector<10x16x128xf32>
    %28 = arith.maximumf %26, %27 : vector<10x16x128xf32>
    %cst_11 = arith.constant 0.000000e+00 : bf16
    %29 = vector.broadcast %cst_11 : bf16 to vector<10x1x128xbf16>
    %c0_12 = arith.constant 0 : index
    %c0_13 = arith.constant 0 : index
    %c0_14 = arith.constant 0 : index
    %30 = vector.load %arg9[%c0_12, %c0_13, %c0_14] : memref<10x18x128xbf16, #tpu.memory_space<vmem>>, vector<10x1x128xbf16>
    tpu.vector_store %arg9[%c0_12, %c0_13, %c0_14], %29 {strides = array<i32>} : memref<10x18x128xbf16, #tpu.memory_space<vmem>>, vector<10x1x128xbf16>,
    %cst_15 = arith.constant 0.000000e+00 : bf16
    %31 = vector.broadcast %cst_15 : bf16 to vector<10x1x128xbf16>
    %c0_16 = arith.constant 0 : index
    %c17 = arith.constant 17 : index
    %c0_17 = arith.constant 0 : index
    %32 = vector.load %arg9[%c0_16, %c17, %c0_17] : memref<10x18x128xbf16, #tpu.memory_space<vmem>>, vector<10x1x128xbf16>
    tpu.vector_store %arg9[%c0_16, %c17, %c0_17], %31 {strides = array<i32>} : memref<10x18x128xbf16, #tpu.memory_space<vmem>>, vector<10x1x128xbf16>,
    %33 = arith.truncf %28 : vector<10x16x128xf32> to vector<10x16x128xbf16>
    %c0_18 = arith.constant 0 : index
    %c1 = arith.constant 1 : index
    %c0_19 = arith.constant 0 : index
    %34 = vector.load %arg9[%c0_18, %c1, %c0_19] : memref<10x18x128xbf16, #tpu.memory_space<vmem>>, vector<10x16x128xbf16>
    tpu.vector_store %arg9[%c0_18, %c1, %c0_19], %33 {strides = array<i32>} : memref<10x18x128xbf16, #tpu.memory_space<vmem>>, vector<10x16x128xbf16>,
    %c0_i32_20 = arith.constant 0 : i32
    %35 = arith.cmpi eq, %arg1, %c0_i32_20 : i32
    %36 = arith.extui %35 : i1 to i32
    %c0_i32_21 = arith.constant 0 : i32
    %37 = arith.cmpi ne, %36, %c0_i32_21 : i32
    scf.if %37 {
      %cst_61 = arith.constant 0.000000e+00 : bf16
      %63 = vector.broadcast %cst_61 : bf16 to vector<1x18x128xbf16>
      %c0_62 = arith.constant 0 : index
      %c0_63 = arith.constant 0 : index
      %c0_64 = arith.constant 0 : index
      %64 = vector.load %arg9[%c0_62, %c0_63, %c0_64] : memref<10x18x128xbf16, #tpu.memory_space<vmem>>, vector<1x18x128xbf16>
      tpu.vector_store %arg9[%c0_62, %c0_63, %c0_64], %63 {strides = array<i32>} : memref<10x18x128xbf16, #tpu.memory_space<vmem>>, vector<1x18x128xbf16>,
    } else {
    }
    %c1_i32 = arith.constant 1 : i32
    %38 = arith.cmpi eq, %arg1, %c1_i32 : i32
    %39 = arith.extui %38 : i1 to i32
    %c0_i32_22 = arith.constant 0 : i32
    %40 = arith.cmpi ne, %39, %c0_i32_22 : i32
    scf.if %40 {
      %cst_61 = arith.constant 0.000000e+00 : bf16
      %63 = vector.broadcast %cst_61 : bf16 to vector<1x18x128xbf16>
      %c9 = arith.constant 9 : index
      %c0_62 = arith.constant 0 : index
      %c0_63 = arith.constant 0 : index
      %64 = vector.load %arg9[%c9, %c0_62, %c0_63] : memref<10x18x128xbf16, #tpu.memory_space<vmem>>, vector<1x18x128xbf16>
      tpu.vector_store %arg9[%c9, %c0_62, %c0_63], %63 {strides = array<i32>} : memref<10x18x128xbf16, #tpu.memory_space<vmem>>, vector<1x18x128xbf16>,
    } else {
    }
    %c0_23 = arith.constant 0 : index
    %c0_24 = arith.constant 0 : index
    %c0_25 = arith.constant 0 : index
    %41 = vector.load %arg9[%c0_23, %c0_24, %c0_25] : memref<10x18x128xbf16, #tpu.memory_space<vmem>>, vector<8x16x128xbf16>
    %c0_26 = arith.constant 0 : index
    %c1_27 = arith.constant 1 : index
    %c0_28 = arith.constant 0 : index
    %42 = vector.load %arg9[%c0_26, %c1_27, %c0_28] : memref<10x18x128xbf16, #tpu.memory_space<vmem>>, vector<8x16x128xbf16>
    %c0_29 = arith.constant 0 : index
    %c2 = arith.constant 2 : index
    %c0_30 = arith.constant 0 : index
    %43 = vector.load %arg9[%c0_29, %c2, %c0_30] : memref<10x18x128xbf16, #tpu.memory_space<vmem>>, vector<8x16x128xbf16>
    %c1_31 = arith.constant 1 : index
    %c0_32 = arith.constant 0 : index
    %c0_33 = arith.constant 0 : index
    %44 = vector.load %arg9[%c1_31, %c0_32, %c0_33] : memref<10x18x128xbf16, #tpu.memory_space<vmem>>, vector<8x16x128xbf16>
    %c1_34 = arith.constant 1 : index
    %c1_35 = arith.constant 1 : index
    %c0_36 = arith.constant 0 : index
    %45 = vector.load %arg9[%c1_34, %c1_35, %c0_36] : memref<10x18x128xbf16, #tpu.memory_space<vmem>>, vector<8x16x128xbf16>
    %c1_37 = arith.constant 1 : index
    %c2_38 = arith.constant 2 : index
    %c0_39 = arith.constant 0 : index
    %46 = vector.load %arg9[%c1_37, %c2_38, %c0_39] : memref<10x18x128xbf16, #tpu.memory_space<vmem>>, vector<8x16x128xbf16>
    %c2_40 = arith.constant 2 : index
    %c0_41 = arith.constant 0 : index
    %c0_42 = arith.constant 0 : index
    %47 = vector.load %arg9[%c2_40, %c0_41, %c0_42] : memref<10x18x128xbf16, #tpu.memory_space<vmem>>, vector<8x16x128xbf16>
    %c2_43 = arith.constant 2 : index
    %c1_44 = arith.constant 1 : index
    %c0_45 = arith.constant 0 : index
    %48 = vector.load %arg9[%c2_43, %c1_44, %c0_45] : memref<10x18x128xbf16, #tpu.memory_space<vmem>>, vector<8x16x128xbf16>
    %c2_46 = arith.constant 2 : index
    %c2_47 = arith.constant 2 : index
    %c0_48 = arith.constant 0 : index
    %49 = vector.load %arg9[%c2_46, %c2_47, %c0_48] : memref<10x18x128xbf16, #tpu.memory_space<vmem>>, vector<8x16x128xbf16>
    %50 = tpu.concatenate %41, %42, %43, %44, %45, %46, %47, %48, %49 in 2 : vector<8x16x128xbf16>, vector<8x16x128xbf16>, vector<8x16x128xbf16>, vector<8x16x128xbf16>, vector<8x16x128xbf16>, vector<8x16x128xbf16>, vector<8x16x128xbf16>, vector<8x16x128xbf16>, vector<8x16x128xbf16> -> vector<8x16x1152xbf16>
    %c0_49 = arith.constant 0 : index
    %c0_50 = arith.constant 0 : index
    %51 = vector.load %arg5[%c0_49, %c0_50] : memref<1152x128xbf16, #tpu.memory_space<vmem>>, vector<1152x128xbf16>
    %cst_51 = arith.constant dense<0.000000e+00> : vector<8x16x128xf32>
    %52 = tpu.matmul %50, %51, %cst_51 {dimension_numbers = #tpu.dot_dimension_numbers<[2], [0], [0, 1], [1], [0, 0, 0, 1, 1, 1], [], []>} : vector<8x16x1152xbf16>, vector<1152x128xbf16>, vector<8x16x128xf32> -> vector<8x16x128xf32>
    %c0_52 = arith.constant 0 : index
    %c0_53 = arith.constant 0 : index
    %53 = vector.load %arg6[%c0_52, %c0_53] : memref<1x128xf32, #tpu.memory_space<vmem>>, vector<1x128xf32>
    %54 = vector.shape_cast %53 : vector<1x128xf32> to vector<128xf32>
    %55 = vector.shape_cast %54 : vector<128xf32> to vector<1x1x128xf32>
    %56 = vector.broadcast %55 : vector<1x1x128xf32> to vector<8x16x128xf32>
    %57 = arith.addf %52, %56 : vector<8x16x128xf32>
    %c2_54 = arith.constant 2 : index
    %c1_55 = arith.constant 1 : index
    %c0_56 = arith.constant 0 : index
    %58 = vector.load %arg8[%c2_54, %c1_55, %c0_56] : memref<12x18x128xf32, #tpu.memory_space<vmem>>, vector<8x16x128xf32>
    %59 = arith.addf %57, %58 : vector<8x16x128xf32>
    %c0_57 = arith.constant 0 : index
    %c0_58 = arith.constant 0 : index
    %c0_59 = arith.constant 0 : index
    %c0_60 = arith.constant 0 : index
    %60 = vector.load %arg7[%c0_57, %c0_58, %c0_59, %c0_60] : memref<1x8x16x128xf32, #tpu.memory_space<vmem>>, vector<1x8x16x128xf32>
    %61 = vector.shape_cast %60 : vector<1x8x16x128xf32> to vector<8x16x128xf32>
    %62 = vector.shape_cast %59 : vector<8x16x128xf32> to vector<1x8x16x128xf32>
    tpu.vector_store %arg7[%c0_57, %c0_58, %c0_59, %c0_60], %62 {strides = array<i32>} : memref<1x8x16x128xf32, #tpu.memory_space<vmem>>, vector<1x8x16x128xf32>,
    return
  }
  func.func @transform_1(%arg0: i32, %arg1: i32) -> (i32, i32) {
    %c0_i32 = arith.constant 0 : i32
    %c0_i32_0 = arith.constant 0 : i32
    %c0_i32_1 = arith.constant 0 : i32
    return %c0_i32, %c0_i32_0 : i32, i32
  }
  func.func @transform_2(%arg0: i32, %arg1: i32) -> (i32, i32) {
    %c0_i32 = arith.constant 0 : i32
    %c0_i32_0 = arith.constant 0 : i32
    %c0_i32_1 = arith.constant 0 : i32
    return %c0_i32, %c0_i32_0 : i32, i32
  }
  func.func @transform_3(%arg0: i32, %arg1: i32) -> (i32, i32) {
    %c0_i32 = arith.constant 0 : i32
    %c0_i32_0 = arith.constant 0 : i32
    %c0_i32_1 = arith.constant 0 : i32
    return %c0_i32, %c0_i32_0 : i32, i32
  }
  func.func @transform_4(%arg0: i32, %arg1: i32) -> (i32, i32) {
    %c0_i32 = arith.constant 0 : i32
    %c0_i32_0 = arith.constant 0 : i32
    %c0_i32_1 = arith.constant 0 : i32
    return %c0_i32, %c0_i32_0 : i32, i32
  }
  func.func @transform_5(%arg0: i32, %arg1: i32) -> (i32, i32, i32, i32) {
    %c0_i32 = arith.constant 0 : i32
    %c0_i32_0 = arith.constant 0 : i32
    %c0_i32_1 = arith.constant 0 : i32
    return %arg0, %arg1, %c0_i32, %c0_i32_0 : i32, i32, i32, i32
  }
}

</mosaic_0001>

<bundles_post_ra>
// kernel: tpu_custom_call.1
= control target key start
LH: loop header
LB: loop body
LE: loop exit
PB: predicated region body
PF: predicated region fallthrough
CT: control target
= control target key end

     0   :  { %10 = vsyncpa [#allocation6], 0  ;;  %s6834_s0 = inlined_call_operand.vmem [shape: f32[2,20,18,128], index: 0, kind: input, shape index: {}]   ;;  %s6835_s1 = inlined_call_operand.vmem [shape: bf16[1152,128], index: 1, kind: input, shape index: {}]   ;;  %s6836_s2 = inlined_call_operand.vmem [shape: f32[1,128], index: 2, kind: input, shape index: {}]   ;;  %s6837_s3 = inlined_call_operand.vmem [shape: bf16[1152,128], index: 3, kind: input, shape index: {}]   ;;  %s6838_s4 = inlined_call_operand.vmem [shape: f32[1,128], index: 4, kind: input, shape index: {}]   ;;  %s6839_s5 = inlined_call_operand.hbm [shape: f32[2,16,16,128], index: 5, kind: output, shape index: {}]  }
   0x1   :  { %12 = vsyncpa [#allocation6 + $0x1], 0  ;;  %s5297_s18 = smov 0   ;;  %s5299_s19 = smov 0  }
   0x2   :  { %s5301_s20 = smov 0   ;;  %s5303_s21 = smov 0  }
   0x3   :  { %s5305_s22 = smov 0   ;;  %s5307_s23 = smov 0  }
   0x4   :  { %s5309_s24 = smov 0   ;;  %s5311_s25 = smov 0  }
   0x5 LB: > { %s4192_s26 = sadd.s32 4294967295, %s5261_s25   ;;  %s4193_s27 = sadd.s32 4294967294, %s5261_s25   ;;  %s5261_s25 = sphi %s5311_s25, %s18_s25   ;;  %s5257_s24 = sphi %s5309_s24, %s6866_s24   ;;  %s5253_s23 = sphi %s5307_s23, %s6865_s23   ;;  %s5249_s22 = sphi %s5305_s22, %s6864_s22   ;;  %s5245_s21 = sphi %s5303_s21, %s6863_s21   ;;  %s5241_s20 = sphi %s5301_s20, %s6862_s20   ;;  %s5237_s19 = sphi %s5299_s19, %s6861_s19   ;;  %s5233_s18 = sphi %s5297_s18, %s6860_s18  }
   0x6   : > { %s27_s28 = sadd.s32 1, %s5253_s23  ;;  %s30_s29 = sadd.s32 1, %s5257_s24 }
   0x7   : > { %p28_p0 = scmp.ge.s32.totalorder %s27_s28, 2  ;;  %p133_p1 = scmp.ne.s32.totalorder %s5241_s20, %s5237_s19 }
   0x8   : > { %p134_p2 = scmp.eq.s32.totalorder %s4192_s26, 3  ;;  %p139_p5 = scmp.ne.s32.totalorder %s5237_s19, %s5233_s18 }
   0x9   : > { %s6868_s28 = smov (%p28_p0, %s27_s28), 0  ;;  %s6870_s29 = smov (!%p28_p0, %s30_s29), %s5257_s24 }
   0xa   : > { %s119_s30 = ssub.s32 %s5253_s23, %s6868_s28  ;;  %p5348_p3 = por %p134_p2, %p133_p1 }
   0xb   : > { %p32_p4 = scmp.ge.s32.totalorder %s6870_s29, 2  ;;  %p140_p6 = scmp.eq.s32.totalorder %s4193_s27, 3 }
   0xc   : > { %p4195_p7 = scmp.ge.s32.totalorder %s5261_s25, 1  ;;  %p170_p9 = scmp.lt.s32.totalorder %s5261_s25, 5 }
   0xd   : > { %s6872_s29 = smov (%p32_p4, %s6870_s29), 0  ;;  %p5357_p8 = por %p140_p6, %p139_p5 }
   0xe   : > { %s118_s8 = ssub.s32 %s5257_s24, %s6872_s29  ;;  %s123_s9 = sadd.s32 1, %s5241_s20 }
   0xf   : > { %s120_s10 = sor.u32 %s119_s30, %s118_s8  ;;  %p171_p10 = pnand %p4195_p7, %p170_p9 }
  0x10   : > { %p121_p11 = scmp.eq.s32.totalorder %s120_s10, 0 }
  0x11   : > { %174 = sbr.rel (%p171_p10) target bundleno = 1323 (0x52b), region = 36 }
  0x12   : > { %s5366_s11 = scalar_select %p121_p11, %s5241_s20, %s123_s9  }
  0x16   : > { %s188_s12 = sand.u32 1, %s5237_s19   ;;  %s4198_s13 = smul.u32 192, %s5245_s21 }
  0x17   : > { %s5372_s14 = sshll.u32 %s188_s12, 7  ;;  %s195_s15 = smul.u32 480, %s5249_s22 }
  0x18   : > { %s5417_s30 = scalar_lea.vmem [#allocation5], %s5372_s14 }
  0x19   : > { %s196_s16 = sadd.s32 %s4198_s13, %s195_s15 }
  0x1a   : > { %s5378_s27 = scalar_lea.vmem %s6834_s0, %s196_s16 }
  0x1b   : > { %v210_v0 = vld [vmem:[%s5378_s27] sm:$0xff]  ;;  %v212_v1 = vld [vmem:[%s5378_s27 + $0x8] sm:$0xff]  ;;  %v214_v2 = vld [vmem:[%s5378_s27 + $0x18] sm:$0xff] }
  0x1c   : > { %211 = vst [vmem:[#allocation2] sm:$0xff] %v210_v0  ;;  %v216_v3 = vld [vmem:[%s5378_s27 + $0x20] sm:$0xff]  ;;  %v218_v4 = vld [vmem:[%s5378_s27 + $0x30] sm:$0xff]  ;;  %v220_v5 = vld [vmem:[%s5378_s27 + $0x38] sm:$0xff] }
  0x1d   : > { %213 = vst [vmem:[#allocation2 + $0x8] sm:$0xff] %v212_v1  ;;  %v222_v6 = vld [vmem:[%s5378_s27 + $0x48] sm:$0xff]  ;;  %v224_v7 = vld [vmem:[%s5378_s27 + $0x50] sm:$0xff]  ;;  %v226_v8 = vld [vmem:[%s5378_s27 + $0x60] sm:$0xff] }
  0x1e   : > { %215 = vst [vmem:[#allocation2 + $0x18] sm:$0xff] %v214_v2  ;;  %v228_v9 = vld [vmem:[%s5378_s27 + $0x68] sm:$0xff]  ;;  %v230_v10 = vld [vmem:[%s5378_s27 + $0x78] sm:$0xff]  ;;  %v232_v11 = vld [vmem:[%s5378_s27 + $0x80] sm:$0xff] }
  0x1f   : > { %217 = vst [vmem:[#allocation2 + $0x20] sm:$0xff] %v216_v3  ;;  %v234_v12 = vld [vmem:[%s5378_s27 + $0x90] sm:$0xff]  ;;  %v236_v13 = vld [vmem:[%s5378_s27 + $0x98] sm:$0xff]  ;;  %v238_v14 = vld [vmem:[%s5378_s27 + $0xa8] sm:$0xff] }
  0x20   : > { %219 = vst [vmem:[#allocation2 + $0x30] sm:$0xff] %v218_v4  ;;  %v240_v15 = vld [vmem:[%s5378_s27 + $0xb0] sm:$0xff]  ;;  %v242_v16 = vld [vmem:[%s5378_s27 + $0xc0] sm:$0xff]  ;;  %v244_v17 = vld [vmem:[%s5378_s27 + $0xc8] sm:$0xff] }
  0x21   : > { %221 = vst [vmem:[#allocation2 + $0x38] sm:$0xff] %v220_v5  ;;  %v246_v18 = vld [vmem:[%s5378_s27 + $0xd8] sm:$0xff]  ;;  %v248_v19 = vld [vmem:[%s5378_s27 + $0xe0] sm:$0xff]  ;;  %v250_v20 = vld [vmem:[%s5378_s27 + $0xf0] sm:$0xff] }
  0x22   : > { %223 = vst [vmem:[#allocation2 + $0x48] sm:$0xff] %v222_v6  ;;  %v252_v21 = vld [vmem:[%s5378_s27 + $0xf8] sm:$0xff]  ;;  %v254_v22 = vld [vmem:[%s5378_s27 + $0x108] sm:$0xff]  ;;  %v256_v23 = vld [vmem:[%s5378_s27 + $0x110] sm:$0xff] }
  0x23   : > { %225 = vst [vmem:[#allocation2 + $0x50] sm:$0xff] %v224_v7  ;;  %v4199_v24 = vld [vmem:[%s5378_s27 + $0x10] sm:$0x3]  ;;  %v4200_v25 = vld [vmem:[%s5378_s27 + $0x28] sm:$0x3] }
  0x24   : > { %227 = vst [vmem:[#allocation2 + $0x60] sm:$0xff] %v226_v8  ;;  %v4201_v26 = vld [vmem:[%s5378_s27 + $0x40] sm:$0x3]  ;;  %v4202_v27 = vld [vmem:[%s5378_s27 + $0x58] sm:$0x3] }
  0x25   : > { %229 = vst [vmem:[#allocation2 + $0x68] sm:$0xff] %v228_v9  ;;  %v4203_v28 = vld [vmem:[%s5378_s27 + $0x70] sm:$0x3]  ;;  %v4204_v29 = vld [vmem:[%s5378_s27 + $0x88] sm:$0x3] }
  0x26   : > { %231 = vst [vmem:[#allocation2 + $0x78] sm:$0xff] %v230_v10  ;;  %v4205_v30 = vld [vmem:[%s5378_s27 + $0xa0] sm:$0x3]  ;;  %v4206_v31 = vld [vmem:[%s5378_s27 + $0xb8] sm:$0x3] }
  0x27   : > { %233 = vst [vmem:[#allocation2 + $0x80] sm:$0xff] %v232_v11  ;;  %v4207_v32 = vld [vmem:[%s5378_s27 + $0xd0] sm:$0x3]  ;;  %v4208_v33 = vld [vmem:[%s5378_s27 + $0xe8] sm:$0x3] }
  0x28   : > { %235 = vst [vmem:[#allocation2 + $0x90] sm:$0xff] %v234_v12  ;;  %v4209_v34 = vld [vmem:[%s5378_s27 + $0x100] sm:$0x3]  ;;  %v4210_v35 = vld [vmem:[%s5378_s27 + $0x118] sm:$0x3] }
  0x29   : > { %237 = vst [vmem:[#allocation2 + $0x98] sm:$0xff] %v236_v13 }
  0x2a   : > { %239 = vst [vmem:[#allocation2 + $0xa8] sm:$0xff] %v238_v14 }
  0x2b   : > { %241 = vst [vmem:[#allocation2 + $0xb0] sm:$0xff] %v240_v15 }
  0x2c   : > { %243 = vst [vmem:[#allocation2 + $0xc0] sm:$0xff] %v242_v16 }
  0x2d   : > { %245 = vst [vmem:[#allocation2 + $0xc8] sm:$0xff] %v244_v17 }
  0x2e   : > { %247 = vst [vmem:[#allocation2 + $0xd8] sm:$0xff] %v246_v18 }
  0x2f   : > { %249 = vst [vmem:[#allocation2 + $0xe0] sm:$0xff] %v248_v19 }
  0x30   : > { %251 = vst [vmem:[#allocation2 + $0xf0] sm:$0xff] %v250_v20 }
  0x31   : > { %253 = vst [vmem:[#allocation2 + $0xf8] sm:$0xff] %v252_v21 }
  0x32   : > { %255 = vst [vmem:[#allocation2 + $0x108] sm:$0xff] %v254_v22 }
  0x33   : > { %257 = vst [vmem:[#allocation2 + $0x110] sm:$0xff] %v256_v23 }
  0x34   : > { %269 = vst [vmem:[#allocation2 + $0x10] sm:$0x3] %v4199_v24 }
  0x35   : > { %271 = vst [vmem:[#allocation2 + $0x28] sm:$0x3] %v4200_v25 }
  0x36   : > { %273 = vst [vmem:[#allocation2 + $0x40] sm:$0x3] %v4201_v26 }
  0x37   : > { %275 = vst [vmem:[#allocation2 + $0x58] sm:$0x3] %v4202_v27 }
  0x38   : > { %277 = vst [vmem:[#allocation2 + $0x70] sm:$0x3] %v4203_v28 }
  0x39   : > { %279 = vst [vmem:[#allocation2 + $0x88] sm:$0x3] %v4204_v29 }
  0x3a   : > { %281 = vst [vmem:[#allocation2 + $0xa0] sm:$0x3] %v4205_v30 }
  0x3b   : > { %283 = vst [vmem:[#allocation2 + $0xb8] sm:$0x3] %v4206_v31 }
  0x3c   : > { %285 = vst [vmem:[#allocation2 + $0xd0] sm:$0x3] %v4207_v32 }
  0x3d   : > { %287 = vst [vmem:[#allocation2 + $0xe8] sm:$0x3] %v4208_v33 }
  0x3e   : > { %289 = vst [vmem:[#allocation2 + $0x100] sm:$0x3] %v4209_v34 }
  0x3f   : > { %291 = vst [vmem:[#allocation2 + $0x118] sm:$0x3] %v4210_v35 }
  0x40   : > { %295 = vsyncadd [#allocation4], 3456 }
  0x41   : > { %5225 = dma.done.wait [#allocation4], 3456 }
  0x42   : > { %5226 = vsyncadd [#allocation4], 4294963840  ;;  %v4804_v36 = vld [vmem:[%s6835_s1 + $0x38] sm:$0xff]  ;;  %v4803_v38 = vld [vmem:[%s6835_s1 + $0x30] sm:$0xff]  ;;  %vm498_vm0 = vsmask.f32 7424 }
  0x43   : > { %v4812_v37 = vld [vmem:[%s6835_s1 + $0x78] sm:$0xff]  ;;  %1302 = vmatpush.bf16.msra.mxu0 %v4804_v36  ;;  %v4811_v39 = vld [vmem:[%s6835_s1 + $0x70] sm:$0xff]  ;;  %v4802_v40 = vld [vmem:[%s6835_s1 + $0x28] sm:$0xff]  ;;  %vm629_vm1 = vcmask 1046528   ;;  %vm1853_vm2 = vcmask 1040384   ;;  %vm2140_vm7 = vcmask 1043456  }
  0x44   : > { %5036 = vmatpush.bf16.msra.mxu3 %v4812_v37  ;;  %1361 = vmatpush.bf16.msra.mxu1 %v4812_v37  ;;  %v4810_v41 = vld [vmem:[%s6835_s1 + $0x68] sm:$0xff]  ;;  %v300_v42 = vld [vmem:[#allocation2] sm:$0xff]  ;;  %v322_v47 = vld [vmem:[#allocation2 + $0xb0] sm:$0xff]  ;;  %vm1854_vm3 = vsmask.f32 256  ;;  %p4499_p12 = scmp.ne.s32.totalorder %s5245_s21, 0 }
  0x45   : > { %v301_v43 = vld [vmem:[#allocation2 + $0x8] sm:$0xff]  ;;  %v336_v44 = vmax.f32 %v300_v42, 0.0  ;;  %v323_v48 = vld [vmem:[#allocation2 + $0xb8] sm:$0x3]  ;;  %v358_v50 = vmax.f32 %v322_v47, 0.0  ;;  %v4801_v57 = vld [vmem:[%s6835_s1 + $0x20] sm:$0xff] }
  0x46   : > { %v337_v45 = vmax.f32 %v301_v43, 0.0  ;;  %v321_v46 = vld [vmem:[#allocation2 + $0xa8] sm:$0xff]  ;;  %v359_v51 = vmax.f32 %v323_v48, 0.0  ;;  %v5440_v52 = vld [vmem:[%s6835_s1 + $0xb8] sm:$0xff]  ;;  %v302_v53 = vld [vmem:[#allocation2 + $0x10] sm:$0x3] }
  0x47   : > { %1303 = vmatpush.bf16.msra.mxu0 %v4803_v38  ;;  %v357_v49 = vmax.f32 %v321_v46, 0.0  ;;  %v372_v54 = vpack.c.bf16 %v336_v44, %v336_v44  ;;  %v338_v56 = vmax.f32 %v302_v53, 0.0  ;;  %v394_v59 = vpack.c.bf16 %v358_v50, %v358_v50  ;;  %5044 = vmatpush.bf16.msra.mxu2 %v5440_v52  ;;  %v4809_v61 = vld [vmem:[%s6835_s1 + $0x60] sm:$0xff]  ;;  %v303_v63 = vld [vmem:[#allocation2 + $0x18] sm:$0xff]  ;;  %v325_v14 = vld [vmem:[#allocation2 + $0xc8] sm:$0xff] }
  0x48   : > { %5037 = vmatpush.bf16.msra.mxu3 %v4811_v39  ;;  %1362 = vmatpush.bf16.msra.mxu1 %v4811_v39  ;;  %v373_v55 = vpack.c.bf16 %v337_v45, %v337_v45  ;;  %v395_v60 = vpack.c.bf16 %v359_v51, %v359_v51  ;;  %v304_v4 = vld [vmem:[#allocation2 + $0x20] sm:$0xff]  ;;  %v339_v6 = vmax.f32 %v303_v63, 0.0  ;;  %v4800_v7 = vld [vmem:[%s6835_s1 + $0x18] sm:$0xff]  ;;  %v326_v17 = vld [vmem:[#allocation2 + $0xd0] sm:$0x3]  ;;  %v361_v22 = vmax.f32 %v325_v14, 0.0 }
  0x49   : > { %v393_v58 = vpack.c.bf16 %v357_v49, %v357_v49  ;;  %v428_v62 = vunpack.c.l.b16 %v372_v54  ;;  %v443_v2 = vunpack.c.l.b16 %v394_v59  ;;  %v374_v3 = vpack.c.bf16 %v338_v56, %v338_v56  ;;  %v4808_v8 = vld [vmem:[%s6835_s1 + $0x58] sm:$0xff]  ;;  %v324_v13 = vld [vmem:[#allocation2 + $0xc0] sm:$0xff]  ;;  %v4799_v18 = vld [vmem:[%s6835_s1 + $0x10] sm:$0xff] }
  0x4a   : > { %v429_v0 = vunpack.c.l.b16 %v373_v55  ;;  %v485_v5 = vunpack.c.l.b16 %v395_v60  ;;  %v340_v12 = vmax.f32 %v304_v4, 0.0  ;;  %v375_v16 = vpack.c.bf16 %v339_v6, %v339_v6  ;;  %v4807_v19 = vld [vmem:[%s6835_s1 + $0x50] sm:$0xff]  ;;  %v305_v27 = vld [vmem:[#allocation2 + $0x28] sm:$0x3]  ;;  %v5496_v44 = vld [vmem:[%s6835_s1 + $0xa0] sm:$0xff] }
  0x4b   : > { %1304 = vmatpush.bf16.msra.mxu0 %v4802_v40  ;;  %v442_v1 = vunpack.c.l.b16 %v393_v58  ;;  %v478_v11 = vunpack.c.l.b16 %v374_v3  ;;  %v360_v21 = vmax.f32 %v324_v13, 0.0  ;;  %v5471_v23 = vld [vmem:[%s6835_s1 + $0xb0] sm:$0xff]  ;;  %v362_v28 = vmax.f32 %v326_v17, 0.0  ;;  %v5480_v29 = vld [vmem:[%s6835_s1 + $0xa8] sm:$0xff]  ;;  %v4797_v46 = vld [vmem:[%s6835_s1] sm:$0xff] }
  0x4c   : > { %5038 = vmatpush.bf16.msra.mxu3 %v4810_v41  ;;  %1363 = vmatpush.bf16.msra.mxu1 %v4810_v41  ;;  %v5457_v10 = vpack.c.b16 %v429_v0, %v428_v62  ;;  %v5459_v15 = vpack.c.b16 %v485_v5, %v485_v5  ;;  %v376_v26 = vpack.c.bf16 %v340_v12, %v340_v12  ;;  %v430_v32 = vunpack.c.l.b16 %v375_v16  ;;  %v4798_v33 = vld [vmem:[%s6835_s1 + $0x8] sm:$0xff]  ;;  %v4805_v47 = vld [vmem:[%s6835_s1 + $0x40] sm:$0xff]  ;;  %v5513_v58 = vld [vmem:[%s6835_s1 + $0x98] sm:$0xff] }
  0x4d   : > { %v5455_v9 = vpack.c.b16 %v443_v2, %v442_v1  ;;  %v5473_v24 = vpack.c.b16 %v478_v11, %v478_v11  ;;  %5045 = vmatpush.bf16.msra.mxu2 %v5471_v23  ;;  %v4806_v34 = vld [vmem:[%s6835_s1 + $0x48] sm:$0xff]  ;;  %v396_v36 = vpack.c.bf16 %v360_v21, %v360_v21  ;;  %v397_v37 = vpack.c.bf16 %v361_v22, %v361_v22  ;;  %v306_v59 = vld [vmem:[#allocation2 + $0x30] sm:$0xff]  ;;  %v307_v60 = vld [vmem:[#allocation2 + $0x38] sm:$0xff] }
  0x4e   : > { %v502_v25 = vshll.u32 %v5457_v10, 16  ;;  %v591_v31 = vshll.u32 %v5459_v15, 16  ;;  %v341_v38 = vmax.f32 %v305_v27, 0.0  ;;  %v500_v39 = vshrl.u32 %v5457_v10, 16  ;;  %v327_v2 = vld [vmem:[#allocation2 + $0xd8] sm:$0xff]  ;;  %v328_v3 = vld [vmem:[#allocation2 + $0xe0] sm:$0xff]  ;;  %vm6107_vm4 = vmand %vm1853_vm2, %vm1854_vm3 }
  0x4f   : > { %1305 = vmatpush.bf16.msra.mxu0 %v4801_v57  ;;  %v586_v20 = vshll.u32 %v5455_v9, 16  ;;  %v584_v30 = vshrl.u32 %v5455_v9, 16  ;;  %v507_v41 = vshll.u32 %v5473_v24, 16  ;;  %v431_v42 = vunpack.c.l.b16 %v376_v26  ;;  %v4828_v57 = vld [vmem:[%s6835_s1 + $0xf8] sm:$0xff]  ;;  %v4827_v5 = vld [vmem:[%s6835_s1 + $0xf0] sm:$0xff] }
  0x50   : > { %5039 = vmatpush.bf16.msra.mxu3 %v4809_v61  ;;  %1364 = vmatpush.bf16.msra.mxu1 %v4809_v61  ;;  %v504_v40 = vrot.slane %v502_v25, 1  ;;  %v398_v43 = vpack.c.bf16 %v362_v28, %v362_v28  ;;  %v593_v45 = vrot.slane %v591_v31, 1  ;;  %v444_v49 = vunpack.c.l.b16 %v396_v36  ;;  %v329_v11 = vld [vmem:[#allocation2 + $0xe8] sm:$0x3]  ;;  %v5537_v14 = vld [vmem:[%s6835_s1 + $0x90] sm:$0xff] }
  0x51   : > { %v588_v35 = vrot.slane %v586_v20, 1  ;;  %5046 = vmatpush.bf16.msra.mxu2 %v5480_v29  ;;  %v445_v50 = vunpack.c.l.b16 %v397_v37  ;;  %v377_v51 = vpack.c.bf16 %v341_v38, %v341_v38  ;;  %v509_v54 = vrot.slane %v507_v41, 1  ;;  %v5547_v20 = vld [vmem:[%s6835_s1 + $0x88] sm:$0xff]  ;;  %v310_v27 = vld [vmem:[#allocation2 + $0x50] sm:$0xff]  ;;  %v311_v28 = vld [vmem:[#allocation2 + $0x58] sm:$0x3] }
  0x52   : > { %v505_v53 = vor.u32 %v504_v40, %v500_v39  ;;  %v5504_v55 = vpack.c.b16 %v431_v42, %v430_v32  ;;  %v486_v56 = vunpack.c.l.b16 %v398_v43  ;;  %v342_v6 = vmax.f32 %v306_v59, 0.0 }
  0x53   : > { %1306 = vmatpush.bf16.msra.mxu0 %v4800_v7  ;;  %v589_v48 = vor.u32 %v588_v35, %v584_v30  ;;  %v5518_v62 = vpack.c.b16 %v445_v50, %v444_v49  ;;  %v479_v63 = vunpack.c.l.b16 %v377_v51  ;;  %v343_v7 = vmax.f32 %v307_v60, 0.0 }
  0x54   : > { %5040 = vmatpush.bf16.msra.mxu3 %v4808_v8  ;;  %1365 = vmatpush.bf16.msra.mxu1 %v4808_v8  ;;  %v510_v0 = vsel %vm498_vm0, %v505_v53, %v509_v54  ;;  %v514_v1 = vshll.u32 %v5504_v55, 16  ;;  %v5523_v4 = vpack.c.b16 %v486_v56, %v486_v56  ;;  %v363_v12 = vmax.f32 %v327_v2, 0.0 }
  0x55   : > { %5047 = vmatpush.bf16.msra.mxu2 %v5496_v44  ;;  %v5516_v61 = vsel %vm498_vm0, %v589_v48, %v593_v45  ;;  %v5532_v8 = vpack.c.b16 %v479_v63, %v479_v63  ;;  %v364_v13 = vmax.f32 %v328_v3, 0.0  ;;  %v512_v16 = vshrl.u32 %v5504_v55, 16  ;;  %v4825_v45 = vld [vmem:[%s6835_s1 + $0xe0] sm:$0xff] }
  0x56   : > { %v516_v17 = vrot.slane %v514_v1, 1  ;;  %v596_v21 = vshrl.u32 %v5518_v62, 16  ;;  %v603_v22 = vshll.u32 %v5523_v4, 16  ;;  %v378_v25 = vpack.c.bf16 %v342_v6, %v342_v6 }
  0x57   : > { %1307 = vmatpush.bf16.msra.mxu0 %v4799_v18  ;;  %v4826_v18 = vld [vmem:[%s6835_s1 + $0xe8] sm:$0xff]  ;;  %v379_v26 = vpack.c.bf16 %v343_v7, %v343_v7  ;;  %v365_v30 = vmax.f32 %v329_v11, 0.0  ;;  %v346_v32 = vmax.f32 %v310_v27, 0.0  ;;  %v519_v35 = vshll.u32 %v5532_v8, 16 }
  0x58   : > { %5041 = vmatpush.bf16.msra.mxu3 %v4807_v19  ;;  %1366 = vmatpush.bf16.msra.mxu1 %v4807_v19  ;;  %v308_v19 = vld [vmem:[#allocation2 + $0x40] sm:$0x3]  ;;  %v399_v36 = vpack.c.bf16 %v363_v12, %v363_v12  ;;  %v400_v37 = vpack.c.bf16 %v364_v13, %v364_v13  ;;  %v605_v42 = vrot.slane %v603_v22, 1  ;;  %v517_v43 = vor.u32 %v516_v17, %v512_v16  ;;  %v4823_v12 = vld [vmem:[%s6835_s1 + $0xd0] sm:$0xff] }
  0x59   : > { %5048 = vmatpush.bf16.msra.mxu2 %v5513_v58  ;;  %v344_v38 = vmax.f32 %v308_v19, 0.0  ;;  %v382_v40 = vpack.c.bf16 %v346_v32, %v346_v32  ;;  %v433_v48 = vunpack.c.l.b16 %v379_v26  ;;  %v401_v53 = vpack.c.bf16 %v365_v30, %v365_v30  ;;  %v314_v19 = vld [vmem:[#allocation2 + $0x70] sm:$0x3] }
  0x5a   : > { %v446_v54 = vunpack.c.l.b16 %v399_v36  ;;  %v447_v56 = vunpack.c.l.b16 %v400_v37  ;;  %v350_v26 = vmax.f32 %v314_v19, 0.0  ;;  %vm1886_vm5 = vsmask.f32 7938 }
  0x5b   : > { %1308 = vmatpush.bf16.msra.mxu0 %v4798_v33  ;;  %v347_v33 = vmax.f32 %v311_v28, 0.0  ;;  %v435_v49 = vunpack.c.l.b16 %v382_v40  ;;  %v380_v59 = vpack.c.bf16 %v344_v38, %v344_v38  ;;  %vm6117_vm6 = vmand %vm1853_vm2, %vm1886_vm5  ;;  %vm1938_vm9 = vsmask.f32 4368 }
  0x5c   : > { %5042 = vmatpush.bf16.msra.mxu3 %v4806_v34  ;;  %1367 = vmatpush.bf16.msra.mxu1 %v4806_v34  ;;  %v5579_v6 = vpack.c.b16 %v447_v56, %v446_v54  ;;  %vm6159_vm8 = vmand %vm2140_vm7, %vm1886_vm5 }
  0x5d   : > { %5049 = vmatpush.bf16.msra.mxu2 %v5537_v14  ;;  %v383_v41 = vpack.c.bf16 %v347_v33, %v347_v33  ;;  %vm6177_vm10 = vmor %vm1854_vm3, %vm1938_vm9 }
  0x5e   : > { %v610_v16 = vshll.u32 %v5579_v6, 16  ;;  %v608_v32 = vshrl.u32 %v5579_v6, 16 }
  0x5f   : > { %1309 = vmatpush.bf16.msra.mxu0 %v4797_v46  ;;  %v432_v46 = vunpack.c.l.b16 %v378_v25  ;;  %v481_v50 = vunpack.c.l.b16 %v383_v41 }
  0x60   : > { %5043 = vmatpush.bf16.msra.mxu3 %v4805_v47  ;;  %1368 = vmatpush.bf16.msra.mxu1 %v4805_v47  ;;  %v5561_v47 = vld [vmem:[%s6835_s1 + $0x80] sm:$0xff]  ;;  %v612_v33 = vrot.slane %v610_v16, 1 }
  0x61   : > { %5050 = vmatpush.bf16.msra.mxu2 %v5547_v20  ;;  %v5565_v63 = vpack.c.b16 %v481_v50, %v481_v50 }
  0x62   : > { %1310 = vmatmul.bf16.vlgmr.msra.gmra.mxu0 %v5457_v10 }
  0x63   : > { %1420 = vmatpush.bf16.msrb.mxu0 %v5440_v52  ;;  %1404 = vmatmul.bf16.vlgmr.msra.gmra.mxu3 %v5516_v61  ;;  %v598_v52 = vshll.u32 %v5518_v62, 16  ;;  %v640_v2 = vrot.slane %v5565_v63, 1 }
  0x64   : > { %1479 = vmatpush.bf16.msrb.mxu3 %v4828_v57  ;;  %1369 = vmatmul.bf16.vlgmr.msra.gmra.mxu1 %v510_v0  ;;  %v521_v57 = vrot.slane %v519_v35, 1  ;;  %v4824_v0 = vld [vmem:[%s6835_s1 + $0xd8] sm:$0xff] }
  0x65   : > { %v600_v34 = vrot.slane %v598_v52, 1  ;;  %5051 = vmatpush.bf16.msra.mxu2 %v5561_v47  ;;  %v480_v52 = vunpack.c.l.b16 %v380_v59 }
  0x66   : > { %v5582_v7 = vsel %vm498_vm0, %v517_v43, %v521_v57 }
  0x67   : > { %1421 = vmatpush.bf16.msrb.mxu0 %v5471_v23  ;;  %v309_v23 = vld [vmem:[#allocation2 + $0x48] sm:$0xff]  ;;  %v601_v51 = vor.u32 %v600_v34, %v596_v21  ;;  %v5599_v21 = vpack.c.b16 %v480_v52, %v480_v52  ;;  %v543_v52 = vshll.u32 %v5565_v63, 16 }
  0x68   : > { %1480 = vmatpush.bf16.msrb.mxu3 %v4827_v5  ;;  %v345_v31 = vmax.f32 %v309_v23, 0.0  ;;  %v5577_v5 = vpack.c.b16 %v433_v48, %v432_v46  ;;  %v4822_v23 = vld [vmem:[%s6835_s1 + $0xc8] sm:$0xff] }
  0x69   : > { %v5575_v3 = vsel %vm498_vm0, %v601_v51, %v605_v42  ;;  %v531_v36 = vshll.u32 %v5599_v21, 16  ;;  %v613_v42 = vor.u32 %v612_v33, %v608_v32  ;;  %v315_v51 = vld [vmem:[#allocation2 + $0x78] sm:$0xff]  ;;  %v320_v32 = vld [vmem:[#allocation2 + $0xa0] sm:$0x3] }
  0x6a   : > { %v381_v39 = vpack.c.bf16 %v345_v31, %v345_v31  ;;  %v526_v17 = vshll.u32 %v5577_v5, 16  ;;  %v524_v27 = vshrl.u32 %v5577_v5, 16  ;;  %v386_v31 = vpack.c.bf16 %v350_v26, %v350_v26 }
  0x6b   : > { %1422 = vmatpush.bf16.msrb.mxu0 %v5480_v29  ;;  %v533_v46 = vrot.slane %v531_v36, 1  ;;  %v351_v56 = vmax.f32 %v315_v51, 0.0 }
  0x6c   : > { %1481 = vmatpush.bf16.msrb.mxu3 %v4826_v18  ;;  %v434_v29 = vunpack.c.l.b16 %v381_v39  ;;  %v313_v18 = vld [vmem:[#allocation2 + $0x68] sm:$0xff]  ;;  %v528_v35 = vrot.slane %v526_v17, 1  ;;  %v482_v38 = vunpack.c.l.b16 %v386_v31  ;;  %v4821_v39 = vld [vmem:[%s6835_s1 + $0xc0] sm:$0xff]  ;;  %v319_v31 = vld [vmem:[#allocation2 + $0x98] sm:$0xff] }
  0x6d   : > { %v349_v25 = vmax.f32 %v313_v18, 0.0 }
  0x6e   : > { %v5563_v60 = vpack.c.b16 %v435_v49, %v434_v29  ;;  %v5615_v41 = vpack.c.b16 %v482_v38, %v482_v38 }
  0x6f   : > { %1423 = vmatpush.bf16.msrb.mxu0 %v5496_v44  ;;  %v487_v44 = vunpack.c.l.b16 %v401_v53  ;;  %v385_v30 = vpack.c.bf16 %v349_v25, %v349_v25  ;;  %v317_v53 = vld [vmem:[#allocation2 + $0x88] sm:$0x3]  ;;  %v545_v25 = vrot.slane %v543_v52, 1 }
  0x70   : > { %1482 = vmatpush.bf16.msrb.mxu3 %v4825_v45  ;;  %v639_v1 = vrot.slane %v5563_v60, 1  ;;  %v529_v45 = vor.u32 %v528_v35, %v524_v27  ;;  %v643_v29 = vrot.slane %v5615_v41, 1  ;;  %v538_v54 = vshll.u32 %v5563_v60, 16 }
  0x71   : > { %v5595_v13 = vpack.c.b16 %v487_v44, %v487_v44  ;;  %v353_v59 = vmax.f32 %v317_v53, 0.0  ;;  %v536_v44 = vshrl.u32 %v5563_v60, 16  ;;  %v356_v35 = vmax.f32 %v320_v32, 0.0 }
  0x72   : > { %v5585_v11 = vsel %vm629_vm1, %v639_v1, %v640_v2  ;;  %1315 = vmatmul.bf16.gmra.mxu0 %v5504_v55  ;;  %v5627_v50 = vsel %vm498_vm0, %v529_v45, %v533_v46  ;;  %v657_v32 = vrot.slane %v5579_v6, 1 }
  0x73   : > { %6844 = vst [vmem:[#allocation10_spill] sm:$0xff] %v5585_v11  ;;  %1424 = vmatpush.bf16.msrb.mxu0 %v5513_v58  ;;  %1443 = vmatmul.bf16.vlgmr.msra.gmra.mxu2 %v5585_v11  ;;  %v312_v58 = vld [vmem:[#allocation2 + $0x60] sm:$0xff]  ;;  %v615_v34 = vshll.u32 %v5595_v13, 16  ;;  %v389_v2 = vpack.c.bf16 %v353_v59, %v353_v59 }
  0x74   : > { %1483 = vmatpush.bf16.msrb.mxu3 %v4824_v0  ;;  %1374 = vmatmul.bf16.gmra.mxu1 %v5582_v7  ;;  %v348_v22 = vmax.f32 %v312_v58, 0.0  ;;  %v387_v0 = vpack.c.bf16 %v351_v56, %v351_v56 }
  0x75   : > { %1409 = vmatmul.bf16.gmra.mxu3 %v5575_v3  ;;  %v617_v43 = vrot.slane %v615_v34, 1  ;;  %v483_v58 = vunpack.c.l.b16 %v389_v2  ;;  %v355_v34 = vmax.f32 %v319_v31, 0.0  ;;  %v651_v2 = vrot.slane %v5455_v9, 1 }
  0x76   : > { %v384_v28 = vpack.c.bf16 %v348_v22, %v348_v22  ;;  %v438_v16 = vunpack.c.l.b16 %v387_v0 }
  0x77   : > { %1425 = vmatpush.bf16.msrb.mxu0 %v5537_v14  ;;  %v437_v14 = vunpack.c.l.b16 %v385_v30  ;;  %v5624_v49 = vsel %vm498_vm0, %v613_v42, %v617_v43  ;;  %v493_v19 = vpack.c.b16 %v483_v58, %v483_v58  ;;  %v318_v30 = vld [vmem:[#allocation2 + $0x90] sm:$0xff]  ;;  %v555_v42 = vshll.u32 %v5615_v41, 16 }
  0x78   : > { %1484 = vmatpush.bf16.msrb.mxu3 %v4823_v12  ;;  %v436_v37 = vunpack.c.l.b16 %v384_v28  ;;  %v540_v12 = vrot.slane %v538_v54, 1  ;;  %v354_v33 = vmax.f32 %v318_v30, 0.0 }
  0x7a   : > { %v5613_v40 = vpack.c.b16 %v437_v14, %v436_v37  ;;  %v541_v22 = vor.u32 %v540_v12, %v536_v44  ;;  %v390_v36 = vpack.c.bf16 %v354_v33, %v354_v33  ;;  %v391_v37 = vpack.c.bf16 %v355_v34, %v355_v34  ;;  %v5704_v34 = vld [vmem:[%s6836_s2] ss:$0 sm:$0xff] }
  0x7b   : > { %1426 = vmatpush.bf16.msrb.mxu0 %v5547_v20  ;;  %v392_v14 = vpack.c.bf16 %v356_v35, %v356_v35  ;;  %v652_v44 = vrot.slane %v5459_v15, 1  ;;  %v658_v33 = vrot.slane %v5595_v13, 1  ;;  %v4836_v13 = vld [vmem:[%s6835_s1 + $0x138] sm:$0xff] }
  0x7c   : > { %1485 = vmatpush.bf16.msrb.mxu3 %v4822_v23  ;;  %v642_v48 = vrot.slane %v5613_v40, 1  ;;  %v646_v23 = vrot.slane %v493_v19, 1  ;;  %v5643_v28 = vsel %vm498_vm0, %v541_v22, %v545_v25  ;;  %v550_v63 = vshll.u32 %v5613_v40, 16 }
  0x7d   : > { %v548_v38 = vshrl.u32 %v5613_v40, 16  ;;  %v440_v43 = vunpack.c.l.b16 %v390_v36  ;;  %v441_v45 = vunpack.c.l.b16 %v391_v37  ;;  %v484_v46 = vunpack.c.l.b16 %v392_v14 }
  0x7e   : > { %v5621_v20 = vsel %vm629_vm1, %v642_v48, %v643_v29 }
  0x7f   : > { %1427 = vmatpush.bf16.msrb.mxu0 %v5561_v47  ;;  %v316_v47 = vld [vmem:[#allocation2 + $0x80] sm:$0xff]  ;;  %v5652_v48 = vpack.c.b16 %v441_v45, %v440_v43  ;;  %v494_v29 = vpack.c.b16 %v484_v46, %v484_v46  ;;  %v4835_v43 = vld [vmem:[%s6835_s1 + $0x130] sm:$0xff]  ;;  %v4834_v46 = vld [vmem:[%s6835_s1 + $0x128] sm:$0xff] }
  0x80   : > { %1486 = vmatpush.bf16.msrb.mxu3 %v4821_v39  ;;  %v352_v57 = vmax.f32 %v316_v47, 0.0  ;;  %v552_v39 = vrot.slane %v550_v63, 1  ;;  %v557_v47 = vrot.slane %v555_v42, 1  ;;  %v655_v63 = vrot.slane %v5523_v4, 1 }
  0x81   : > { %v648_v53 = vrot.slane %v5652_v48, 1  ;;  %v649_v54 = vrot.slane %v494_v29, 1  ;;  %v574_v58 = vshll.u32 %v5652_v48, 16  ;;  %v572_v15 = vshrl.u32 %v5652_v48, 16 }
  0x82   : > { %1320 = vmatmul.bf16.gmra.mxu0 %v5577_v5  ;;  %v388_v1 = vpack.c.bf16 %v352_v57, %v352_v57  ;;  %v553_v51 = vor.u32 %v552_v39, %v548_v38  ;;  %v579_v22 = vshll.u32 %v494_v29, 16  ;;  %v5696_v4 = vsel %vm629_vm1, %v657_v32, %v658_v33  ;;  %v4849_v32 = vld [vmem:[%s6835_s1 + $0x1a0] sm:$0xff] }
  0x83   : > { %1448 = vmatmul.bf16.gmra.mxu2 %v5621_v20  ;;  %v5656_v56 = vsel %vm629_vm1, %v648_v53, %v649_v54  ;;  %1538 = vmatpush.bf16.msra.mxu0 %v4836_v13  ;;  %v4860_v54 = vld [vmem:[%s6835_s1 + $0x1f8] sm:$0xff] }
  0x84   : > { %1379 = vmatmul.bf16.gmra.mxu1 %v5627_v50  ;;  %v439_v17 = vunpack.c.l.b16 %v388_v1  ;;  %v5659_v57 = vsel %vm498_vm0, %v553_v51, %v557_v47  ;;  %v567_v1 = vshll.u32 %v493_v19, 16  ;;  %v576_v19 = vrot.slane %v574_v58, 1  ;;  %v4852_v51 = vld [vmem:[%s6835_s1 + $0x1b8] sm:$0xff]  ;;  %1715 = vmatpush.bf16.msra.mxu3 %v4860_v54  ;;  %v4843_v58 = vld [vmem:[%s6835_s1 + $0x170] sm:$0xff] }
  0x85   : > { %1414 = vmatmul.bf16.gmra.mxu3 %v5624_v49  ;;  %1656 = vmatpush.bf16.msrb.mxu2 %v4852_v51  ;;  %v4856_v51 = vld [vmem:[%s6835_s1 + $0x1d8] sm:$0xff]  ;;  %v4847_v54 = vld [vmem:[%s6835_s1 + $0x190] sm:$0xff] }
  0x86   : > { %v5636_v18 = vpack.c.b16 %v439_v17, %v438_v16  ;;  %v569_v12 = vrot.slane %v567_v1, 1  ;;  %v5670_v16 = vsel %vm629_vm1, %v651_v2, %v652_v44  ;;  %v577_v25 = vor.u32 %v576_v19, %v572_v15  ;;  %v4833_v1 = vld [vmem:[%s6835_s1 + $0x120] sm:$0xff]  ;;  %v4859_v44 = vld [vmem:[%s6835_s1 + $0x1f0] sm:$0xff]  ;;  %v4850_v15 = vld [vmem:[%s6835_s1 + $0x1a8] sm:$0xff] }
  0x87   : > { %1539 = vmatpush.bf16.msra.mxu0 %v4835_v43 }
  0x88   : > { %v645_v26 = vrot.slane %v5636_v18, 1  ;;  %v562_v41 = vshll.u32 %v5636_v18, 16  ;;  %v560_v59 = vshrl.u32 %v5636_v18, 16  ;;  %1716 = vmatpush.bf16.msra.mxu3 %v4859_v44 }
  0x8a   : > { %v5640_v27 = vsel %vm629_vm1, %v645_v26, %v646_v23  ;;  %v564_v0 = vrot.slane %v562_v41, 1  ;;  %v581_v26 = vrot.slane %v579_v22, 1  ;;  %v654_v23 = vrot.slane %v5518_v62, 1  ;;  %v4858_v22 = vld [vmem:[%s6835_s1 + $0x1e8] sm:$0xff] }
  0x8b   : > { %1540 = vmatpush.bf16.msra.mxu0 %v4834_v46  ;;  %v4831_v46 = vld [vmem:[%s6835_s1 + $0x110] sm:$0xff] }
  0x8c   : > { %v565_v52 = vor.u32 %v564_v0, %v560_v59  ;;  %v5684_v30 = vsel %vm629_vm1, %v654_v23, %v655_v63  ;;  %v5687_v31 = vsel %vm498_vm0, %v577_v25, %v581_v26  ;;  %v4844_v59 = vld [vmem:[%s6835_s1 + $0x178] sm:$0xff]  ;;  %v4851_v0 = vld [vmem:[%s6835_s1 + $0x1b0] sm:$0xff]  ;;  %v630_v26 = vrot.slane %v5457_v10, 1  ;;  %1717 = vmatpush.bf16.msra.mxu3 %v4858_v22  ;;  %v4842_v63 = vld [vmem:[%s6835_s1 + $0x168] sm:$0xff] }
  0x8d   : > { %1597 = vmatpush.bf16.msrb.mxu1 %v4844_v59  ;;  %1657 = vmatpush.bf16.msrb.mxu2 %v4851_v0  ;;  %v4832_v25 = vld [vmem:[%s6835_s1 + $0x118] sm:$0xff]  ;;  %v631_v23 = vrot.slane %v5473_v24, 1  ;;  %v4857_v10 = vld [vmem:[%s6835_s1 + $0x1e0] sm:$0xff]  ;;  %v4830_v0 = vld [vmem:[%s6835_s1 + $0x108] sm:$0xff] }
  0x8e   : > { %v5673_v17 = vsel %vm498_vm0, %v565_v52, %v569_v12 }
  0x8f   : > { %1541 = vmatpush.bf16.msra.mxu0 %v4833_v1  ;;  %v632_v24 = vsel %vm629_vm1, %v630_v26, %v631_v23  ;;  %v4855_v1 = vld [vmem:[%s6835_s1 + $0x1d0] sm:$0xff]  ;;  %v633_v26 = vrot.slane %v5504_v55, 1  ;;  %v634_v23 = vrot.slane %v5532_v8, 1 }
  0x90   : > { %1718 = vmatpush.bf16.msra.mxu3 %v4857_v10  ;;  %v4845_v10 = vld [vmem:[%s6835_s1 + $0x180] sm:$0xff] }
  0x91   : > { %1598 = vmatpush.bf16.msrb.mxu1 %v4843_v58  ;;  %1658 = vmatpush.bf16.msrb.mxu2 %v4850_v15  ;;  %v4839_v58 = vld [vmem:[%s6835_s1 + $0x150] sm:$0xff]  ;;  %v4846_v15 = vld [vmem:[%s6835_s1 + $0x188] sm:$0xff] }
  0x92   : > { %1325 = vmatmul.bf16.gmra.mxu0 %v5563_v60 }
  0x93   : > { %1453 = vmatmul.bf16.gmra.mxu2 %v5640_v27  ;;  %1542 = vmatpush.bf16.msra.mxu0 %v4832_v25  ;;  %v4854_v25 = vld [vmem:[%s6835_s1 + $0x1c8] sm:$0xff] }
  0x94   : > { %1384 = vmatmul.bf16.gmra.mxu1 %v5643_v28  ;;  %1719 = vmatpush.bf16.msra.mxu3 %v4856_v51 }
  0x95   : > { %1487 = vmatmul.bf16.vlgmr.msrb.gmra.mxu3 %v5504_v55  ;;  %1599 = vmatpush.bf16.msrb.mxu1 %v4842_v63  ;;  %v4853_v55 = vld [vmem:[%s6835_s1 + $0x1c0] sm:$0xff] }
  0x96   : > { %1659 = vmatpush.bf16.msrb.mxu2 %v4849_v32  ;;  %v4838_v32 = vld [vmem:[%s6835_s1 + $0x148] sm:$0xff] }
  0x97   : > { %1543 = vmatpush.bf16.msra.mxu0 %v4831_v46 }
  0x98   : > { %1720 = vmatpush.bf16.msra.mxu3 %v4855_v1  ;;  %v4868_v1 = vld [vmem:[%s6835_s1 + $0x238] sm:$0xff] }
  0x9b   : > { %1544 = vmatpush.bf16.msra.mxu0 %v4830_v0 }
  0x9c   : > { %1721 = vmatpush.bf16.msra.mxu3 %v4854_v25 }
  0xa0   : > { %1722 = vmatpush.bf16.msra.mxu3 %v4853_v55 }
  0xa2   : > { %1330 = vmatmul.bf16.gmra.mxu0 %v5613_v40 }
  0xa3   : > { %1458 = vmatmul.bf16.gmra.mxu2 %v5656_v56 }
  0xa4   : > { %1389 = vmatmul.bf16.gmra.mxu1 %v5659_v57 }
  0xa5   : > { %1492 = vmatmul.bf16.gmra.mxu3 %v5577_v5 }
  0xb2   : > { %1335 = vmatmul.bf16.gmra.mxu0 %v5636_v18 }
  0xb3   : > { %1463 = vmatmul.bf16.gmra.mxu2 %v5670_v16 }
  0xb4   : > { %1394 = vmatmul.bf16.gmra.mxu1 %v5673_v17 }
  0xb5   : > { %1497 = vmatmul.bf16.gmra.mxu3 %v5563_v60 }
  0xc2   : > { %1340 = vmatmul.bf16.gmra.mxu0 %v5652_v48 }
  0xc3   : > { %1468 = vmatmul.bf16.gmra.mxu2 %v5684_v30 }
  0xc4   : > { %1399 = vmatmul.bf16.gmra.mxu1 %v5687_v31 }
  0xc5   : > { %1502 = vmatmul.bf16.gmra.mxu3 %v5613_v40 }
  0xd2   : > { %1345 = vmatmul.bf16.gmra.mxu0 %v5455_v9 }
  0xd3   : > { %1473 = vmatmul.bf16.gmra.mxu2 %v5696_v4 }
  0xd5   : > { %1507 = vmatmul.bf16.gmra.mxu3 %v5636_v18 }
  0xdf   : > { %v1311_v35 = vpop.f32.mrf.mxu0 }
  0xe0   : > { %v1312_v36 = vadd.f32 %v5704_v34, %v1311_v35 }
  0xe1   : > { %v1370_v37 = vpop.f32.mrf.mxu1 }
  0xe2   : > { %v5707_v14 = vadd.f32 %v1370_v37, %v1312_v36  ;;  %1350 = vmatmul.bf16.gmra.mxu0 %v5518_v62  ;;  %v4841_v36 = vld [vmem:[%s6835_s1 + $0x160] sm:$0xff]  ;;  %v4848_v37 = vld [vmem:[%s6835_s1 + $0x198] sm:$0xff] }
  0xe3   : > { %1600 = vmatpush.bf16.msrb.mxu1 %v4841_v36  ;;  %1660 = vmatpush.bf16.msrb.mxu2 %v4848_v37  ;;  %v635_v36 = vsel %vm629_vm1, %v633_v26, %v634_v23  ;;  %v330_v37 = vld [vmem:[#allocation2 + $0xf0] sm:$0xff] }
  0xe5   : > { %1512 = vmatmul.bf16.gmra.mxu3 %v5652_v48 }
  0xe6   : > { %v5714_v38 = vpop.f32.mrf.mxu3 }
  0xe7   : > { %v5716_v39 = vpop.f32.mrf.mxu0  ;;  %1661 = vmatpush.bf16.msrb.mxu2 %v4847_v54  ;;  %v366_v54 = vmax.f32 %v330_v37, 0.0  ;;  %v637_v37 = vrot.slane %v5599_v21, 1 }
  0xe9   : > { %v5718_v42 = vpop.f32.mrf.mxu1  ;;  %v402_v26 = vpack.c.bf16 %v366_v54, %v366_v54 }
  0xeb   : > { %1662 = vmatpush.bf16.msrb.mxu2 %v4846_v15 }
  0xee   : > { %v5723_v45 = vpop.f32.mrf.mxu3 }
  0xef   : > { %v1316_v29 = vpop.f32.mrf.mxu0  ;;  %1663 = vmatpush.bf16.msrb.mxu2 %v4845_v10 }
  0xf0   : > { %v1317_v47 = vadd.f32 %v5704_v34, %v1316_v29 }
  0xf1   : > { %v1375_v53 = vpop.f32.mrf.mxu1 }
  0xf2   : > { %v5735_v41 = vadd.f32 %v1375_v53, %v1317_v47  ;;  %1355 = vmatmul.bf16.gmra.mxu0 %v5579_v6  ;;  %v4840_v53 = vld [vmem:[%s6835_s1 + $0x158] sm:$0xff]  ;;  %1664 = vmatmul.bf16.vlgmr.msrb.gmra.mxu2 %v5577_v5 }
  0xf3   : > { %1601 = vmatpush.bf16.msrb.mxu1 %v4840_v53 }
  0xf5   : > { %1517 = vmatmul.bf16.gmra.mxu3 %v5455_v9 }
  0xf6   : > { %v5755_v12 = vpop.f32.mrf.mxu2 }
  0xf7   : > { %v5753_v52 = vpop.f32.mrf.mxu0  ;;  %1602 = vmatpush.bf16.msrb.mxu1 %v4839_v58 }
  0xf8   : > { %v5748_v2 = vpop.f32.mrf.mxu3 }
  0xf9   : > { %v5763_v19 = vpop.f32.mrf.mxu1 }
  0xfb   : > { %1603 = vmatpush.bf16.msrb.mxu1 %v4838_v32 }
  0xfe   : > { %v5795_v29 = vpop.f32.mrf.mxu2 }
  0xff   : > { %v1321_v35 = vpop.f32.mrf.mxu0 }
 0x100   : > { %v5779_v33 = vpop.f32.mrf.mxu3  ;;  %v1322_v13 = vadd.f32 %v5704_v34, %v1321_v35  ;;  %v4829_v35 = vld [vmem:[%s6835_s1 + $0x100] sm:$0xff] }
 0x101   : > { %v1380_v43 = vpop.f32.mrf.mxu1  ;;  %1545 = vmatpush.bf16.msra.mxu0 %v4829_v35  ;;  %v672_v35 = vunpack.c.l.b16 %v402_v26 }
 0x102   : > { %v5800_v47 = vadd.f32 %v1380_v43, %v1322_v13  ;;  %1428 = vmatmul.bf16.vlgmr.msrb.gmra.mxu0 %v632_v24  ;;  %v331_v13 = vld [vmem:[#allocation2 + $0xf8] sm:$0xff]  ;;  %v4837_v43 = vld [vmem:[%s6835_s1 + $0x140] sm:$0xff]  ;;  %1669 = vmatmul.bf16.gmra.mxu2 %v5563_v60 }
 0x103   : > { %1604 = vmatpush.bf16.msrb.mxu1 %v4837_v43  ;;  %v367_v0 = vmax.f32 %v331_v13, 0.0 }
 0x105   : > { %1522 = vmatmul.bf16.gmra.mxu3 %v5518_v62  ;;  %1774 = vmatpush.bf16.msrb.mxu0 %v4868_v1  ;;  %v403_v23 = vpack.c.bf16 %v367_v0, %v367_v0  ;;  %v4867_v0 = vld [vmem:[%s6835_s1 + $0x230] sm:$0xff] }
 0x106   : > { %v1449_v63 = vpop.f32.mrf.mxu2  ;;  %1605 = vmatmul.bf16.vlgmr.msrb.gmra.mxu1 %v635_v36 }
 0x107   : > { %v5817_v44 = vpop.f32.mrf.mxu0  ;;  %v673_v55 = vunpack.c.l.b16 %v403_v23 }
 0x108   : > { %v5809_v59 = vpop.f32.mrf.mxu3 }
 0x109   : > { %v5825_v22 = vpop.f32.mrf.mxu1  ;;  %1775 = vmatpush.bf16.msrb.mxu0 %v4867_v0 }
 0x10e   : > { %v5861_v25 = vpop.f32.mrf.mxu2 }
 0x10f   : > { %v1326_v8 = vpop.f32.mrf.mxu0 }
 0x110   : > { %v5841_v24 = vpop.f32.mrf.mxu3  ;;  %v1327_v46 = vadd.f32 %v5704_v34, %v1326_v8  ;;  %v636_v8 = vrot.slane %v5577_v5, 1 }
 0x111   : > { %v1385_v51 = vpop.f32.mrf.mxu1 }
 0x112   : > { %v1386_v53 = vadd.f32 %v1385_v51, %v1327_v46  ;;  %1433 = vmatmul.bf16.gmra.mxu0 %v635_v36  ;;  %v5870_v36 = vsel %vm629_vm1, %v636_v8, %v637_v37  ;;  %1674 = vmatmul.bf16.gmra.mxu2 %v5613_v40 }
 0x113   : > { %6845 = vst [vmem:[#allocation11_spill] sm:$0xff] %v5870_v36 }
 0x114   : > { %v5857_v58 = vadd.f32 %v5755_v12, %v1386_v53  ;;  %v5867_v12 = vpack.c.b16 %v673_v55, %v672_v35 }
 0x115   : > { %1527 = vmatmul.bf16.gmra.mxu3 %v5579_v6 }
 0x116   : > { %v1454_v46 = vpop.f32.mrf.mxu2  ;;  %1610 = vmatmul.bf16.gmra.mxu1 %v5870_v36 }
 0x117   : > { %v1328_v32 = vpop.f32.mrf.mxu0 }
 0x118   : > { %v5859_v15 = vpop.f32.mrf.mxu3 }
 0x119   : > { %v1387_v10 = vpop.f32.mrf.mxu1 }
 0x11e   : > { %v5882_v23 = vpop.f32.mrf.mxu2 }
 0x11f   : > { %v1331_v43 = vpop.f32.mrf.mxu0 }
 0x120   : > { %v5865_v13 = vpop.f32.mrf.mxu3  ;;  %v1332_v51 = vadd.f32 %v5704_v34, %v1331_v43 }
 0x121   : > { %v1390_v53 = vpop.f32.mrf.mxu1 }
 0x122   : > { %v1391_v54 = vadd.f32 %v1390_v53, %v1332_v51  ;;  %1438 = vmatmul.bf16.gmra.mxu0 %v5870_v36  ;;  %1679 = vmatmul.bf16.gmra.mxu2 %v5636_v18 }
 0x124   : > { %v1450_v5 = vadd.f32 %v1449_v63, %v1391_v54 }
 0x125   : > { %1532 = vmatmul.bf16.gmra.mxu3 %v5867_v12 }
 0x126   : > { %v1459_v37 = vpop.f32.mrf.mxu2  ;;  %1615 = vmatmul.bf16.gmra.mxu1 %v5585_v11 }
 0x127   : > { %v1333_v1 = vpop.f32.mrf.mxu0 }
 0x128   : > { %v5877_v21 = vpop.f32.mrf.mxu3 }
 0x129   : > { %v1392_v26 = vpop.f32.mrf.mxu1 }
 0x12f   : > { %v1336_v35 = vpop.f32.mrf.mxu0 }
 0x130   : > { %v5884_v60 = vpop.f32.mrf.mxu3  ;;  %v1337_v55 = vadd.f32 %v5704_v34, %v1336_v35  ;;  %v4866_v35 = vld [vmem:[%s6835_s1 + $0x228] sm:$0xff] }
 0x131   : > { %v1395_v8 = vpop.f32.mrf.mxu1  ;;  %1776 = vmatpush.bf16.msrb.mxu0 %v4866_v35 }
 0x132   : > { %v1396_v63 = vadd.f32 %v1395_v8, %v1337_v55  ;;  %1546 = vmatmul.bf16.vlgmr.msra.gmra.mxu0 %v5582_v7  ;;  %v5899_v7 = vpop.f32.mrf.mxu2  ;;  %1684 = vmatmul.bf16.gmra.mxu2 %v5652_v48 }
 0x134   : > { %v1455_v43 = vadd.f32 %v1454_v46, %v1396_v63 }
 0x135   : > { %1723 = vmatmul.bf16.vlgmr.msra.gmra.mxu3 %v5627_v50 }
 0x136   : > { %1620 = vmatmul.bf16.gmra.mxu1 %v5621_v20 }
 0x137   : > { %v1338_v53 = vpop.f32.mrf.mxu0 }
 0x138   : > { %v5891_v51 = vpop.f32.mrf.mxu3  ;;  %v1339_v54 = vadd.f32 %v5704_v34, %v1338_v53  ;;  %v1329_v53 = vadd.f32 %v5704_v34, %v1328_v32 }
 0x139   : > { %6846 = vst [vmem:[#allocation12_spill] sm:$0xff] %v5891_v51  ;;  %v1397_v0 = vpop.f32.mrf.mxu1 }
 0x13a   : > { %v1398_v40 = vadd.f32 %v1397_v0, %v1339_v54 }
 0x13f   : > { %v1341_v8 = vpop.f32.mrf.mxu0 }
 0x140   : > { %v5897_v55 = vpop.f32.mrf.mxu3  ;;  %v1342_v46 = vadd.f32 %v5704_v34, %v1341_v8  ;;  %v1388_v8 = vadd.f32 %v1387_v10, %v1329_v53  ;;  %v1334_v10 = vadd.f32 %v5704_v34, %v1333_v1  ;;  %v4864_v1 = vld [vmem:[%s6835_s1 + $0x218] sm:$0xff] }
 0x141   : > { %6847 = vst [vmem:[#allocation13_spill] sm:$0xff] %v5897_v55  ;;  %v1400_v63 = vpop.f32.mrf.mxu1  ;;  %v1464_v55 = vpop.f32.mrf.mxu2 }
 0x142   : > { %v1401_v11 = vadd.f32 %v1400_v63, %v1342_v46  ;;  %1551 = vmatmul.bf16.gmra.mxu0 %v5627_v50  ;;  %v1447_v51 = vadd.f32 %v5795_v29, %v1388_v8  ;;  %v4865_v50 = vld [vmem:[%s6835_s1 + $0x220] sm:$0xff]  ;;  %1689 = vmatmul.bf16.gmra.mxu2 %v5455_v9 }
 0x143   : > { %1777 = vmatpush.bf16.msrb.mxu0 %v4865_v50 }
 0x144   : > { %v1460_v36 = vadd.f32 %v1459_v37, %v1401_v11 }
 0x145   : > { %1728 = vmatmul.bf16.gmra.mxu3 %v5643_v28 }
 0x146   : > { %1625 = vmatmul.bf16.gmra.mxu1 %v5640_v27 }
 0x147   : > { %v1343_v35 = vpop.f32.mrf.mxu0  ;;  %1778 = vmatpush.bf16.msrb.mxu0 %v4864_v1 }
 0x148   : > { %v1503_v54 = vpop.f32.mrf.mxu3 }
 0x149   : > { %v5908_v0 = vadd.f32 %v1503_v54, %v5857_v58  ;;  %v5918_v58 = vpop.f32.mrf.mxu2  ;;  %v1393_v54 = vadd.f32 %v1392_v26, %v1334_v10 }
 0x14b   : > { %v1452_v8 = vadd.f32 %v5861_v25, %v1393_v54 }
 0x14f   : > { %v1346_v32 = vpop.f32.mrf.mxu0 }
 0x150   : > { %v1505_v18 = vpop.f32.mrf.mxu3  ;;  %v1347_v11 = vadd.f32 %v5704_v34, %v1346_v32 }
 0x151   : > { %v5911_v46 = vadd.f32 %v1505_v18, %v1447_v51  ;;  %v1469_v48 = vpop.f32.mrf.mxu2 }
 0x152   : > { %1556 = vmatmul.bf16.gmra.mxu0 %v5643_v28  ;;  %v1406_v29 = vadd.f32 %v5714_v38, %v1347_v11  ;;  %1694 = vmatmul.bf16.gmra.mxu2 %v5518_v62  ;;  %v4863_v62 = vld [vmem:[%s6835_s1 + $0x210] sm:$0xff] }
 0x153   : > { %1779 = vmatpush.bf16.msrb.mxu0 %v4863_v62 }
 0x154   : > { %v5924_v37 = vadd.f32 %v1464_v55, %v1406_v29 }
 0x155   : > { %1733 = vmatmul.bf16.gmra.mxu3 %v5659_v57 }
 0x156   : > { %1630 = vmatmul.bf16.gmra.mxu1 %v5656_v56 }
 0x157   : > { %v1348_v53 = vpop.f32.mrf.mxu0 }
 0x158   : > { %v1508_v51 = vpop.f32.mrf.mxu3 }
 0x159   : > { %v5927_v63 = vadd.f32 %v1508_v51, %v1450_v5  ;;  %v1471_v55 = vpop.f32.mrf.mxu2 }
 0x15f   : > { %v1351_v50 = vpop.f32.mrf.mxu0 }
 0x160   : > { %v1510_v18 = vpop.f32.mrf.mxu3  ;;  %v1352_v38 = vadd.f32 %v5704_v34, %v1351_v50 }
 0x161   : > { %v5930_v28 = vadd.f32 %v1510_v18, %v1452_v8 }
 0x162   : > { %1561 = vmatmul.bf16.gmra.mxu0 %v5659_v57  ;;  %v1411_v5 = vadd.f32 %v5748_v2, %v1352_v38  ;;  %v1457_v2 = vadd.f32 %v5882_v23, %v1398_v40  ;;  %v1402_v40 = vpop.f32.mrf.mxu1  ;;  %1699 = vmatmul.bf16.gmra.mxu2 %v5579_v6 }
 0x164   : > { %v5940_v26 = vadd.f32 %v1469_v48, %v1411_v5  ;;  %v1474_v48 = vpop.f32.mrf.mxu2 }
 0x165   : > { %1738 = vmatmul.bf16.gmra.mxu3 %v5673_v17 }
 0x166   : > { %1635 = vmatmul.bf16.gmra.mxu1 %v5670_v16 }
 0x167   : > { %v1353_v9 = vpop.f32.mrf.mxu0 }
 0x168   : > { %v1513_v25 = vpop.f32.mrf.mxu3  ;;  %v1354_v57 = vadd.f32 %v5704_v34, %v1353_v9 }
 0x169   : > { %v5943_v32 = vadd.f32 %v1513_v25, %v1455_v43 }
 0x16a   : > { %v1413_v11 = vadd.f32 %v5779_v33, %v1354_v57  ;;  %v1344_v33 = vadd.f32 %v5704_v34, %v1343_v35 }
 0x16c   : > { %v5948_v29 = vadd.f32 %v1471_v55, %v1413_v11  ;;  %v1314_v11 = vadd.f32 %v5704_v34, %v5716_v39 }
 0x16f   : > { %v1356_v54 = vpop.f32.mrf.mxu0 }
 0x170   : > { %v1515_v10 = vpop.f32.mrf.mxu3  ;;  %v1357_v8 = vadd.f32 %v5704_v34, %v1356_v54 }
 0x171   : > { %v5950_v51 = vadd.f32 %v1515_v10, %v1457_v2  ;;  %v1373_v2 = vadd.f32 %v5718_v42, %v1314_v11 }
 0x172   : > { %1566 = vmatmul.bf16.gmra.mxu0 %v5673_v17  ;;  %v1416_v43 = vadd.f32 %v5809_v59, %v1357_v8  ;;  %v1403_v17 = vadd.f32 %v1402_v40, %v1344_v33  ;;  %v1476_v59 = vpop.f32.mrf.mxu2  ;;  %1704 = vmatmul.bf16.gmra.mxu2 %v5867_v12  ;;  %v334_v33 = vld [vmem:[#allocation2 + $0x110] sm:$0xff] }
 0x174   : > { %v5958_v23 = vadd.f32 %v1474_v48, %v1416_v43  ;;  %v1462_v1 = vadd.f32 %v5899_v7, %v1403_v17  ;;  %v333_v43 = vld [vmem:[#allocation2 + $0x108] sm:$0xff] }
 0x175   : > { %1743 = vmatmul.bf16.gmra.mxu3 %v5687_v31  ;;  %v369_v40 = vmax.f32 %v333_v43, 0.0 }
 0x176   : > { %1640 = vmatmul.bf16.gmra.mxu1 %v5684_v30 }
 0x177   : > { %v1358_v38 = vpop.f32.mrf.mxu0  ;;  %v405_v17 = vpack.c.bf16 %v369_v40, %v369_v40 }
 0x178   : > { %v1518_v18 = vpop.f32.mrf.mxu3  ;;  %v1359_v5 = vadd.f32 %v5704_v34, %v1358_v38 }
 0x179   : > { %v5961_v50 = vadd.f32 %v1518_v18, %v1460_v36  ;;  %v370_v18 = vmax.f32 %v334_v33, 0.0 }
 0x17a   : > { %v1418_v35 = vadd.f32 %v5841_v24, %v1359_v5  ;;  %v1349_v24 = vadd.f32 %v5704_v34, %v1348_v53 }
 0x17b   : > { %v406_v5 = vpack.c.bf16 %v370_v18, %v370_v18 }
 0x17c   : > { %v5969_v25 = vadd.f32 %v1476_v59, %v1418_v35  ;;  %v1408_v6 = vadd.f32 %v5723_v45, %v1349_v24  ;;  %v1319_v45 = vadd.f32 %v5704_v34, %v5753_v52  ;;  %v698_v35 = vunpack.c.l.b16 %v405_v17  ;;  %v4861_v24 = vld [vmem:[%s6835_s1 + $0x200] sm:$0xff] }
 0x17e   : > { %v1467_v39 = vadd.f32 %v5918_v58, %v1408_v6 }
 0x17f   : > { %v1429_v36 = vpop.f32.mrf.mxu0 }
 0x180   : > { %v1520_v55 = vpop.f32.mrf.mxu3  ;;  %v5974_v57 = vadd.f32 %v1429_v36, %v5707_v14 }
 0x181   : > { %v5971_v9 = vadd.f32 %v1520_v55, %v1462_v1  ;;  %v699_v1 = vunpack.c.l.b16 %v406_v5 }
 0x182   : > { %1571 = vmatmul.bf16.gmra.mxu0 %v5687_v31  ;;  %v4862_v31 = vld [vmem:[%s6835_s1 + $0x208] sm:$0xff] }
 0x183   : > { %1780 = vmatpush.bf16.msrb.mxu0 %v4862_v31  ;;  %v682_v31 = vshll.u32 %v5867_v12, 16 }
 0x185   : > { %1748 = vmatmul.bf16.gmra.mxu3 %v5516_v61 }
 0x186   : > { %1645 = vmatmul.bf16.gmra.mxu1 %v5696_v4 }
 0x187   : > { %v1431_v14 = vpop.f32.mrf.mxu0  ;;  %1781 = vmatpush.bf16.msrb.mxu0 %v4861_v24 }
 0x188   : > { %v1523_v7 = vpop.f32.mrf.mxu3  ;;  %v5988_v54 = vadd.f32 %v1431_v14, %v1373_v2  ;;  %v692_v14 = vrot.slane %v5867_v12, 1 }
 0x189   : > { %v5985_v10 = vadd.f32 %v1523_v7, %v5924_v37  ;;  %v332_v37 = vld [vmem:[#allocation2 + $0x100] sm:$0x3] }
 0x18a   : > { %v368_v58 = vmax.f32 %v332_v37, 0.0 }
 0x18c   : > { %v404_v59 = vpack.c.bf16 %v368_v58, %v368_v58 }
 0x18e   : > { %v677_v55 = vunpack.c.l.b16 %v404_v59 }
 0x18f   : > { %v1434_v8 = vpop.f32.mrf.mxu0 }
 0x190   : > { %v1525_v53 = vpop.f32.mrf.mxu3  ;;  %v5997_v42 = vadd.f32 %v1434_v8, %v5735_v41  ;;  %v1378_v41 = vadd.f32 %v5763_v19, %v1319_v45  ;;  %v6015_v19 = vpack.c.b16 %v699_v1, %v698_v35  ;;  %v678_v7 = vpack.c.b16 %v677_v55, %v677_v55 }
 0x191   : > { %v5994_v48 = vadd.f32 %v1525_v53, %v1467_v39  ;;  %v335_v53 = vld [vmem:[#allocation2 + $0x118] sm:$0x3] }
 0x192   : > { %1576 = vmatmul.bf16.gmra.mxu0 %v5516_v61  ;;  %1709 = vmatmul.bf16.gmra.mxu2 %v6015_v19  ;;  %v693_v6 = vrot.slane %v678_v7, 1  ;;  %v371_v43 = vmax.f32 %v335_v53, 0.0  ;;  %v708_v59 = vshll.u32 %v6015_v19, 16  ;;  %v706_v1 = vshrl.u32 %v6015_v19, 16 }
 0x194   : > { %v6026_v39 = vsel %vm629_vm1, %v692_v14, %v693_v6  ;;  %v407_v18 = vpack.c.bf16 %v371_v43, %v371_v43 }
 0x195   : > { %1753 = vmatmul.bf16.gmra.mxu3 %v5575_v3 }
 0x196   : > { %1650 = vmatmul.bf16.gmra.mxu1 %v6026_v39  ;;  %v703_v5 = vunpack.c.l.b16 %v407_v18 }
 0x197   : > { %v1436_v52 = vpop.f32.mrf.mxu0 }
 0x198   : > { %v1528_v62 = vpop.f32.mrf.mxu3  ;;  %v1437_v61 = vadd.f32 %v1436_v52, %v1378_v41 }
 0x199   : > { %v6007_v38 = vadd.f32 %v1528_v62, %v5940_v26 }
 0x19f   : > { %v1439_v26 = vpop.f32.mrf.mxu0 }
 0x1a0   : > { %v1530_v36 = vpop.f32.mrf.mxu3  ;;  %v1440_v2 = vadd.f32 %v1439_v26, %v5800_v47 }
 0x1a1   : > { %v6010_v11 = vadd.f32 %v1530_v36, %v5948_v29  ;;  %v1324_v29 = vadd.f32 %v5704_v34, %v5817_v44  ;;  %v680_v34 = vshrl.u32 %v5867_v12, 16  ;;  %v687_v44 = vshll.u32 %v678_v7, 16 }
 0x1a2   : > { %1581 = vmatmul.bf16.gmra.mxu0 %v5575_v3  ;;  %v684_v3 = vrot.slane %v682_v31, 1  ;;  %v6043_v12 = vpack.c.b16 %v703_v5, %v703_v5 }
 0x1a3   : > { %v1383_v8 = vadd.f32 %v5825_v22, %v1324_v29  ;;  %v689_v40 = vrot.slane %v687_v44, 1  ;;  %v1489_v22 = vadd.f32 %v5859_v15, %v5974_v57  ;;  %v710_v15 = vrot.slane %v708_v59, 1  ;;  %v6848_v29 = vld [vmem:[#allocation12_spill] sm:$0xff] }
 0x1a4   : > { %v685_v58 = vor.u32 %v684_v3, %v680_v34  ;;  %v713_v57 = vshll.u32 %v6043_v12, 16  ;;  %v1499_v31 = vadd.f32 %v6848_v29, %v1440_v2  ;;  %v1859_v29 = vld [vmem:[#allocation3 + $0xc] sm:$0x1] }
 0x1a5   : > { %1758 = vmatmul.bf16.gmra.mxu3 %v5624_v49  ;;  %v711_v36 = vor.u32 %v710_v15, %v706_v1 }
 0x1a6   : > { %v715_v24 = vrot.slane %v713_v57, 1 }
 0x1a7   : > { %v1441_v45 = vpop.f32.mrf.mxu0 }
 0x1a8   : > { %v1533_v47 = vpop.f32.mrf.mxu3  ;;  %v1442_v33 = vadd.f32 %v1441_v45, %v1383_v8  ;;  %v716_v7 = vsel %vm498_vm0, %v711_v36, %v715_v24  ;;  %v6849_v8 = vld [vmem:[#allocation11_spill] sm:$0xff] }
 0x1a9   : > { %v6031_v37 = vadd.f32 %v1533_v47, %v5958_v23  ;;  %v690_v23 = vsel %vm498_vm0, %v685_v58, %v689_v40 }
 0x1af   : > { %v1547_v17 = vpop.f32.mrf.mxu0 }
 0x1b0   : > { %v1535_v62 = vpop.f32.mrf.mxu3  ;;  %v6040_v52 = vadd.f32 %v1547_v17, %v1489_v22  ;;  %v1606_v17 = vpop.f32.mrf.mxu1 }
 0x1b1   : > { %v6035_v41 = vadd.f32 %v1535_v62, %v5969_v25  ;;  %v1491_v25 = vadd.f32 %v5865_v13, %v5988_v54  ;;  %v1496_v13 = vadd.f32 %v5884_v60, %v1437_v61  ;;  %v6851_v60 = vld [vmem:[#allocation10_spill] sm:$0xff] }
 0x1b2   : > { %1586 = vmatmul.bf16.gmra.mxu0 %v5624_v49  ;;  %v1494_v49 = vadd.f32 %v5877_v21, %v5997_v42  ;;  %v6850_v21 = vld [vmem:[#allocation13_spill] sm:$0xff] }
 0x1b3   : > { %v1501_v42 = vadd.f32 %v6850_v21, %v1442_v33 }
 0x1b5   : > { %1763 = vmatmul.bf16.gmra.mxu3 %v690_v23 }
 0x1b7   : > { %v1549_v35 = vpop.f32.mrf.mxu0 }
 0x1b8   : > { %v6050_v55 = vadd.f32 %v1549_v35, %v1491_v25 }
 0x1bf   : > { %v1552_v26 = vpop.f32.mrf.mxu0 }
 0x1c0   : > { %v6055_v14 = vadd.f32 %v1552_v26, %v1494_v49  ;;  %v1888_v49 = vld [vmem:[#allocation3 + $0x8] sm:$0x1] }
 0x1c1   : > { %v1889_v26 = vsel %vm6117_vm6, 0, %v1888_v49 }
 0x1c2   : > { %1591 = vmatmul.bf16.gmra.mxu0 %v690_v23  ;;  %1890 = vst [vmem:[#allocation3 + $0x8] sm:$0x1] %v1889_v26 }
 0x1c5   : > { %1768 = vmatmul.bf16.gmra.mxu3 %v716_v7 }
 0x1c7   : > { %v1554_v54 = vpop.f32.mrf.mxu0 }
 0x1c8   : > { %v6058_v6 = vadd.f32 %v1554_v54, %v1496_v13 }
 0x1cf   : > { %v1557_v53 = vpop.f32.mrf.mxu0 }
 0x1d0   : > { %v6061_v47 = vadd.f32 %v1557_v53, %v1499_v31  ;;  %v1860_v53 = vsel %vm6107_vm4, 0, %v1859_v29 }
 0x1d1   : > { %1861 = vst [vmem:[#allocation3 + $0xc] sm:$0x1] %v1860_v53 }
 0x1d2   : > { %1782 = vmatmul.bf16.vlgmr.msrb.gmra.mxu0 %v6849_v8  ;;  %v1607_v8 = vadd.f32 %v1606_v17, %v6040_v52 }
 0x1d7   : > { %v1559_v45 = vpop.f32.mrf.mxu0 }
 0x1d8   : > { %v6065_v34 = vadd.f32 %v1559_v45, %v1501_v42 }
 0x1df   : > { %v1562_v3 = vpop.f32.mrf.mxu0 }
 0x1e0   : > { %v6068_v44 = vadd.f32 %v1562_v3, %v5908_v0  ;;  %v1891_v3 = vld [vmem:[#allocation3 + $0x14] sm:$0x1] }
 0x1e2   : > { %1787 = vmatmul.bf16.gmra.mxu0 %v6851_v60 }
 0x1e7   : > { %v1564_v61 = vpop.f32.mrf.mxu0 }
 0x1e8   : > { %v6072_v43 = vadd.f32 %v1564_v61, %v5911_v46 }
 0x1ef   : > { %v1567_v2 = vpop.f32.mrf.mxu0 }
 0x1f0   : > { %v6075_v58 = vadd.f32 %v1567_v2, %v5927_v63 }
 0x1f2   : > { %1792 = vmatmul.bf16.gmra.mxu0 %v5621_v20 }
 0x1f7   : > { %v1569_v33 = vpop.f32.mrf.mxu0 }
 0x1f8   : > { %v6079_v40 = vadd.f32 %v1569_v33, %v5930_v28 }
 0x1ff   : > { %v1572_v18 = vpop.f32.mrf.mxu0 }
 0x200   : > { %v6082_v0 = vadd.f32 %v1572_v18, %v5943_v32  ;;  %v1665_v32 = vpop.f32.mrf.mxu2 }
 0x202   : > { %1797 = vmatmul.bf16.gmra.mxu0 %v5640_v27  ;;  %v1724_v27 = vpop.f32.mrf.mxu3 }
 0x207   : > { %v1574_v62 = vpop.f32.mrf.mxu0 }
 0x208   : > { %v6086_v46 = vadd.f32 %v1574_v62, %v5950_v51  ;;  %v1608_v51 = vpop.f32.mrf.mxu1  ;;  %v1667_v25 = vpop.f32.mrf.mxu2 }
 0x209   : > { %v1609_v2 = vadd.f32 %v1608_v51, %v6050_v55 }
 0x20b   : > { %v1668_v62 = vadd.f32 %v1667_v25, %v1609_v2 }
 0x20f   : > { %v1577_v22 = vpop.f32.mrf.mxu0 }
 0x210   : > { %v6089_v63 = vadd.f32 %v1577_v22, %v5961_v50  ;;  %v1611_v1 = vpop.f32.mrf.mxu1  ;;  %v1670_v15 = vpop.f32.mrf.mxu2 }
 0x212   : > { %1802 = vmatmul.bf16.gmra.mxu0 %v5656_v56  ;;  %v1726_v56 = vpop.f32.mrf.mxu3 }
 0x217   : > { %v1579_v20 = vpop.f32.mrf.mxu0 }
 0x218   : > { %v6093_v28 = vadd.f32 %v1579_v20, %v5971_v9  ;;  %v1613_v24 = vpop.f32.mrf.mxu1  ;;  %v6123_v7 = vpop.f32.mrf.mxu2  ;;  %v1862_v20 = vld [vmem:[#allocation3 + $0x18] sm:$0x1] }
 0x21f   : > { %v1582_v23 = vpop.f32.mrf.mxu0 }
 0x220   : > { %v6096_v5 = vadd.f32 %v1582_v23, %v5985_v10  ;;  %v1856_v10 = vld [vmem:[#allocation3] sm:$0x1]  ;;  %v6131_v31 = vpop.f32.mrf.mxu1  ;;  %v6136_v42 = vpop.f32.mrf.mxu2  ;;  %v1863_v23 = vsel %vm6107_vm4, 0, %v1862_v20 }
 0x221   : > { %1864 = vst [vmem:[#allocation3 + $0x18] sm:$0x1] %v1863_v23  ;;  %v1865_v23 = vld [vmem:[#allocation3 + $0x24] sm:$0x1] }
 0x222   : > { %1807 = vmatmul.bf16.gmra.mxu0 %v5670_v16 }
 0x227   : > { %v1584_v59 = vpop.f32.mrf.mxu0 }
 0x228   : > { %v6100_v50 = vadd.f32 %v1584_v59, %v5994_v48  ;;  %v1857_v48 = vsel %vm6107_vm4, 0, %v1856_v10  ;;  %v6146_v33 = vpop.f32.mrf.mxu1  ;;  %v6148_v22 = vpop.f32.mrf.mxu2 }
 0x229   : > { %1858 = vst [vmem:[#allocation3] sm:$0x1] %v1857_v48 }
 0x22f   : > { %v1587_v35 = vpop.f32.mrf.mxu0 }
 0x230   : > { %v6103_v9 = vadd.f32 %v1587_v35, %v6007_v38  ;;  %v6156_v25 = vpop.f32.mrf.mxu1  ;;  %v6165_v29 = vpop.f32.mrf.mxu2 }
 0x232   : > { %1812 = vmatmul.bf16.gmra.mxu0 %v5684_v30  ;;  %v1729_v30 = vpop.f32.mrf.mxu3 }
 0x237   : > { %v1589_v57 = vpop.f32.mrf.mxu0 }
 0x238   : > { %v6114_v38 = vadd.f32 %v1589_v57, %v6010_v11  ;;  %v2142_v57 = vld [vmem:[#allocation3] sm:$0xf] }
 0x23a   : > { %v6129_v11 = vpop.f32.mrf.mxu3 }
 0x23f   : > { %v1592_v13 = vpop.f32.mrf.mxu0 }
 0x240   : > { %v6126_v54 = vadd.f32 %v1592_v13, %v6031_v37  ;;  %v1666_v37 = vadd.f32 %v1665_v32, %v1607_v8  ;;  %v1727_v32 = vadd.f32 %v1726_v56, %v1668_v62  ;;  %v1894_v13 = vld [vmem:[#allocation3 + $0x20] sm:$0x1] }
 0x242   : > { %1817 = vmatmul.bf16.gmra.mxu0 %v5696_v4  ;;  %v1892_v4 = vsel %vm6117_vm6, 0, %v1891_v3  ;;  %v6143_v60 = vpop.f32.mrf.mxu3  ;;  %v1725_v61 = vadd.f32 %v1724_v27, %v1666_v37  ;;  %v1612_v27 = vadd.f32 %v1611_v1, %v6055_v14  ;;  %v718_v14 = vrot.slane %v6015_v19, 1 }
 0x243   : > { %1893 = vst [vmem:[#allocation3 + $0x14] sm:$0x1] %v1892_v4  ;;  %v719_v1 = vrot.slane %v6043_v12, 1  ;;  %v1614_v37 = vadd.f32 %v1613_v24, %v6058_v6  ;;  %v2146_v6 = vld [vmem:[#allocation3 + $0x8] sm:$0x1] }
 0x244   : > { %v1671_v49 = vadd.f32 %v1670_v15, %v1612_v27 }
 0x245   : > { %v720_v12 = vsel %vm629_vm1, %v718_v14, %v719_v1  ;;  %v2149_v14 = vld [vmem:[#allocation3 + $0xc] sm:$0xf] }
 0x246   : > { %v1730_v15 = vadd.f32 %v1729_v30, %v1671_v49  ;;  %v6181_v30 = vpop.f32.mrf.mxu1 }
 0x247   : > { %v1594_v21 = vpop.f32.mrf.mxu0 }
 0x248   : > { %v6139_v45 = vadd.f32 %v1594_v21, %v6035_v41  ;;  %v1895_v21 = vsel %vm6117_vm6, 0, %v1894_v13 }
 0x249   : > { %1896 = vst [vmem:[#allocation3 + $0x20] sm:$0x1] %v1895_v21 }
 0x24a   : > { %v6154_v51 = vpop.f32.mrf.mxu3 }
 0x24e   : > { %v6197_v21 = vpop.f32.mrf.mxu1 }
 0x24f   : > { %v1783_v52 = vpop.f32.mrf.mxu0 }
 0x250   : > { %v1784_v18 = vadd.f32 %v1783_v52, %v1725_v61  ;;  %v1673_v52 = vadd.f32 %v6123_v7, %v1614_v37 }
 0x252   : > { %v1833_v41 = vmax.f32 %v1784_v18, 0.0  ;;  %1822 = vmatmul.bf16.gmra.mxu0 %v6026_v39  ;;  %v6174_v18 = vpop.f32.mrf.mxu3 }
 0x254   : > { %v1918_v17 = vpack.c.bf16 %v1833_v41, %v1833_v41 }
 0x256   : > { %v1941_v55 = vshrl.u32 %v1918_v17, 16  ;;  %v1944_v10 = vshll.u32 %v1918_v17, 16 }
 0x257   : > { %v1785_v59 = vpop.f32.mrf.mxu0 }
 0x258   : > { %v1943_v35 = vrot.slane %v1941_v55, 7  ;;  %v1786_v48 = vadd.f32 %v1785_v59, %v1727_v32  ;;  %v1866_v55 = vsel %vm6107_vm4, 0, %v1865_v23  ;;  %v1732_v59 = vadd.f32 %v6129_v11, %v1673_v52  ;;  %v1897_v11 = vld [vmem:[#allocation3 + $0x2c] sm:$0x1]  ;;  %v1868_v23 = vld [vmem:[#allocation3 + $0x30] sm:$0x1] }
 0x259   : > { %1867 = vst [vmem:[#allocation3 + $0x24] sm:$0x1] %v1866_v55  ;;  %v1898_v37 = vsel %vm6117_vm6, 0, %v1897_v11  ;;  %v1628_v55 = vpop.f32.mrf.mxu1 }
 0x25a   : > { %v1946_v56 = vor.u32 %v1944_v10, %v1943_v35  ;;  %v1834_v26 = vmax.f32 %v1786_v48, 0.0  ;;  %v1947_v24 = vrot.slane %v1943_v35, 4  ;;  %v1617_v35 = vadd.f32 %v6131_v31, %v6061_v47  ;;  %v6192_v10 = vpop.f32.mrf.mxu2  ;;  %1899 = vst [vmem:[#allocation3 + $0x2c] sm:$0x1] %v1898_v37 }
 0x25c   : > { %v2143_v53 = vsel %vm6159_vm8, %v1946_v56, %v2142_v57  ;;  %v1919_v8 = vpack.c.bf16 %v1834_v26, %v1834_v26  ;;  %v1676_v1 = vadd.f32 %v6136_v42, %v1617_v35 }
 0x25d   : > { %2144 = vst [vmem:[#allocation3] sm:$0xf] %v2143_v53 }
 0x25e   : > { %v1949_v3 = vshrl.u32 %v1919_v8, 16  ;;  %v1952_v61 = vshll.u32 %v1919_v8, 16  ;;  %v6195_v8 = vpop.f32.mrf.mxu3  ;;  %v1735_v42 = vadd.f32 %v6143_v60, %v1676_v1 }
 0x25f   : > { %v1788_v19 = vpop.f32.mrf.mxu0 }
 0x260   : > { %v1951_v4 = vrot.slane %v1949_v3, 7  ;;  %v1789_v2 = vadd.f32 %v1788_v19, %v1730_v15  ;;  %v1619_v15 = vadd.f32 %v6146_v33, %v6065_v34 }
 0x262   : > { %v1954_v41 = vor.u32 %v1952_v61, %v1951_v4  ;;  %v1956_v20 = vrot.slane %v1951_v4, 4  ;;  %v1835_v17 = vmax.f32 %v1789_v2, 0.0  ;;  %1827 = vmatmul.bf16.gmra.mxu0 %v720_v12  ;;  %v6206_v12 = vpop.f32.mrf.mxu2  ;;  %v1678_v52 = vadd.f32 %v6148_v22, %v1619_v15  ;;  %v1631_v15 = vpop.f32.mrf.mxu1 }
 0x264   : > { %v1955_v32 = vsel %vm6177_vm10, %v1947_v24, %v1954_v41  ;;  %v2147_v7 = vsel %vm6107_vm4, %v1956_v20, %v2146_v6  ;;  %v1920_v27 = vpack.c.bf16 %v1835_v17, %v1835_v17  ;;  %v2153_v6 = vld [vmem:[#allocation3 + $0x14] sm:$0x1]  ;;  %v1737_v22 = vadd.f32 %v6154_v51, %v1678_v52 }
 0x265   : > { %2145 = vst [vmem:[#allocation3 + $0x4] sm:$0xf] %v1955_v32  ;;  %v1869_v32 = vsel %vm6107_vm4, 0, %v1868_v23  ;;  %v1627_v23 = vadd.f32 %v6197_v21, %v6075_v58  ;;  %v1629_v21 = vadd.f32 %v1628_v55, %v6079_v40 }
 0x266   : > { %2148 = vst [vmem:[#allocation3 + $0x8] sm:$0x1] %v2147_v7  ;;  %v1958_v48 = vshrl.u32 %v1920_v27, 16  ;;  %v1961_v56 = vshll.u32 %v1920_v27, 16  ;;  %v6215_v7 = vpop.f32.mrf.mxu3  ;;  %v1622_v27 = vadd.f32 %v6156_v25, %v6068_v44  ;;  %v1624_v25 = vadd.f32 %v6181_v30, %v6072_v43 }
 0x267   : > { %v1790_v57 = vpop.f32.mrf.mxu0  ;;  %1870 = vst [vmem:[#allocation3 + $0x30] sm:$0x1] %v1869_v32 }
 0x268   : > { %v1960_v49 = vrot.slane %v1958_v48, 7  ;;  %v1791_v26 = vadd.f32 %v1790_v57, %v1732_v59 }
 0x26a   : > { %v1963_v13 = vor.u32 %v1961_v56, %v1960_v49  ;;  %v1836_v53 = vmax.f32 %v1791_v26, 0.0  ;;  %v1964_v24 = vrot.slane %v1960_v49, 4  ;;  %v2156_v56 = vld [vmem:[#allocation3 + $0x18] sm:$0xf]  ;;  %v1681_v26 = vadd.f32 %v6165_v29, %v1622_v27 }
 0x26c   : > { %v2150_v47 = vsel %vm6159_vm8, %v1963_v13, %v2149_v14  ;;  %v1921_v31 = vpack.c.bf16 %v1836_v53, %v1836_v53  ;;  %v1687_v14 = vpop.f32.mrf.mxu2  ;;  %v1900_v53 = vld [vmem:[#allocation3 + $0x38] sm:$0x1] }
 0x26d   : > { %2151 = vst [vmem:[#allocation3 + $0xc] sm:$0xf] %v2150_v47  ;;  %v1901_v44 = vsel %vm6117_vm6, 0, %v1900_v53  ;;  %v1740_v47 = vadd.f32 %v6174_v18, %v1681_v26 }
 0x26e   : > { %v1966_v3 = vshrl.u32 %v1921_v31, 16  ;;  %v1969_v61 = vshll.u32 %v1921_v31, 16  ;;  %1902 = vst [vmem:[#allocation3 + $0x38] sm:$0x1] %v1901_v44  ;;  %v1746_v29 = vpop.f32.mrf.mxu3 }
 0x26f   : > { %v1793_v19 = vpop.f32.mrf.mxu0 }
 0x270   : > { %v1968_v4 = vrot.slane %v1966_v3, 7  ;;  %v1794_v2 = vadd.f32 %v1793_v19, %v1735_v42 }
 0x272   : > { %v1971_v41 = vor.u32 %v1969_v61, %v1968_v4  ;;  %v1973_v20 = vrot.slane %v1968_v4, 4  ;;  %v1837_v17 = vmax.f32 %v1794_v2, 0.0  ;;  %v1683_v4 = vadd.f32 %v6192_v10, %v1624_v25  ;;  %v2160_v61 = vld [vmem:[#allocation3 + $0x20] sm:$0x1] }
 0x273   : > { %v1688_v25 = vadd.f32 %v1687_v14, %v1629_v21 }
 0x274   : > { %v1972_v34 = vsel %vm6177_vm10, %v1964_v24, %v1971_v41  ;;  %v2154_v60 = vsel %vm6107_vm4, %v1973_v20, %v2153_v6  ;;  %v1922_v33 = vpack.c.bf16 %v1837_v17, %v1837_v17  ;;  %v1871_v41 = vld [vmem:[#allocation3 + $0x3c] sm:$0x1]  ;;  %v1690_v43 = vpop.f32.mrf.mxu2  ;;  %v1742_v10 = vadd.f32 %v6195_v8, %v1683_v4  ;;  %v1874_v4 = vld [vmem:[#allocation3 + $0x48] sm:$0x1] }
 0x275   : > { %2152 = vst [vmem:[#allocation3 + $0x10] sm:$0xf] %v1972_v34  ;;  %v1872_v17 = vsel %vm6107_vm4, 0, %v1871_v41  ;;  %v1747_v14 = vadd.f32 %v1746_v29, %v1688_v25 }
 0x276   : > { %2155 = vst [vmem:[#allocation3 + $0x14] sm:$0x1] %v2154_v60  ;;  %v1975_v59 = vshrl.u32 %v1922_v33, 16  ;;  %v1978_v57 = vshll.u32 %v1922_v33, 16  ;;  %v1749_v27 = vpop.f32.mrf.mxu3 }
 0x277   : > { %v1795_v35 = vpop.f32.mrf.mxu0  ;;  %1873 = vst [vmem:[#allocation3 + $0x3c] sm:$0x1] %v1872_v17  ;;  %v2170_v17 = vld [vmem:[#allocation3 + $0x30] sm:$0xf] }
 0x278   : > { %v1977_v48 = vrot.slane %v1975_v59, 7  ;;  %v1796_v49 = vadd.f32 %v1795_v35, %v1737_v22  ;;  %v2163_v59 = vld [vmem:[#allocation3 + $0x24] sm:$0xf]  ;;  %v1686_v35 = vadd.f32 %v6206_v12, %v1627_v23 }
 0x27a   : > { %v1980_v1 = vor.u32 %v1978_v57, %v1977_v48  ;;  %v1838_v13 = vmax.f32 %v1796_v49, 0.0  ;;  %v1981_v2 = vrot.slane %v1977_v48, 4  ;;  %v1633_v48 = vpop.f32.mrf.mxu1 }
 0x27b   : > { %v1634_v29 = vadd.f32 %v1633_v48, %v6086_v46 }
 0x27c   : > { %v2157_v51 = vsel %vm6159_vm8, %v1980_v1, %v2156_v56  ;;  %v1923_v11 = vpack.c.bf16 %v1838_v13, %v1838_v13  ;;  %v1903_v56 = vld [vmem:[#allocation3 + $0x44] sm:$0x1]  ;;  %v1745_v1 = vadd.f32 %v6215_v7, %v1686_v35  ;;  %v1692_v13 = vpop.f32.mrf.mxu2 }
 0x27d   : > { %2158 = vst [vmem:[#allocation3 + $0x18] sm:$0xf] %v2157_v51  ;;  %v1904_v58 = vsel %vm6117_vm6, 0, %v1903_v56 }
 0x27e   : > { %v1983_v31 = vshrl.u32 %v1923_v11, 16  ;;  %v1986_v3 = vshll.u32 %v1923_v11, 16  ;;  %1905 = vst [vmem:[#allocation3 + $0x44] sm:$0x1] %v1904_v58 }
 0x27f   : > { %v1798_v37 = vpop.f32.mrf.mxu0 }
 0x280   : > { %v1985_v42 = vrot.slane %v1983_v31, 7  ;;  %v1799_v19 = vadd.f32 %v1798_v37, %v1740_v47  ;;  %v2167_v47 = vld [vmem:[#allocation3 + $0x2c] sm:$0x1] }
 0x282   : > { %v1988_v52 = vor.u32 %v1986_v3, %v1985_v42  ;;  %v1990_v6 = vrot.slane %v1985_v42, 4  ;;  %v1839_v24 = vmax.f32 %v1799_v19, 0.0  ;;  %v1751_v19 = vpop.f32.mrf.mxu3 }
 0x284   : > { %v1989_v18 = vsel %vm6177_vm10, %v1981_v2, %v1988_v52  ;;  %v2161_v30 = vsel %vm6107_vm4, %v1990_v6, %v2160_v61  ;;  %v1924_v20 = vpack.c.bf16 %v1839_v24, %v1839_v24  ;;  %v1636_v61 = vpop.f32.mrf.mxu1  ;;  %v1875_v2 = vsel %vm6107_vm4, 0, %v1874_v4  ;;  %v1695_v41 = vpop.f32.mrf.mxu2 }
 0x285   : > { %2159 = vst [vmem:[#allocation3 + $0x1c] sm:$0xf] %v1989_v18  ;;  %v1632_v52 = vadd.f32 %v1631_v15, %v6082_v0 }
 0x286   : > { %2162 = vst [vmem:[#allocation3 + $0x20] sm:$0x1] %v2161_v30  ;;  %v1992_v34 = vshrl.u32 %v1924_v20, 16  ;;  %v1995_v32 = vshll.u32 %v1924_v20, 16 }
 0x287   : > { %v1800_v60 = vpop.f32.mrf.mxu0  ;;  %1876 = vst [vmem:[#allocation3 + $0x48] sm:$0x1] %v1875_v2 }
 0x288   : > { %v1994_v33 = vrot.slane %v1992_v34, 7  ;;  %v1801_v22 = vadd.f32 %v1800_v60, %v1742_v10  ;;  %v1691_v10 = vadd.f32 %v1690_v43, %v1632_v52  ;;  %v1906_v60 = vld [vmem:[#allocation3 + $0x50] sm:$0x1] }
 0x289   : > { %v1907_v0 = vsel %vm6117_vm6, 0, %v1906_v60 }
 0x28a   : > { %v1997_v57 = vor.u32 %v1995_v32, %v1994_v33  ;;  %v1840_v49 = vmax.f32 %v1801_v22, 0.0  ;;  %v1998_v31 = vrot.slane %v1994_v33, 4  ;;  %v1754_v15 = vpop.f32.mrf.mxu3  ;;  %v1750_v22 = vadd.f32 %v1749_v27, %v1691_v10  ;;  %1908 = vst [vmem:[#allocation3 + $0x50] sm:$0x1] %v1907_v0 }
 0x28c   : > { %v2164_v8 = vsel %vm6159_vm8, %v1997_v57, %v2163_v59  ;;  %v1925_v26 = vpack.c.bf16 %v1840_v49, %v1840_v49  ;;  %v1638_v59 = vpop.f32.mrf.mxu1  ;;  %v1697_v58 = vpop.f32.mrf.mxu2 }
 0x28d   : > { %2165 = vst [vmem:[#allocation3 + $0x24] sm:$0xf] %v2164_v8  ;;  %v1693_v8 = vadd.f32 %v1692_v13, %v1634_v29  ;;  %v1637_v13 = vadd.f32 %v1636_v61, %v6089_v63  ;;  %v1639_v61 = vadd.f32 %v1638_v59, %v6093_v28 }
 0x28e   : > { %v2000_v53 = vshrl.u32 %v1925_v26, 16  ;;  %v2003_v11 = vshll.u32 %v1925_v26, 16  ;;  %v2174_v26 = vld [vmem:[#allocation3 + $0x38] sm:$0x1] }
 0x28f   : > { %v1803_v12 = vpop.f32.mrf.mxu0  ;;  %v1698_v10 = vadd.f32 %v1697_v58, %v1639_v61 }
 0x290   : > { %v2002_v51 = vrot.slane %v2000_v53, 7  ;;  %v1804_v44 = vadd.f32 %v1803_v12, %v1745_v1 }
 0x292   : > { %v2005_v37 = vor.u32 %v2003_v11, %v2002_v51  ;;  %v2007_v42 = vrot.slane %v2002_v51, 4  ;;  %v1841_v3 = vmax.f32 %v1804_v44, 0.0  ;;  %v1877_v51 = vld [vmem:[#allocation3 + $0x54] sm:$0x1]  ;;  %v1752_v44 = vadd.f32 %v1751_v19, %v1693_v8 }
 0x293   : > { %v1878_v11 = vsel %vm6107_vm4, 0, %v1877_v51 }
 0x294   : > { %v2006_v40 = vsel %vm6177_vm10, %v1998_v31, %v2005_v37  ;;  %v2168_v7 = vsel %vm6107_vm4, %v2007_v42, %v2167_v47  ;;  %v1926_v55 = vpack.c.bf16 %v1841_v3, %v1841_v3  ;;  %v1756_v47 = vpop.f32.mrf.mxu3  ;;  %1879 = vst [vmem:[#allocation3 + $0x54] sm:$0x1] %v1878_v11  ;;  %v1641_v37 = vpop.f32.mrf.mxu1 }
 0x295   : > { %2166 = vst [vmem:[#allocation3 + $0x28] sm:$0xf] %v2006_v40  ;;  %v2177_v40 = vld [vmem:[#allocation3 + $0x3c] sm:$0xf]  ;;  %v1700_v52 = vpop.f32.mrf.mxu2 }
 0x296   : > { %2169 = vst [vmem:[#allocation3 + $0x2c] sm:$0x1] %v2168_v7  ;;  %v2009_v6 = vshrl.u32 %v1926_v55, 16  ;;  %v2012_v30 = vshll.u32 %v1926_v55, 16  ;;  %v1696_v7 = vadd.f32 %v1695_v41, %v1637_v13 }
 0x297   : > { %v1805_v24 = vpop.f32.mrf.mxu0 }
 0x298   : > { %v2011_v18 = vrot.slane %v2009_v6, 7  ;;  %v1806_v20 = vadd.f32 %v1805_v24, %v1747_v14  ;;  %v1909_v14 = vld [vmem:[#allocation3 + $0x5c] sm:$0x1]  ;;  %v1755_v24 = vadd.f32 %v1754_v15, %v1696_v7  ;;  %v2188_v7 = vld [vmem:[#allocation3 + $0x50] sm:$0x1] }
 0x299   : > { %v1910_v63 = vsel %vm6117_vm6, 0, %v1909_v14 }
 0x29a   : > { %v2014_v23 = vor.u32 %v2012_v30, %v2011_v18  ;;  %v1842_v34 = vmax.f32 %v1806_v20, 0.0  ;;  %v2015_v21 = vrot.slane %v2011_v18, 4  ;;  %1911 = vst [vmem:[#allocation3 + $0x5c] sm:$0x1] %v1910_v63 }
 0x29c   : > { %v2171_v33 = vsel %vm6159_vm8, %v2014_v23, %v2170_v17  ;;  %v1927_v32 = vpack.c.bf16 %v1842_v34, %v1842_v34  ;;  %v1759_v23 = vpop.f32.mrf.mxu3  ;;  %v2181_v34 = vld [vmem:[#allocation3 + $0x44] sm:$0x1]  ;;  %v1643_v60 = vpop.f32.mrf.mxu1 }
 0x29d   : > { %2172 = vst [vmem:[#allocation3 + $0x30] sm:$0xf] %v2171_v33  ;;  %v1644_v13 = vadd.f32 %v1643_v60, %v6100_v50  ;;  %v2191_v60 = vld [vmem:[#allocation3 + $0x54] sm:$0xf] }
 0x29e   : > { %v2017_v35 = vshrl.u32 %v1927_v32, 16  ;;  %v2020_v49 = vshll.u32 %v1927_v32, 16 }
 0x29f   : > { %v1808_v57 = vpop.f32.mrf.mxu0 }
 0x2a0   : > { %v2019_v43 = vrot.slane %v2017_v35, 7  ;;  %v1809_v56 = vadd.f32 %v1808_v57, %v1750_v22  ;;  %v1880_v22 = vld [vmem:[#allocation3 + $0x60] sm:$0x1]  ;;  %v1757_v57 = vadd.f32 %v1756_v47, %v1698_v10 }
 0x2a1   : > { %v1881_v35 = vsel %vm6107_vm4, 0, %v1880_v22  ;;  %v1915_v22 = vld [vmem:[#allocation3 + $0x74] sm:$0x1] }
 0x2a2   : > { %v2022_v1 = vor.u32 %v2020_v49, %v2019_v43  ;;  %v2024_v53 = vrot.slane %v2019_v43, 4  ;;  %v1843_v12 = vmax.f32 %v1809_v56, 0.0  ;;  %v1642_v43 = vadd.f32 %v1641_v37, %v6096_v5  ;;  %v1702_v49 = vpop.f32.mrf.mxu2  ;;  %1882 = vst [vmem:[#allocation3 + $0x60] sm:$0x1] %v1881_v35 }
 0x2a4   : > { %v2023_v46 = vsel %vm6177_vm10, %v2015_v21, %v2022_v1  ;;  %v2175_v27 = vsel %vm6107_vm4, %v2024_v53, %v2174_v26  ;;  %v1928_v48 = vpack.c.bf16 %v1843_v12, %v1843_v12  ;;  %v2184_v1 = vld [vmem:[#allocation3 + $0x48] sm:$0xf]  ;;  %v1701_v53 = vadd.f32 %v1700_v52, %v1642_v43 }
 0x2a5   : > { %2173 = vst [vmem:[#allocation3 + $0x34] sm:$0xf] %v2023_v46  ;;  %v1761_v46 = vpop.f32.mrf.mxu3 }
 0x2a6   : > { %2176 = vst [vmem:[#allocation3 + $0x38] sm:$0x1] %v2175_v27  ;;  %v2026_v25 = vshrl.u32 %v1928_v48, 16  ;;  %v2029_v3 = vshll.u32 %v1928_v48, 16  ;;  %v1912_v27 = vld [vmem:[#allocation3 + $0x68] sm:$0x1]  ;;  %v1646_v48 = vpop.f32.mrf.mxu1 }
 0x2a7   : > { %v1810_v31 = vpop.f32.mrf.mxu0  ;;  %v1913_v5 = vsel %vm6117_vm6, 0, %v1912_v27 }
 0x2a8   : > { %v2028_v42 = vrot.slane %v2026_v25, 7  ;;  %v1811_v4 = vadd.f32 %v1810_v31, %v1752_v44  ;;  %v1760_v25 = vadd.f32 %v1759_v23, %v1701_v53  ;;  %1914 = vst [vmem:[#allocation3 + $0x68] sm:$0x1] %v1913_v5 }
 0x2aa   : > { %v2031_v55 = vor.u32 %v2029_v3, %v2028_v42  ;;  %v1844_v2 = vmax.f32 %v1811_v4, 0.0  ;;  %v2032_v33 = vrot.slane %v2028_v42, 4  ;;  %v1705_v37 = vpop.f32.mrf.mxu2 }
 0x2ac   : > { %v2178_v19 = vsel %vm6159_vm8, %v2031_v55, %v2177_v40  ;;  %v1929_v6 = vpack.c.bf16 %v1844_v2, %v1844_v2  ;;  %v1703_v40 = vadd.f32 %v1702_v49, %v1644_v13 }
 0x2ad   : > { %2179 = vst [vmem:[#allocation3 + $0x3c] sm:$0xf] %v2178_v19  ;;  %v1883_v19 = vld [vmem:[#allocation3 + $0x6c] sm:$0x1] }
 0x2ae   : > { %v2034_v18 = vshrl.u32 %v1929_v6, 16  ;;  %v2037_v41 = vshll.u32 %v1929_v6, 16  ;;  %v1884_v61 = vsel %vm6107_vm4, 0, %v1883_v19 }
 0x2af   : > { %v1813_v30 = vpop.f32.mrf.mxu0  ;;  %1885 = vst [vmem:[#allocation3 + $0x6c] sm:$0x1] %v1884_v61 }
 0x2b0   : > { %v2036_v20 = vrot.slane %v2034_v18, 7  ;;  %v1814_v17 = vadd.f32 %v1813_v30, %v1755_v24  ;;  %v1764_v24 = vpop.f32.mrf.mxu3  ;;  %v1762_v18 = vadd.f32 %v1761_v46, %v1703_v40  ;;  %v1647_v30 = vadd.f32 %v1646_v48, %v6103_v9 }
 0x2b1   : > { %v1916_v9 = vsel %vm6117_vm6, 0, %v1915_v22 }
 0x2b2   : > { %v2039_v32 = vor.u32 %v2037_v41, %v2036_v20  ;;  %v2041_v0 = vrot.slane %v2036_v20, 4  ;;  %v1845_v29 = vmax.f32 %v1814_v17, 0.0  ;;  %v1648_v20 = vpop.f32.mrf.mxu1  ;;  %1917 = vst [vmem:[#allocation3 + $0x74] sm:$0x1] %v1916_v9 }
 0x2b4   : > { %v2040_v28 = vsel %vm6177_vm10, %v2032_v33, %v2039_v32  ;;  %v2182_v15 = vsel %vm6107_vm4, %v2041_v0, %v2181_v34  ;;  %v1930_v59 = vpack.c.bf16 %v1845_v29, %v1845_v29  ;;  %v1706_v33 = vadd.f32 %v1705_v37, %v1647_v30  ;;  %v1707_v32 = vpop.f32.mrf.mxu2 }
 0x2b5   : > { %2180 = vst [vmem:[#allocation3 + $0x40] sm:$0xf] %v2040_v28 }
 0x2b6   : > { %2183 = vst [vmem:[#allocation3 + $0x44] sm:$0x1] %v2182_v15  ;;  %v2043_v56 = vshrl.u32 %v1930_v59, 16  ;;  %v2046_v58 = vshll.u32 %v1930_v59, 16  ;;  %v1649_v59 = vadd.f32 %v1648_v20, %v6114_v38  ;;  %v1765_v35 = vadd.f32 %v1764_v24, %v1706_v33 }
 0x2b7   : > { %v1815_v8 = vpop.f32.mrf.mxu0 }
 0x2b8   : > { %v2045_v26 = vrot.slane %v2043_v56, 7  ;;  %v1816_v21 = vadd.f32 %v1815_v8, %v1757_v57  ;;  %v1766_v43 = vpop.f32.mrf.mxu3 }
 0x2ba   : > { %v2048_v12 = vor.u32 %v2046_v58, %v2045_v26  ;;  %v1846_v51 = vmax.f32 %v1816_v21, 0.0  ;;  %v2049_v55 = vrot.slane %v2045_v26, 4  ;;  %v1651_v56 = vpop.f32.mrf.mxu1  ;;  %v1708_v21 = vadd.f32 %v1707_v32, %v1649_v59 }
 0x2bc   : > { %v2185_v11 = vsel %vm6159_vm8, %v2048_v12, %v2184_v1  ;;  %v1931_v44 = vpack.c.bf16 %v1846_v51, %v1846_v51  ;;  %v2195_v1 = vld [vmem:[#allocation3 + $0x5c] sm:$0x1]  ;;  %v1710_v36 = vpop.f32.mrf.mxu2 }
 0x2bd   : > { %2186 = vst [vmem:[#allocation3 + $0x48] sm:$0xf] %v2185_v11  ;;  %v1767_v11 = vadd.f32 %v1766_v43, %v1708_v21 }
 0x2be   : > { %v2051_v47 = vshrl.u32 %v1931_v44, 16  ;;  %v2054_v3 = vshll.u32 %v1931_v44, 16  ;;  %v1652_v44 = vadd.f32 %v1651_v56, %v6126_v54  ;;  %v2209_v56 = vld [vmem:[#allocation3 + $0x74] sm:$0x1] }
 0x2bf   : > { %v1818_v31 = vpop.f32.mrf.mxu0 }
 0x2c0   : > { %v2053_v42 = vrot.slane %v2051_v47, 7  ;;  %v1819_v4 = vadd.f32 %v1818_v31, %v1760_v25  ;;  %v1769_v37 = vpop.f32.mrf.mxu3 }
 0x2c2   : > { %v2056_v2 = vor.u32 %v2054_v3, %v2053_v42  ;;  %v2058_v14 = vrot.slane %v2053_v42, 4  ;;  %v1847_v52 = vmax.f32 %v1819_v4, 0.0  ;;  %v2198_v42 = vld [vmem:[#allocation3 + $0x60] sm:$0xf]  ;;  %v1711_v3 = vadd.f32 %v1710_v36, %v1652_v44  ;;  %v1653_v4 = vpop.f32.mrf.mxu1 }
 0x2c4   : > { %v2057_v6 = vsel %vm6177_vm10, %v2049_v55, %v2056_v2  ;;  %v2189_v50 = vsel %vm6107_vm4, %v2058_v14, %v2188_v7  ;;  %v1932_v63 = vpack.c.bf16 %v1847_v52, %v1847_v52  ;;  %v1654_v14 = vadd.f32 %v1653_v4, %v6139_v45  ;;  %v1712_v52 = vpop.f32.mrf.mxu2 }
 0x2c5   : > { %2187 = vst [vmem:[#allocation3 + $0x4c] sm:$0xf] %v2057_v6  ;;  %v1770_v54 = vadd.f32 %v1769_v37, %v1711_v3 }
 0x2c6   : > { %2190 = vst [vmem:[#allocation3 + $0x50] sm:$0x1] %v2189_v50  ;;  %v2060_v41 = vshrl.u32 %v1932_v63, 16  ;;  %v2063_v23 = vshll.u32 %v1932_v63, 16  ;;  %v1713_v24 = vadd.f32 %v1712_v52, %v1654_v14 }
 0x2c7   : > { %v1820_v17 = vpop.f32.mrf.mxu0 }
 0x2c8   : > { %v2062_v10 = vrot.slane %v2060_v41, 7  ;;  %v1821_v34 = vadd.f32 %v1820_v17, %v1762_v18  ;;  %v2202_v18 = vld [vmem:[#allocation3 + $0x68] sm:$0x1] }
 0x2ca   : > { %v2065_v0 = vor.u32 %v2063_v23, %v2062_v10  ;;  %v1848_v29 = vmax.f32 %v1821_v34, 0.0  ;;  %v2066_v53 = vrot.slane %v2062_v10, 4  ;;  %v1771_v10 = vpop.f32.mrf.mxu3 }
 0x2cc   : > { %v2192_v28 = vsel %vm6159_vm8, %v2065_v0, %v2191_v60  ;;  %v1933_v15 = vpack.c.bf16 %v1848_v29, %v1848_v29  ;;  %v1772_v60 = vadd.f32 %v1771_v10, %v1713_v24 }
 0x2cd   : > { %2193 = vst [vmem:[#allocation3 + $0x54] sm:$0xf] %v2192_v28  ;;  %v2205_v28 = vld [vmem:[#allocation3 + $0x6c] sm:$0xf] }
 0x2ce   : > { %v2068_v57 = vshrl.u32 %v1933_v15, 16  ;;  %v2071_v26 = vshll.u32 %v1933_v15, 16 }
 0x2cf   : > { %v1823_v49 = vpop.f32.mrf.mxu0 }
 0x2d0   : > { %v2070_v8 = vrot.slane %v2068_v57, 7  ;;  %v1824_v58 = vadd.f32 %v1823_v49, %v1765_v35 }
 0x2d2   : > { %v2073_v12 = vor.u32 %v2071_v26, %v2070_v8  ;;  %v2075_v51 = vrot.slane %v2070_v8, 4  ;;  %v1849_v46 = vmax.f32 %v1824_v58, 0.0 }
 0x2d4   : > { %v2074_v38 = vsel %vm6177_vm10, %v2066_v53, %v2073_v12  ;;  %v2196_v27 = vsel %vm6107_vm4, %v2075_v51, %v2195_v1  ;;  %v1934_v48 = vpack.c.bf16 %v1849_v46, %v1849_v46 }
 0x2d5   : > { %2194 = vst [vmem:[#allocation3 + $0x58] sm:$0xf] %v2074_v38 }
 0x2d6   : > { %2197 = vst [vmem:[#allocation3 + $0x5c] sm:$0x1] %v2196_v27  ;;  %v2077_v5 = vshrl.u32 %v1934_v48, 16  ;;  %v2080_v47 = vshll.u32 %v1934_v48, 16 }
 0x2d7   : > { %v1825_v13 = vpop.f32.mrf.mxu0 }
 0x2d8   : > { %v2079_v25 = vrot.slane %v2077_v5, 7  ;;  %v1826_v31 = vadd.f32 %v1825_v13, %v1767_v11 }
 0x2da   : > { %v2082_v40 = vor.u32 %v2080_v47, %v2079_v25  ;;  %v1850_v7 = vmax.f32 %v1826_v31, 0.0  ;;  %v2083_v30 = vrot.slane %v2079_v25, 4 }
 0x2dc   : > { %v2199_v55 = vsel %vm6159_vm8, %v2082_v40, %v2198_v42  ;;  %v1935_v2 = vpack.c.bf16 %v1850_v7, %v1850_v7 }
 0x2dd   : > { %2200 = vst [vmem:[#allocation3 + $0x60] sm:$0xf] %v2199_v55 }
 0x2de   : > { %v2085_v19 = vshrl.u32 %v1935_v2, 16  ;;  %v2088_v63 = vshll.u32 %v1935_v2, 16 }
 0x2df   : > { %v1828_v6 = vpop.f32.mrf.mxu0 }
 0x2e0   : > { %v2087_v50 = vrot.slane %v2085_v19, 7  ;;  %v1829_v61 = vadd.f32 %v1828_v6, %v1770_v54 }
 0x2e2   : > { %v2090_v20 = vor.u32 %v2088_v63, %v2087_v50  ;;  %v2092_v41 = vrot.slane %v2087_v50, 4  ;;  %v1851_v17 = vmax.f32 %v1829_v61, 0.0 }
 0x2e4   : > { %v2091_v23 = vsel %vm6177_vm10, %v2083_v30, %v2090_v20  ;;  %v2203_v45 = vsel %vm6107_vm4, %v2092_v41, %v2202_v18  ;;  %v1936_v34 = vpack.c.bf16 %v1851_v17, %v1851_v17 }
 0x2e5   : > { %2201 = vst [vmem:[#allocation3 + $0x64] sm:$0xf] %v2091_v23 }
 0x2e6   : > { %2204 = vst [vmem:[#allocation3 + $0x68] sm:$0x1] %v2203_v45  ;;  %v2094_v33 = vshrl.u32 %v1936_v34, 16  ;;  %v2097_v29 = vshll.u32 %v1936_v34, 16 }
 0x2e7   : > { %v1830_v32 = vpop.f32.mrf.mxu0 }
 0x2e8   : > { %v2096_v0 = vrot.slane %v2094_v33, 7  ;;  %v1831_v22 = vadd.f32 %v1830_v32, %v1772_v60 }
 0x2ea   : > { %v2099_v15 = vor.u32 %v2097_v29, %v2096_v0  ;;  %v1852_v9 = vmax.f32 %v1831_v22, 0.0  ;;  %v2100_v8 = vrot.slane %v2096_v0, 4 }
 0x2ec   : > { %v2206_v59 = vsel %vm6159_vm8, %v2099_v15, %v2205_v28  ;;  %v1937_v35 = vpack.c.bf16 %v1852_v9, %v1852_v9 }
 0x2ed   : > { %2207 = vst [vmem:[#allocation3 + $0x6c] sm:$0xf] %v2206_v59 }
 0x2ee   : > { %v2102_v57 = vshrl.u32 %v1937_v35, 16  ;;  %v2105_v49 = vshll.u32 %v1937_v35, 16 }
 0x2f0   : > { %v2104_v43 = vrot.slane %v2102_v57, 7 }
 0x2f2   : > { %v2107_v26 = vor.u32 %v2105_v49, %v2104_v43  ;;  %v2109_v58 = vrot.slane %v2104_v43, 4  ;;  %2215 = sbr.rel (%p4499_p12) target bundleno = 763 (0x2fb), region = 62 }
 0x2f4   : > { %v2108_v21 = vsel %vm6177_vm10, %v2100_v8, %v2107_v26  ;;  %v2210_v1 = vsel %vm6107_vm4, %v2109_v58, %v2209_v56 }
 0x2f5   : > { %2208 = vst [vmem:[#allocation3 + $0x70] sm:$0xf] %v2108_v21 }
 0x2f6   : > { %2211 = vst [vmem:[#allocation3 + $0x74] sm:$0x1] %v2210_v1 }
 0x2f7   : > { %v5263_v39 = vmov 0  }
 0x2f8   : > { %2216 = vst [vmem:[#allocation3] sm:$0xf] %v5263_v39 }
 0x2f9   : > { %2217 = vst [vmem:[#allocation3 + $0x4] sm:$0xf] %v5263_v39 }
 0x2fa   : > { %2218 = vst [vmem:[#allocation3 + $0x8] sm:$0x1] %v5263_v39 }
 0x2fb PF: > { %p4500_p13 = scmp.ne.s32.totalorder %s5245_s21, 1 }
 0x2fd   : > { %2222 = sbr.rel (%p4500_p13) target bundleno = 774 (0x306), region = 66 }
 0x302   : > { %v5264_v53 = vmov 0  }
 0x303   : > { %2224 = vst [vmem:[#allocation3 + $0x6c] sm:$0xf] %v5264_v53 }
 0x304   : > { %2225 = vst [vmem:[#allocation3 + $0x70] sm:$0xf] %v5264_v53 }
 0x305   : > { %2226 = vst [vmem:[#allocation3 + $0x74] sm:$0x1] %v5264_v53 }
 0x306 PF: > { %v4876_v16 = vld [vmem:[%s6837_s3 + $0x38] sm:$0xff]  ;;  %v4875_v51 = vld [vmem:[%s6837_s3 + $0x30] sm:$0xff]  ;;  %v4874_v38 = vld [vmem:[%s6837_s3 + $0x28] sm:$0xff]  ;;  %s4941_s10 = sshll.u32 %s5245_s21, 4  ;;  %s4792_s13 = sshll.u32 %s5249_s22, 5 }
 0x307   : > { %v4884_v62 = vld [vmem:[%s6837_s3 + $0x78] sm:$0xff]  ;;  %3601 = vmatpush.bf16.msra.mxu1 %v4876_v16  ;;  %v4883_v46 = vld [vmem:[%s6837_s3 + $0x70] sm:$0xff]  ;;  %v4882_v27 = vld [vmem:[%s6837_s3 + $0x68] sm:$0xff]  ;;  %s4104_s15 = sadd.s32 %s4941_s10, %s4792_s13  ;;  %s4107_s14 = sshll.u32 %s5417_s30, 4  ;;  %s4108_s14 = int_to_ptr.vmem [resolvable:$true] %s4107_s14 }
 0x308   : > { %v4892_v12 = vld [vmem:[%s6837_s3 + $0xb8] sm:$0xff]  ;;  %3650 = vmatpush.bf16.msra.mxu2 %v4884_v62  ;;  %v4891_v36 = vld [vmem:[%s6837_s3 + $0xb0] sm:$0xff]  ;;  %v4890_v48 = vld [vmem:[%s6837_s3 + $0xa8] sm:$0xff]  ;;  %s4793_s16 = sshll.u32 %s4104_s15, 3  ;;  %s4092_s27 = scalar_lea.sflag [#allocation6], %s188_s12 }
 0x309   : > { %3699 = vmatpush.bf16.msrb.mxu3 %v4892_v12  ;;  %v4873_v11 = vld [vmem:[%s6837_s3 + $0x20] sm:$0xff]  ;;  %v2243_v13 = vld [vmem:[#allocation3 + $0x8] sm:$0x1]  ;;  %v4872_v25 = vld [vmem:[%s6837_s3 + $0x18] sm:$0xff]  ;;  %s4106_s17 = scalar_lea.hbm %s6839_s5, %s4793_s16  ;;  %s5185_s15 = scalar_lea.hbm %s6839_s5, 512 }
 0x30a   : > { %v4881_v44 = vld [vmem:[%s6837_s3 + $0x60] sm:$0xff]  ;;  %v4880_v47 = vld [vmem:[%s6837_s3 + $0x58] sm:$0xff]  ;;  %v2381_v31 = vunpack.c.l.b16 %v2243_v13  ;;  %v4871_v3 = vld [vmem:[%s6837_s3 + $0x10] sm:$0xff]  ;;  %s4109_s26 = sshll.u32 %s4106_s17, 4  ;;  %s4110_s26 = int_to_ptr.hbm [resolvable:$true] %s4109_s26 }
 0x30b   : > { %3602 = vmatpush.bf16.msra.mxu1 %v4875_v51  ;;  %v4889_v5 = vld [vmem:[%s6837_s3 + $0xa0] sm:$0xff]  ;;  %v4888_v37 = vld [vmem:[%s6837_s3 + $0x98] sm:$0xff]  ;;  %v4879_v4 = vld [vmem:[%s6837_s3 + $0x50] sm:$0xff]  ;;  %s5179_s8 = sshra.s32 %s4110_s26, 4  ;;  %s5180_s8 = int_to_ptr.hbm [resolvable:$true] %s5179_s8 }
 0x30c   : > { %3651 = vmatpush.bf16.msra.mxu2 %v4883_v46  ;;  %v4943_v42 = vld [vmem:[#allocation3] sm:$0xff]   ;;  %v2389_v7 = vpack.c.b16 %v2381_v31, %v2381_v31  ;;  %v4887_v55 = vld [vmem:[%s6837_s3 + $0x90] sm:$0xff]  ;;  %v4870_v54 = vld [vmem:[%s6837_s3 + $0x8] sm:$0xff]  ;;  %s5181_s9 = scalar_lea.hbm %s5180_s8, 128  ;;  %p5186_p4 = scmp.lt.s32.totalorder %s5180_s8, %s6839_s5 }
 0x30d   : > { %3700 = vmatpush.bf16.msrb.mxu3 %v4891_v36  ;;  %v2400_v40 = vshll.u32 %v4943_v42, 16  ;;  %v5000_v2 = vld [vmem:[#allocation3] sm:$0xf0]  ;;  %v5001_v14 = vld [vmem:[#allocation3] sm:$0xe]  ;;  %v4878_v52 = vld [vmem:[%s6837_s3 + $0x48] sm:$0xff]  ;;  %p5182_p0 = scmp.ne.s32.totalorder %s5180_s8, %s5181_s9  ;;  %p5187_p5 = scmp.lt.s32.totalorder %s5185_s15, %s5181_s9 }
 0x30e   : > { %v2398_v19 = vshrl.u32 %v4943_v42, 16  ;;  %v2405_v50 = vshll.u32 %v2389_v7, 16  ;;  %v4886_v63 = vld [vmem:[%s6837_s3 + $0x88] sm:$0xff]  ;;  %v5002_v61 = vor.u32 %v5001_v14, %v5000_v2  ;;  %v5129_v18 = vld [vmem:[#allocation3 + $0xc] sm:$0xf0]  ;;  %v4869_v30 = vld [vmem:[%s6837_s3] sm:$0xff] }
 0x30f   : > { %3603 = vmatpush.bf16.msra.mxu1 %v4874_v38  ;;  %v2402_v6 = vrot.slane %v2400_v40, 1  ;;  %v2229_v24 = vld [vmem:[#allocation3 + $0xc] sm:$0xff]   ;;  %v4877_v20 = vld [vmem:[%s6837_s3 + $0x40] sm:$0xff]  ;;  %v4908_v23 = vld [vmem:[%s6837_s3 + $0x138] sm:$0xff]  ;;  %v2526_v34 = vrot.slane %v2389_v7, 1  ;;  %p5183_p1 = pnand %p5182_p0, %p5348_p3  ;;  %p5188_p6 = por %p5187_p5, %p5186_p4 }
 0x310   : > { %3652 = vmatpush.bf16.msra.mxu2 %v4882_v27  ;;  %v2407_v17 = vrot.slane %v2405_v50, 1  ;;  %v4885_v10 = vld [vmem:[%s6837_s3 + $0x80] sm:$0xff]  ;;  %v2525_v45 = vrot.slane %v5002_v61, 1  ;;  %v2244_v60 = vld [vmem:[#allocation3 + $0x14] sm:$0x1]  ;;  %v4900_v33 = vld [vmem:[%s6837_s3 + $0xf8] sm:$0xff] }
 0x311   : > { %3701 = vmatpush.bf16.msrb.mxu3 %v4890_v48  ;;  %v2403_v41 = vor.u32 %v2402_v6, %v2398_v19  ;;  %v2382_v0 = vunpack.c.l.b16 %v2244_v60  ;;  %v4907_v22 = vld [vmem:[%s6837_s3 + $0x130] sm:$0xff]  ;;  %v5130_v28 = vld [vmem:[#allocation3 + $0xc] sm:$0xe]  ;;  %v2412_v59 = vshll.u32 %v2229_v24, 16  ;;  %v2410_v43 = vshrl.u32 %v2229_v24, 16  ;;  %v6407_v12 = vld [vmem:[#allocation3 + $0x18] sm:$0xff]   ;;  %p5184_p2 = pneg %p5183_p1 }
 0x312   : > { %v2527_v29 = vsel %vm629_vm1, %v2525_v45, %v2526_v34  ;;  %v4899_v15 = vld [vmem:[%s6837_s3 + $0xf0] sm:$0xff]  ;;  %v4906_v35 = vld [vmem:[%s6837_s3 + $0x128] sm:$0xff]  ;;  %v5131_v8 = vor.u32 %v5130_v28, %v5129_v18  ;;  %v2245_v39 = vld [vmem:[#allocation3 + $0x20] sm:$0x1]  ;;  %v2424_v46 = vshll.u32 %v6407_v12, 16 }
 0x313   : > { %3604 = vmatpush.bf16.msra.mxu1 %v4873_v11  ;;  %v2408_v32 = vsel %vm498_vm0, %v2403_v41, %v2407_v17  ;;  %v2390_v9 = vpack.c.b16 %v2382_v0, %v2382_v0  ;;  %v4898_v57 = vld [vmem:[%s6837_s3 + $0xe8] sm:$0xff]  ;;  %v2414_v49 = vrot.slane %v2412_v59, 1  ;;  %v2383_v16 = vunpack.c.l.b16 %v2245_v39  ;;  %v4905_v51 = vld [vmem:[%s6837_s3 + $0x120] sm:$0xff]  ;;  %v5003_v27 = vld [vmem:[#allocation3 + $0x18] sm:$0xf0]  ;;  %p5189_p7 = pnand %p5188_p6, %p5184_p2 }
 0x314   : > { %3653 = vmatpush.bf16.msra.mxu2 %v4881_v44  ;;  %v2528_v21 = vrot.slane %v5131_v8, 1  ;;  %v4897_v38 = vld [vmem:[%s6837_s3 + $0xe0] sm:$0xff]  ;;  %v5004_v48 = vld [vmem:[#allocation3 + $0x18] sm:$0xe]  ;;  %v2422_v11 = vshrl.u32 %v6407_v12, 16  ;;  %v2426_v44 = vrot.slane %v2424_v46, 1 }
 0x315   : > { %3702 = vmatpush.bf16.msrb.mxu3 %v4889_v5  ;;  %v2417_v56 = vshll.u32 %v2390_v9, 16  ;;  %v2415_v26 = vor.u32 %v2414_v49, %v2410_v43  ;;  %v2529_v1 = vrot.slane %v2390_v9, 1  ;;  %v2391_v36 = vpack.c.b16 %v2383_v16, %v2383_v16  ;;  %v5133_v2 = vld [vmem:[#allocation3 + $0x24] sm:$0xe]  ;;  %v4904_v14 = vld [vmem:[%s6837_s3 + $0x118] sm:$0xff]  ;;  %v6431_v45 = vld [vmem:[#allocation3 + $0x30] sm:$0xff]  }
 0x316   : > { %v5005_v13 = vor.u32 %v5004_v48, %v5003_v27  ;;  %v6417_v31 = vor.u32 %v2426_v44, %v2422_v11  ;;  %v4896_v19 = vld [vmem:[%s6837_s3 + $0xd8] sm:$0xff]  ;;  %v4903_v34 = vld [vmem:[%s6837_s3 + $0x110] sm:$0xff]  ;;  %v2448_v60 = vshll.u32 %v6431_v45, 16  ;;  %v2248_v8 = vld [vmem:[#allocation3 + $0x44] sm:$0x1] }
 0x317   : > { %3605 = vmatpush.bf16.msra.mxu1 %v4872_v25  ;;  %v2419_v58 = vrot.slane %v2417_v56, 1  ;;  %v2530_v62 = vsel %vm629_vm1, %v2528_v21, %v2529_v1  ;;  %v2429_v5 = vshll.u32 %v2391_v36, 16  ;;  %v2233_v25 = vld [vmem:[#allocation3 + $0x24] sm:$0xff]   ;;  %v2247_v41 = vld [vmem:[#allocation3 + $0x38] sm:$0x1]  ;;  %v2237_v59 = vld [vmem:[#allocation3 + $0x3c] sm:$0xff]  }
 0x318   : > { %3654 = vmatpush.bf16.msra.mxu2 %v4880_v47  ;;  %v5132_v47 = vld [vmem:[#allocation3 + $0x24] sm:$0xf0]  ;;  %v2434_v6 = vshrl.u32 %v2233_v25, 16  ;;  %v5006_v0 = vld [vmem:[#allocation3 + $0x30] sm:$0xf0]  ;;  %v2450_v28 = vrot.slane %v2448_v60, 1 }
 0x319   : > { %3703 = vmatpush.bf16.msrb.mxu3 %v4888_v37  ;;  %v2420_v53 = vsel %vm498_vm0, %v2415_v26, %v2419_v58  ;;  %v2431_v37 = vrot.slane %v2429_v5, 1  ;;  %v5134_v61 = vor.u32 %v5133_v2, %v5132_v47  ;;  %v2386_v58 = vunpack.c.l.b16 %v2248_v8  ;;  %v5136_v1 = vld [vmem:[#allocation3 + $0x3c] sm:$0xe]  ;;  %v4902_v39 = vld [vmem:[%s6837_s3 + $0x108] sm:$0xff]  ;;  %v4901_v2 = vld [vmem:[%s6837_s3 + $0x100] sm:$0xff] }
 0x31a   : > { %v2460_v16 = vshll.u32 %v2237_v59, 16  ;;  %v4924_v46 = vld [vmem:[%s6837_s3 + $0x1b8] sm:$0xff]  ;;  %v2458_v27 = vshrl.u32 %v2237_v59, 16  ;;  %v4914_v5 = vld [vmem:[%s6837_s3 + $0x168] sm:$0xff] }
 0x31b   : > { %3606 = vmatpush.bf16.msra.mxu1 %v4871_v3  ;;  %v2532_v3 = vrot.slane %v2391_v36, 1  ;;  %v2432_v40 = vsel %vm498_vm0, %v6417_v31, %v2431_v37  ;;  %v4915_v36 = vld [vmem:[%s6837_s3 + $0x170] sm:$0xff]  ;;  %3895 = vmatpush.bf16.msra.mxu0 %v4924_v46  ;;  %v4918_v8 = vld [vmem:[%s6837_s3 + $0x188] sm:$0xff] }
 0x31c   : > { %3655 = vmatpush.bf16.msra.mxu2 %v4879_v4  ;;  %v2246_v4 = vld [vmem:[#allocation3 + $0x2c] sm:$0x1]  ;;  %v2462_v48 = vrot.slane %v2460_v16, 1 }
 0x31d   : > { %3704 = vmatpush.bf16.msrb.mxu3 %v4887_v55  ;;  %v2384_v7 = vunpack.c.l.b16 %v2246_v4  ;;  %v2260_v16 = vld [vmem:[#allocation3 + $0xc] sm:$0xff]  }
 0x31f   : > { %3607 = vmatpush.bf16.msra.mxu1 %v4870_v54  ;;  %v2392_v54 = vpack.c.b16 %v2384_v7, %v2384_v7 }
 0x320   : > { %3656 = vmatpush.bf16.msra.mxu2 %v4878_v52  ;;  %v2436_v52 = vshll.u32 %v2233_v25, 16 }
 0x321   : > { %3705 = vmatpush.bf16.msrb.mxu3 %v4886_v63  ;;  %v2441_v63 = vshll.u32 %v2392_v54, 16 }
 0x322   : > { %v2438_v50 = vrot.slane %v2436_v52, 1  ;;  %v4912_v52 = vld [vmem:[%s6837_s3 + $0x158] sm:$0xff] }
 0x323   : > { %3608 = vmatpush.bf16.msra.mxu1 %v4869_v30  ;;  %v2443_v18 = vrot.slane %v2441_v63, 1  ;;  %v2534_v30 = vrot.slane %v5134_v61, 1  ;;  %v5010_v63 = vld [vmem:[#allocation3 + $0x48] sm:$0xe]  ;;  %v4911_v61 = vld [vmem:[%s6837_s3 + $0x150] sm:$0xff] }
 0x324   : > { %3657 = vmatpush.bf16.msra.mxu2 %v4877_v20  ;;  %v2535_v20 = vrot.slane %v2392_v54, 1 }
 0x325   : > { %3706 = vmatpush.bf16.msrb.mxu3 %v4885_v10  ;;  %v2385_v10 = vunpack.c.l.b16 %v2247_v41 }
 0x326   : > { %3609 = vmatmul.bf16.vlgmr.msra.gmra.mxu1 %v4943_v42  ;;  %v2531_v42 = vrot.slane %v5005_v13, 1  ;;  %v2463_v13 = vor.u32 %v2462_v48, %v2458_v27  ;;  %v2276_v27 = vld [vmem:[#allocation3 + $0x14] sm:$0x1] }
 0x327   : > { %3748 = vmatpush.bf16.msrb.mxu1 %v4900_v33  ;;  %3658 = vmatmul.bf16.vlgmr.msra.gmra.mxu2 %v2408_v32  ;;  %v2393_v33 = vpack.c.b16 %v2385_v10, %v2385_v10  ;;  %v4895_v32 = vld [vmem:[%s6837_s3 + $0xd0] sm:$0xff]  ;;  %v5138_v10 = vld [vmem:[#allocation3 + $0x54] sm:$0xf0] }
 0x328   : > { %3797 = vmatpush.bf16.msrb.mxu2 %v4908_v23  ;;  %3707 = vmatmul.bf16.vlgmr.msrb.gmra.mxu3 %v2527_v29  ;;  %v2533_v55 = vsel %vm629_vm1, %v2531_v42, %v2532_v3  ;;  %v2536_v23 = vsel %vm629_vm1, %v2534_v30, %v2535_v20  ;;  %v5007_v29 = vld [vmem:[#allocation3 + $0x30] sm:$0xe]  ;;  %v2249_v42 = vld [vmem:[#allocation3 + $0x50] sm:$0x1]  ;;  %v4913_v3 = vld [vmem:[%s6837_s3 + $0x160] sm:$0xff] }
 0x329   : > { %v5008_v9 = vor.u32 %v5007_v29, %v5006_v0  ;;  %v2538_v56 = vrot.slane %v2393_v33, 1  ;;  %v2250_v29 = vld [vmem:[#allocation3 + $0x5c] sm:$0x1] }
 0x32b   : > { %3749 = vmatpush.bf16.msrb.mxu1 %v4899_v15  ;;  %v2453_v15 = vshll.u32 %v2393_v33, 16  ;;  %v2537_v49 = vrot.slane %v5008_v9, 1  ;;  %v4919_v9 = vld [vmem:[%s6837_s3 + $0x190] sm:$0xff] }
 0x32c   : > { %3798 = vmatpush.bf16.msrb.mxu2 %v4907_v22  ;;  %v2446_v22 = vshrl.u32 %v6431_v45, 16 }
 0x32d   : > { %v2455_v43 = vrot.slane %v2453_v15, 1  ;;  %v2539_v21 = vsel %vm629_vm1, %v2537_v49, %v2538_v56  ;;  %v4909_v15 = vld [vmem:[%s6837_s3 + $0x140] sm:$0xff] }
 0x32f   : > { %3750 = vmatpush.bf16.msrb.mxu1 %v4898_v57  ;;  %v6441_v57 = vor.u32 %v2450_v28, %v2446_v22  ;;  %v2388_v28 = vunpack.c.l.b16 %v2250_v29 }
 0x330   : > { %3799 = vmatpush.bf16.msrb.mxu2 %v4906_v35  ;;  %v5135_v35 = vld [vmem:[#allocation3 + $0x3c] sm:$0xf0] }
 0x331   : > { %v2456_v26 = vsel %vm498_vm0, %v6441_v57, %v2455_v43  ;;  %v5137_v44 = vor.u32 %v5136_v1, %v5135_v35  ;;  %v5139_v35 = vld [vmem:[#allocation3 + $0x54] sm:$0xe]  ;;  %v4940_v43 = vld [vmem:[%s6837_s3 + $0x238] sm:$0xff]  ;;  %v2396_v49 = vpack.c.b16 %v2388_v28, %v2388_v28 }
 0x333   : > { %3751 = vmatpush.bf16.msrb.mxu1 %v4897_v38  ;;  %v4923_v38 = vld [vmem:[%s6837_s3 + $0x1b0] sm:$0xff]  ;;  %v2540_v47 = vrot.slane %v5137_v44, 1  ;;  %v2489_v1 = vshll.u32 %v2396_v49, 16 }
 0x334   : > { %3800 = vmatpush.bf16.msrb.mxu2 %v4905_v51  ;;  %v4894_v51 = vld [vmem:[%s6837_s3 + $0xc8] sm:$0xff]  ;;  %3896 = vmatpush.bf16.msra.mxu0 %v4923_v38  ;;  %v2547_v38 = vrot.slane %v2396_v49, 1 }
 0x335   : > { %v2491_v46 = vrot.slane %v2489_v1, 1 }
 0x336   : > { %3614 = vmatmul.bf16.gmra.mxu1 %v2229_v24  ;;  %v2439_v24 = vor.u32 %v2438_v50, %v2434_v6  ;;  %v4893_v6 = vld [vmem:[%s6837_s3 + $0xc0] sm:$0xff]  ;;  %v5009_v50 = vld [vmem:[#allocation3 + $0x48] sm:$0xf0] }
 0x337   : > { %3663 = vmatmul.bf16.gmra.mxu2 %v2420_v53  ;;  %3752 = vmatpush.bf16.msrb.mxu1 %v4896_v19  ;;  %v2394_v53 = vpack.c.b16 %v2386_v58, %v2386_v58  ;;  %v4922_v19 = vld [vmem:[%s6837_s3 + $0x1a8] sm:$0xff]  ;;  %v5011_v41 = vor.u32 %v5010_v63, %v5009_v50  ;;  %v6542_v50 = vld [vmem:[%s6838_s4] ss:$0 sm:$0xff] }
 0x338   : > { %3712 = vmatmul.bf16.gmra.mxu3 %v2530_v62  ;;  %3801 = vmatpush.bf16.msrb.mxu2 %v4904_v14  ;;  %v2444_v17 = vsel %vm498_vm0, %v2439_v24, %v2443_v18  ;;  %v4916_v62 = vld [vmem:[%s6837_s3 + $0x178] sm:$0xff]  ;;  %v4921_v24 = vld [vmem:[%s6837_s3 + $0x1a0] sm:$0xff] }
 0x339   : > { %3846 = vmatpush.bf16.msra.mxu3 %v4916_v62  ;;  %v2465_v11 = vshll.u32 %v2394_v53, 16  ;;  %v2541_v37 = vrot.slane %v2394_v53, 1  ;;  %3897 = vmatpush.bf16.msra.mxu0 %v4922_v19  ;;  %v5140_v53 = vor.u32 %v5139_v35, %v5138_v10  ;;  %v5141_v62 = vld [vmem:[#allocation3 + $0xc] sm:$0xf0]  ;;  %v5012_v10 = vld [vmem:[#allocation3 + $0x18] sm:$0xf0] }
 0x33b   : > { %3753 = vmatpush.bf16.msrb.mxu1 %v4895_v32  ;;  %v2542_v7 = vsel %vm629_vm1, %v2540_v47, %v2541_v37  ;;  %v2543_v32 = vrot.slane %v5011_v41, 1  ;;  %v2632_v47 = vshll.u32 %v2260_v16, 16  ;;  %v4931_v37 = vld [vmem:[%s6837_s3 + $0x1f0] sm:$0xff] }
 0x33c   : > { %3802 = vmatpush.bf16.msrb.mxu2 %v4903_v34  ;;  %v4920_v34 = vld [vmem:[%s6837_s3 + $0x198] sm:$0xff] }
 0x33d   : > { %3847 = vmatpush.bf16.msra.mxu3 %v4915_v36  ;;  %3898 = vmatpush.bf16.msra.mxu0 %v4921_v24  ;;  %v2546_v36 = vrot.slane %v5140_v53, 1 }
 0x33f   : > { %3754 = vmatpush.bf16.msrb.mxu1 %v4894_v51  ;;  %v2548_v44 = vsel %vm629_vm1, %v2546_v36, %v2547_v38 }
 0x340   : > { %3803 = vmatpush.bf16.msrb.mxu2 %v4902_v39  ;;  %v4917_v39 = vld [vmem:[%s6837_s3 + $0x180] sm:$0xff] }
 0x341   : > { %3848 = vmatpush.bf16.msra.mxu3 %v4914_v5  ;;  %3899 = vmatpush.bf16.msra.mxu0 %v4920_v34  ;;  %v5142_v5 = vld [vmem:[#allocation3 + $0xc] sm:$0xe] }
 0x343   : > { %3755 = vmatpush.bf16.msrb.mxu1 %v4893_v6  ;;  %v2277_v6 = vld [vmem:[#allocation3 + $0x20] sm:$0x1] }
 0x344   : > { %3804 = vmatpush.bf16.msrb.mxu2 %v4901_v2  ;;  %v5143_v2 = vor.u32 %v5142_v5, %v5141_v62  ;;  %v2614_v24 = vunpack.c.l.b16 %v2277_v6  ;;  %v5145_v62 = vld [vmem:[#allocation3 + $0x24] sm:$0xe] }
 0x345   : > { %3849 = vmatpush.bf16.msra.mxu3 %v4913_v3  ;;  %3900 = vmatpush.bf16.msra.mxu0 %v4919_v9  ;;  %v2634_v3 = vrot.slane %v2632_v47, 1  ;;  %v5144_v9 = vld [vmem:[#allocation3 + $0x24] sm:$0xf0]  ;;  %v6570_v47 = vld [vmem:[#allocation3 + $0x3c] sm:$0xff]  }
 0x346   : > { %3619 = vmatmul.bf16.gmra.mxu1 %v6407_v12  ;;  %v2622_v41 = vpack.c.b16 %v2614_v24, %v2614_v24 }
 0x347   : > { %3668 = vmatmul.bf16.gmra.mxu2 %v2432_v40  ;;  %v2387_v40 = vunpack.c.l.b16 %v2249_v42  ;;  %v2630_v42 = vshrl.u32 %v2260_v16, 16 }
 0x348   : > { %3717 = vmatmul.bf16.gmra.mxu3 %v2533_v55  ;;  %v6473_v55 = vld [vmem:[#allocation3 + $0x48] sm:$0xff]   ;;  %3993 = vmatpush.bf16.msra.mxu2 %v4940_v43  ;;  %v2649_v29 = vshll.u32 %v2622_v41, 16  ;;  %v2761_v49 = vrot.slane %v2622_v41, 1 }
 0x349   : > { %v2472_v14 = vshll.u32 %v6473_v55, 16  ;;  %v2395_v54 = vpack.c.b16 %v2387_v40, %v2387_v40  ;;  %3850 = vmatpush.bf16.msra.mxu3 %v4912_v52  ;;  %v2470_v18 = vshrl.u32 %v6473_v55, 16  ;;  %3901 = vmatpush.bf16.msra.mxu0 %v4918_v8  ;;  %v6534_v40 = vld [vmem:[#allocation3 + $0x24] sm:$0xff]   ;;  %v2757_v52 = vrot.slane %v5143_v2, 1 }
 0x34b   : > { %v2474_v30 = vrot.slane %v2472_v14, 1  ;;  %v2477_v20 = vshll.u32 %v2395_v54, 16  ;;  %v2544_v0 = vrot.slane %v2395_v54, 1  ;;  %v2635_v14 = vor.u32 %v2634_v3, %v2630_v42 }
 0x34c   : > { %v5146_v3 = vor.u32 %v5145_v62, %v5144_v9 }
 0x34d   : > { %3851 = vmatpush.bf16.msra.mxu3 %v4911_v61  ;;  %v6501_v60 = vor.u32 %v2474_v30, %v2470_v18  ;;  %v2479_v33 = vrot.slane %v2477_v20, 1  ;;  %3902 = vmatpush.bf16.msra.mxu0 %v4917_v39  ;;  %v4938_v20 = vld [vmem:[%s6837_s3 + $0x228] sm:$0xff] }
 0x34f   : > { %v2480_v22 = vsel %vm498_vm0, %v6501_v60, %v2479_v33 }
 0x350   : > { %3903 = vmatmul.bf16.vlgmr.msra.gmra.mxu0 %v6407_v12 }
 0x356   : > { %3624 = vmatmul.bf16.gmra.mxu1 %v2233_v25  ;;  %v2467_v25 = vrot.slane %v2465_v11, 1  ;;  %v2613_v11 = vunpack.c.l.b16 %v2276_v27 }
 0x357   : > { %3673 = vmatmul.bf16.gmra.mxu2 %v2444_v17  ;;  %v2241_v17 = vld [vmem:[#allocation3 + $0x54] sm:$0xff]  }
 0x358   : > { %3722 = vmatmul.bf16.gmra.mxu3 %v2536_v23  ;;  %v2468_v4 = vsel %vm498_vm0, %v2463_v13, %v2467_v25  ;;  %v4910_v23 = vld [vmem:[%s6837_s3 + $0x148] sm:$0xff]  ;;  %v2484_v56 = vshll.u32 %v2241_v17, 16  ;;  %v2482_v58 = vshrl.u32 %v2241_v17, 16  ;;  %v4939_v13 = vld [vmem:[%s6837_s3 + $0x230] sm:$0xff]  ;;  %v2621_v25 = vpack.c.b16 %v2613_v11, %v2613_v11 }
 0x359   : > { %3852 = vmatpush.bf16.msra.mxu3 %v4910_v23  ;;  %3994 = vmatpush.bf16.msra.mxu2 %v4939_v13  ;;  %v5013_v23 = vld [vmem:[#allocation3 + $0x18] sm:$0xe] }
 0x35a   : > { %v2758_v19 = vrot.slane %v2621_v25, 1  ;;  %v5014_v28 = vor.u32 %v5013_v23, %v5012_v10  ;;  %v4936_v10 = vld [vmem:[%s6837_s3 + $0x218] sm:$0xff] }
 0x35c   : > { %v2759_v18 = vsel %vm629_vm1, %v2757_v52, %v2758_v19  ;;  %v2760_v43 = vrot.slane %v5014_v28, 1  ;;  %v2279_v19 = vld [vmem:[#allocation3 + $0x38] sm:$0x1] }
 0x35d   : > { %3853 = vmatpush.bf16.msra.mxu3 %v4909_v15  ;;  %3995 = vmatpush.bf16.msra.mxu2 %v4938_v20  ;;  %v2264_v15 = vld [vmem:[#allocation3 + $0x24] sm:$0xff]   ;;  %v4928_v28 = vld [vmem:[%s6837_s3 + $0x1d8] sm:$0xff] }
 0x35e   : > { %v2656_v38 = vshll.u32 %v2264_v15, 16  ;;  %v2654_v13 = vshrl.u32 %v2264_v15, 16 }
 0x360   : > { %3908 = vmatmul.bf16.gmra.mxu0 %v6534_v40 }
 0x366   : > { %3629 = vmatmul.bf16.gmra.mxu1 %v6431_v45 }
 0x367   : > { %3678 = vmatmul.bf16.gmra.mxu2 %v2456_v26  ;;  %v4932_v26 = vld [vmem:[%s6837_s3 + $0x1f8] sm:$0xff] }
 0x368   : > { %3727 = vmatmul.bf16.gmra.mxu3 %v2539_v21  ;;  %v2486_v21 = vrot.slane %v2484_v56, 1  ;;  %3944 = vmatpush.bf16.msra.mxu1 %v4932_v26  ;;  %v2278_v56 = vld [vmem:[#allocation3 + $0x2c] sm:$0x1] }
 0x369   : > { %v2615_v39 = vunpack.c.l.b16 %v2278_v56 }
 0x36a   : > { %v2487_v51 = vor.u32 %v2486_v21, %v2482_v58 }
 0x36b   : > { %v2623_v36 = vpack.c.b16 %v2615_v39, %v2615_v39 }
 0x36c   : > { %v2492_v48 = vsel %vm498_vm0, %v2487_v51, %v2491_v46  ;;  %3945 = vmatpush.bf16.msra.mxu1 %v4931_v37  ;;  %v4937_v46 = vld [vmem:[%s6837_s3 + $0x220] sm:$0xff] }
 0x36d   : > { %3996 = vmatpush.bf16.msra.mxu2 %v4937_v46  ;;  %v6572_v37 = vld [vmem:[#allocation3 + $0x3c] sm:$0xf0]  ;;  %v2764_v52 = vrot.slane %v2623_v36, 1 }
 0x370   : > { %3913 = vmatmul.bf16.gmra.mxu0 %v6431_v45 }
 0x371   : > { %3997 = vmatpush.bf16.msra.mxu2 %v4936_v10 }
 0x376   : > { %3634 = vmatmul.bf16.gmra.mxu1 %v2237_v59  ;;  %v2545_v59 = vsel %vm629_vm1, %v2543_v32, %v2544_v0  ;;  %v4930_v32 = vld [vmem:[%s6837_s3 + $0x1e8] sm:$0xff] }
 0x377   : > { %3683 = vmatmul.bf16.gmra.mxu2 %v2468_v4  ;;  %v2637_v4 = vshll.u32 %v2621_v25, 16  ;;  %3946 = vmatpush.bf16.msra.mxu1 %v4930_v32  ;;  %v2658_v25 = vrot.slane %v2656_v38, 1  ;;  %v5016_v32 = vld [vmem:[#allocation3 + $0x30] sm:$0xe] }
 0x378   : > { %3732 = vmatmul.bf16.gmra.mxu3 %v2542_v7  ;;  %v6536_v7 = vld [vmem:[#allocation3 + $0x24] sm:$0xf0] }
 0x379   : > { %v2639_v54 = vrot.slane %v2637_v4, 1  ;;  %v2659_v4 = vor.u32 %v2658_v25, %v2654_v13 }
 0x37b   : > { %v2640_v61 = vsel %vm498_vm0, %v2635_v14, %v2639_v54  ;;  %v2763_v54 = vrot.slane %v5146_v3, 1  ;;  %v4927_v3 = vld [vmem:[%s6837_s3 + $0x1d0] sm:$0xff] }
 0x37d   : > { %v2765_v41 = vsel %vm629_vm1, %v2763_v54, %v2764_v52  ;;  %v6606_v54 = vld [vmem:[#allocation3 + $0x54] sm:$0xff]  }
 0x37e   : > { %v6608_v52 = vld [vmem:[#allocation3 + $0x54] sm:$0xf0] }
 0x380   : > { %3918 = vmatmul.bf16.gmra.mxu0 %v6570_v47 }
 0x386   : > { %3639 = vmatmul.bf16.gmra.mxu1 %v6473_v55 }
 0x387   : > { %3688 = vmatmul.bf16.gmra.mxu2 %v2480_v22 }
 0x388   : > { %3737 = vmatmul.bf16.gmra.mxu3 %v2545_v59  ;;  %v2651_v59 = vrot.slane %v2649_v29, 1 }
 0x38a   : > { %v2652_v1 = vsel %vm498_vm0, %v6417_v31, %v2651_v59 }
 0x390   : > { %3923 = vmatmul.bf16.gmra.mxu0 %v6473_v55 }
 0x396   : > { %3644 = vmatmul.bf16.gmra.mxu1 %v2241_v17 }
 0x397   : > { %3693 = vmatmul.bf16.gmra.mxu2 %v2492_v48 }
 0x398   : > { %3742 = vmatmul.bf16.gmra.mxu3 %v2548_v44  ;;  %v4929_v44 = vld [vmem:[%s6837_s3 + $0x1e0] sm:$0xff] }
 0x399   : > { %3947 = vmatpush.bf16.msra.mxu1 %v4929_v44 }
 0x39d   : > { %3948 = vmatpush.bf16.msra.mxu1 %v4928_v28 }
 0x3a0   : > { %3928 = vmatmul.bf16.gmra.mxu0 %v6606_v54 }
 0x3a1   : > { %3949 = vmatpush.bf16.msra.mxu1 %v4927_v3 }
 0x3a3   : > { %v3610_v63 = vpop.f32.mrf.mxu1 }
 0x3a4   : > { %v3611_v30 = vadd.f32 %v6542_v50, %v3610_v63 }
 0x3a6   : > { %3756 = vmatmul.bf16.vlgmr.msrb.gmra.mxu1 %v2260_v16  ;;  %v2762_v16 = vsel %vm629_vm1, %v2760_v43, %v2761_v49  ;;  %v2268_v43 = vld [vmem:[#allocation3 + $0x3c] sm:$0xff]  }
 0x3a7   : > { %3805 = vmatmul.bf16.vlgmr.msrb.gmra.mxu2 %v2640_v61  ;;  %v5147_v49 = vld [vmem:[#allocation3 + $0x3c] sm:$0xf0] }
 0x3a8   : > { %3854 = vmatmul.bf16.vlgmr.msra.gmra.mxu3 %v2759_v18 }
 0x3aa   : > { %v3659_v17 = vpop.f32.mrf.mxu2 }
 0x3ab   : > { %v3660_v34 = vadd.f32 %v3659_v17, %v3611_v30  ;;  %v3708_v33 = vpop.f32.mrf.mxu3  ;;  %v3612_v0 = vpop.f32.mrf.mxu1  ;;  %v2616_v30 = vunpack.c.l.b16 %v2279_v19 }
 0x3ac   : > { %v3613_v35 = vadd.f32 %v6542_v50, %v3612_v0 }
 0x3ad   : > { %v6553_v22 = vadd.f32 %v3708_v33, %v3660_v34  ;;  %v2624_v23 = vpack.c.b16 %v2616_v30, %v2616_v30  ;;  %v5015_v33 = vld [vmem:[#allocation3 + $0x30] sm:$0xf0] }
 0x3af   : > { %v2673_v59 = vshll.u32 %v2624_v23, 16 }
 0x3b1   : > { %v2675_v56 = vrot.slane %v2673_v59, 1 }
 0x3b2   : > { %v3661_v8 = vpop.f32.mrf.mxu2 }
 0x3b3   : > { %v3662_v26 = vadd.f32 %v3661_v8, %v3613_v35  ;;  %v3710_v58 = vpop.f32.mrf.mxu3  ;;  %v3615_v21 = vpop.f32.mrf.mxu1  ;;  %v5017_v35 = vor.u32 %v5016_v32, %v5015_v33 }
 0x3b4   : > { %v3616_v51 = vadd.f32 %v6542_v50, %v3615_v21  ;;  %v2280_v21 = vld [vmem:[#allocation3 + $0x44] sm:$0x1] }
 0x3b5   : > { %v6559_v53 = vadd.f32 %v3710_v58, %v3662_v26  ;;  %v2766_v26 = vrot.slane %v5017_v35, 1  ;;  %v2767_v58 = vrot.slane %v2624_v23, 1  ;;  %v2617_v46 = vunpack.c.l.b16 %v2280_v21 }
 0x3b6   : > { %3761 = vmatmul.bf16.gmra.mxu1 %v6407_v12  ;;  %v2661_v12 = vshll.u32 %v2623_v36, 16 }
 0x3b7   : > { %3810 = vmatmul.bf16.gmra.mxu2 %v2652_v1  ;;  %v2768_v38 = vsel %vm629_vm1, %v2766_v26, %v2767_v58  ;;  %v2625_v44 = vpack.c.b16 %v2617_v46, %v2617_v46  ;;  %v4926_v58 = vld [vmem:[%s6837_s3 + $0x1c8] sm:$0xff] }
 0x3b8   : > { %3859 = vmatmul.bf16.gmra.mxu3 %v2762_v16  ;;  %v2663_v2 = vrot.slane %v2661_v12, 1  ;;  %3950 = vmatpush.bf16.msra.mxu1 %v4926_v58 }
 0x3b9   : > { %v2770_v30 = vrot.slane %v2625_v44, 1 }
 0x3ba   : > { %v3664_v27 = vpop.f32.mrf.mxu2  ;;  %v2664_v18 = vsel %vm498_vm0, %v2659_v4, %v2663_v2  ;;  %v2678_v2 = vshrl.u32 %v2268_v43, 16 }
 0x3bb   : > { %v3665_v48 = vadd.f32 %v3664_v27, %v3616_v51  ;;  %v3713_v11 = vpop.f32.mrf.mxu3  ;;  %v3617_v5 = vpop.f32.mrf.mxu1  ;;  %v2676_v51 = vsel %vm498_vm0, %v6441_v57, %v2675_v56  ;;  %v5148_v27 = vld [vmem:[#allocation3 + $0x3c] sm:$0xe]  ;;  %v5019_v56 = vld [vmem:[#allocation3 + $0x48] sm:$0xe] }
 0x3bc   : > { %v3618_v14 = vadd.f32 %v6542_v50, %v3617_v5  ;;  %v2680_v5 = vshll.u32 %v2268_v43, 16 }
 0x3bd   : > { %v6574_v42 = vadd.f32 %v3713_v11, %v3665_v48  ;;  %v4935_v11 = vld [vmem:[%s6837_s3 + $0x210] sm:$0xff] }
 0x3be   : > { %3998 = vmatpush.bf16.msra.mxu2 %v4935_v11  ;;  %v2282_v11 = vld [vmem:[#allocation3 + $0x5c] sm:$0x1] }
 0x3bf   : > { %v2619_v3 = vunpack.c.l.b16 %v2282_v11 }
 0x3c2   : > { %v3666_v6 = vpop.f32.mrf.mxu2 }
 0x3c3   : > { %v3667_v63 = vadd.f32 %v3666_v6, %v3618_v14  ;;  %v3715_v61 = vpop.f32.mrf.mxu3  ;;  %v3620_v24 = vpop.f32.mrf.mxu1  ;;  %v2682_v14 = vrot.slane %v2680_v5, 1  ;;  %v5149_v6 = vor.u32 %v5148_v27, %v5147_v49  ;;  %v5018_v49 = vld [vmem:[#allocation3 + $0x48] sm:$0xf0] }
 0x3c4   : > { %v3621_v17 = vadd.f32 %v6542_v50, %v3620_v24 }
 0x3c5   : > { %v6579_v20 = vadd.f32 %v3715_v61, %v3667_v63  ;;  %v2683_v63 = vor.u32 %v2682_v14, %v2678_v2  ;;  %v5151_v14 = vld [vmem:[#allocation3 + $0x54] sm:$0xe] }
 0x3c6   : > { %3766 = vmatmul.bf16.gmra.mxu1 %v2264_v15 }
 0x3c7   : > { %3815 = vmatmul.bf16.gmra.mxu2 %v2664_v18  ;;  %v2769_v18 = vrot.slane %v5149_v6, 1  ;;  %v4933_v6 = vld [vmem:[%s6837_s3 + $0x200] sm:$0xff] }
 0x3c8   : > { %3864 = vmatmul.bf16.gmra.mxu3 %v2765_v41  ;;  %v2281_v41 = vld [vmem:[#allocation3 + $0x50] sm:$0x1] }
 0x3c9   : > { %v2618_v32 = vunpack.c.l.b16 %v2281_v41  ;;  %v4925_v41 = vld [vmem:[%s6837_s3 + $0x1c0] sm:$0xff] }
 0x3ca   : > { %v3669_v34 = vpop.f32.mrf.mxu2  ;;  %3951 = vmatpush.bf16.msra.mxu1 %v4925_v41 }
 0x3cb   : > { %v3670_v0 = vadd.f32 %v3669_v34, %v3621_v17  ;;  %v3718_v29 = vpop.f32.mrf.mxu3  ;;  %v3622_v9 = vpop.f32.mrf.mxu1  ;;  %v2626_v59 = vpack.c.b16 %v2618_v32, %v2618_v32 }
 0x3cc   : > { %v3623_v8 = vadd.f32 %v6542_v50, %v3622_v9  ;;  %v4934_v9 = vld [vmem:[%s6837_s3 + $0x208] sm:$0xff] }
 0x3cd   : > { %v6589_v15 = vadd.f32 %v3718_v29, %v3670_v0  ;;  %v2771_v29 = vsel %vm629_vm1, %v2769_v18, %v2770_v30  ;;  %3999 = vmatpush.bf16.msra.mxu2 %v4934_v9 }
 0x3d1   : > { %4000 = vmatpush.bf16.msra.mxu2 %v4933_v6 }
 0x3d2   : > { %v3671_v1 = vpop.f32.mrf.mxu2 }
 0x3d3   : > { %v3672_v39 = vadd.f32 %v3671_v1, %v3623_v8  ;;  %v3720_v16 = vpop.f32.mrf.mxu3  ;;  %v3625_v62 = vpop.f32.mrf.mxu1  ;;  %v2697_v1 = vshll.u32 %v2626_v59, 16 }
 0x3d4   : > { %v3626_v48 = vadd.f32 %v6542_v50, %v3625_v62  ;;  %v5150_v62 = vld [vmem:[#allocation3 + $0x54] sm:$0xf0] }
 0x3d5   : > { %v6595_v36 = vadd.f32 %v3720_v16, %v3672_v39  ;;  %v5020_v39 = vor.u32 %v5019_v56, %v5018_v49  ;;  %v2272_v16 = vld [vmem:[#allocation3 + $0x54] sm:$0xff]   ;;  %v2699_v46 = vrot.slane %v2697_v1, 1  ;;  %v2283_v56 = vld [vmem:[#allocation3 + $0x68] sm:$0x1] }
 0x3d6   : > { %3771 = vmatmul.bf16.gmra.mxu1 %v6431_v45  ;;  %v2685_v45 = vshll.u32 %v2625_v44, 16 }
 0x3d7   : > { %3820 = vmatmul.bf16.gmra.mxu2 %v2676_v51  ;;  %v6627_v51 = vld [vmem:[#allocation3 + $0x60] sm:$0xff]   ;;  %v2772_v27 = vrot.slane %v5020_v39, 1  ;;  %v2620_v39 = vunpack.c.l.b16 %v2283_v56  ;;  %v5025_v56 = vld [vmem:[#allocation3 + $0x18] sm:$0xe] }
 0x3d8   : > { %3869 = vmatmul.bf16.gmra.mxu3 %v2768_v38  ;;  %v2687_v61 = vrot.slane %v2685_v45, 1  ;;  %3933 = vmatmul.bf16.gmra.mxu0 %v6627_v51 }
 0x3da   : > { %v3674_v13 = vpop.f32.mrf.mxu2  ;;  %v2688_v33 = vsel %vm498_vm0, %v2683_v63, %v2687_v61  ;;  %v2627_v63 = vpack.c.b16 %v2619_v3, %v2619_v3  ;;  %v2704_v61 = vshll.u32 %v2272_v16, 16  ;;  %v2934_v3 = vshrl.u32 %v6627_v51, 16 }
 0x3db   : > { %v3675_v25 = vadd.f32 %v3674_v13, %v3626_v48  ;;  %v3723_v12 = vpop.f32.mrf.mxu3  ;;  %v3627_v4 = vpop.f32.mrf.mxu1  ;;  %v2773_v48 = vrot.slane %v2626_v59, 1 }
 0x3dc   : > { %v3628_v24 = vadd.f32 %v6542_v50, %v3627_v4  ;;  %v2776_v49 = vrot.slane %v2627_v63, 1 }
 0x3dd   : > { %v6610_v19 = vadd.f32 %v3723_v12, %v3675_v25  ;;  %v2700_v12 = vsel %vm498_vm0, %v6501_v60, %v2699_v46  ;;  %v2774_v2 = vsel %vm629_vm1, %v2772_v27, %v2773_v48  ;;  %v2936_v27 = vshll.u32 %v6627_v51, 16 }
 0x3de   : > { %v2628_v48 = vpack.c.b16 %v2620_v39, %v2620_v39 }
 0x3e2   : > { %v3676_v17 = vpop.f32.mrf.mxu2 }
 0x3e3   : > { %v3677_v10 = vadd.f32 %v3676_v17, %v3628_v24  ;;  %v3725_v23 = vpop.f32.mrf.mxu3  ;;  %v3630_v34 = vpop.f32.mrf.mxu1 }
 0x3e4   : > { %v3631_v28 = vadd.f32 %v6542_v50, %v3630_v34  ;;  %v6644_v34 = vld [vmem:[#allocation3 + $0x6c] sm:$0xff]  }
 0x3e5   : > { %v6615_v0 = vadd.f32 %v3725_v23, %v3677_v10  ;;  %v2702_v10 = vshrl.u32 %v2272_v16, 16  ;;  %v2706_v23 = vrot.slane %v2704_v61, 1 }
 0x3e6   : > { %3776 = vmatmul.bf16.gmra.mxu1 %v2268_v43 }
 0x3e7   : > { %3825 = vmatmul.bf16.gmra.mxu2 %v2688_v33  ;;  %v6646_v33 = vld [vmem:[#allocation3 + $0x6c] sm:$0xf0] }
 0x3e8   : > { %3874 = vmatmul.bf16.gmra.mxu3 %v2771_v29  ;;  %v5152_v29 = vor.u32 %v5151_v14, %v5150_v62  ;;  %3938 = vmatmul.bf16.gmra.mxu0 %v6644_v34  ;;  %v2721_v14 = vshll.u32 %v2628_v48, 16 }
 0x3ea   : > { %v3679_v35 = vpop.f32.mrf.mxu2 }
 0x3eb   : > { %v3680_v8 = vadd.f32 %v3679_v35, %v3631_v28  ;;  %v3728_v26 = vpop.f32.mrf.mxu3  ;;  %v3632_v21 = vpop.f32.mrf.mxu1  ;;  %v2707_v28 = vor.u32 %v2706_v23, %v2702_v10  ;;  %v2775_v35 = vrot.slane %v5152_v29, 1 }
 0x3ec   : > { %v3633_v38 = vadd.f32 %v6542_v50, %v3632_v21 }
 0x3ed   : > { %v6625_v43 = vadd.f32 %v3728_v26, %v3680_v8  ;;  %v2777_v62 = vsel %vm629_vm1, %v2775_v35, %v2776_v49  ;;  %v5024_v49 = vld [vmem:[#allocation3 + $0x18] sm:$0xf0] }
 0x3ee   : > { %v5026_v39 = vor.u32 %v5025_v56, %v5024_v49 }
 0x3f2   : > { %v3681_v44 = vpop.f32.mrf.mxu2 }
 0x3f3   : > { %v3682_v5 = vadd.f32 %v3681_v44, %v3633_v38  ;;  %v3730_v13 = vpop.f32.mrf.mxu3  ;;  %v3635_v25 = vpop.f32.mrf.mxu1  ;;  %v5021_v44 = vld [vmem:[#allocation3 + $0x60] sm:$0xf0] }
 0x3f4   : > { %v3636_v45 = vadd.f32 %v6542_v50, %v3635_v25 }
 0x3f5   : > { %v6633_v4 = vadd.f32 %v3730_v13, %v3682_v5  ;;  %v5022_v5 = vld [vmem:[#allocation3 + $0x60] sm:$0xe] }
 0x3f6   : > { %3781 = vmatmul.bf16.gmra.mxu1 %v6473_v55  ;;  %v2709_v55 = vshll.u32 %v2627_v63, 16  ;;  %v5023_v6 = vor.u32 %v5022_v5, %v5021_v44  ;;  %v2310_v44 = vld [vmem:[#allocation3 + $0x2c] sm:$0x1] }
 0x3f7   : > { %3830 = vmatmul.bf16.gmra.mxu2 %v2700_v12 }
 0x3f8   : > { %3879 = vmatmul.bf16.gmra.mxu3 %v2774_v2  ;;  %v2711_v9 = vrot.slane %v2709_v55, 1  ;;  %v2938_v2 = vrot.slane %v2936_v27, 1  ;;  %v2989_v27 = vrot.slane %v5026_v39, 1 }
 0x3fa   : > { %v3684_v24 = vpop.f32.mrf.mxu2  ;;  %v2712_v1 = vsel %vm498_vm0, %v2707_v28, %v2711_v9  ;;  %v6661_v63 = vor.u32 %v2938_v2, %v2934_v3  ;;  %v2846_v2 = vunpack.c.l.b16 %v2310_v44 }
 0x3fb   : > { %v3685_v18 = vadd.f32 %v3684_v24, %v3636_v45  ;;  %v3733_v30 = vpop.f32.mrf.mxu3  ;;  %v3637_v17 = vpop.f32.mrf.mxu1  ;;  %v2778_v24 = vrot.slane %v5023_v6, 1 }
 0x3fc   : > { %v3638_v59 = vadd.f32 %v6542_v50, %v3637_v17 }
 0x3fd   : > { %v6648_v32 = vadd.f32 %v3733_v30, %v3685_v18  ;;  %v2779_v18 = vrot.slane %v2628_v48, 1  ;;  %v2309_v30 = vld [vmem:[#allocation3 + $0x20] sm:$0x1] }
 0x3fe   : > { %v2845_v29 = vunpack.c.l.b16 %v2309_v30 }
 0x3ff   : > { %v2780_v9 = vsel %vm629_vm1, %v2778_v24, %v2779_v18 }
 0x400   : > { %v2853_v35 = vpack.c.b16 %v2845_v29, %v2845_v29 }
 0x402   : > { %v3686_v8 = vpop.f32.mrf.mxu2  ;;  %v2990_v48 = vrot.slane %v2853_v35, 1 }
 0x403   : > { %v3687_v26 = vadd.f32 %v3686_v8, %v3638_v59  ;;  %v3735_v58 = vpop.f32.mrf.mxu3  ;;  %v3640_v21 = vpop.f32.mrf.mxu1 }
 0x404   : > { %v3641_v38 = vadd.f32 %v6542_v50, %v3640_v21  ;;  %v2991_v3 = vsel %vm629_vm1, %v2989_v27, %v2990_v48 }
 0x405   : > { %v6653_v46 = vadd.f32 %v3735_v58, %v3687_v26 }
 0x406   : > { %3786 = vmatmul.bf16.gmra.mxu1 %v2272_v16  ;;  %v2723_v16 = vrot.slane %v2721_v14, 1 }
 0x407   : > { %3835 = vmatmul.bf16.gmra.mxu2 %v2712_v1  ;;  %v2869_v1 = vshll.u32 %v2853_v35, 16 }
 0x408   : > { %3884 = vmatmul.bf16.gmra.mxu3 %v2777_v62  ;;  %v2724_v55 = vsel %vm498_vm0, %v6661_v63, %v2723_v16  ;;  %v5154_v16 = vld [vmem:[#allocation3 + $0x24] sm:$0xe] }
 0x40a   : > { %v3689_v11 = vpop.f32.mrf.mxu2 }
 0x40b   : > { %v3690_v13 = vadd.f32 %v3689_v11, %v3641_v38  ;;  %v3738_v25 = vpop.f32.mrf.mxu3  ;;  %v3642_v12 = vpop.f32.mrf.mxu1  ;;  %v2871_v38 = vrot.slane %v2869_v1, 1 }
 0x40c   : > { %v3643_v61 = vadd.f32 %v6542_v50, %v3642_v12 }
 0x40d   : > { %v6659_v45 = vadd.f32 %v3738_v25, %v3690_v13  ;;  %v2872_v12 = vsel %vm498_vm0, %v6417_v31, %v2871_v38 }
 0x412   : > { %v3691_v41 = vpop.f32.mrf.mxu2 }
 0x413   : > { %v3692_v17 = vadd.f32 %v3691_v41, %v3643_v61  ;;  %v3740_v10 = vpop.f32.mrf.mxu3  ;;  %v3645_v23 = vpop.f32.mrf.mxu1  ;;  %v2854_v61 = vpack.c.b16 %v2846_v2, %v2846_v2  ;;  %v2874_v41 = vshrl.u32 %v6534_v40, 16 }
 0x414   : > { %v3646_v59 = vadd.f32 %v6542_v50, %v3645_v23 }
 0x415   : > { %v6666_v28 = vadd.f32 %v3740_v10, %v3692_v17  ;;  %v2881_v17 = vshll.u32 %v2854_v61, 16  ;;  %v5155_v10 = vor.u32 %v5154_v16, %v6536_v7 }
 0x416   : > { %3791 = vmatmul.bf16.gmra.mxu1 %v6627_v51 }
 0x417   : > { %3840 = vmatmul.bf16.gmra.mxu2 %v2724_v55  ;;  %v2992_v29 = vrot.slane %v5155_v10, 1 }
 0x418   : > { %3889 = vmatmul.bf16.gmra.mxu3 %v2780_v9  ;;  %v2993_v9 = vrot.slane %v2854_v61, 1  ;;  %v5157_v61 = vld [vmem:[#allocation3 + $0x3c] sm:$0xe] }
 0x41a   : > { %v3694_v8 = vpop.f32.mrf.mxu2 }
 0x41b   : > { %v3695_v26 = vadd.f32 %v3694_v8, %v3646_v59  ;;  %v3743_v58 = vpop.f32.mrf.mxu3  ;;  %v3647_v21 = vpop.f32.mrf.mxu1  ;;  %v2311_v59 = vld [vmem:[#allocation3 + $0x38] sm:$0x1] }
 0x41c   : > { %v3648_v11 = vadd.f32 %v6542_v50, %v3647_v21  ;;  %v2876_v50 = vshll.u32 %v6534_v40, 16  ;;  %v2847_v40 = vunpack.c.l.b16 %v2311_v59  ;;  %v5028_v21 = vld [vmem:[#allocation3 + $0x30] sm:$0xe] }
 0x41d   : > { %v6671_v62 = vadd.f32 %v3743_v58, %v3695_v26  ;;  %v2994_v26 = vsel %vm629_vm1, %v2992_v29, %v2993_v9  ;;  %v2313_v9 = vld [vmem:[#allocation3 + $0x50] sm:$0x1] }
 0x41e   : > { %v2878_v31 = vrot.slane %v2876_v50, 1  ;;  %v2855_v7 = vpack.c.b16 %v2847_v40, %v2847_v40  ;;  %v2900_v50 = vshll.u32 %v6570_v47, 16 }
 0x420   : > { %v2879_v55 = vor.u32 %v2878_v31, %v2874_v41  ;;  %v2893_v27 = vshll.u32 %v2855_v7, 16  ;;  %v2898_v31 = vshrl.u32 %v6570_v47, 16  ;;  %v2849_v47 = vunpack.c.l.b16 %v2313_v9 }
 0x422   : > { %v3696_v51 = vpop.f32.mrf.mxu2  ;;  %v2895_v44 = vrot.slane %v2893_v27, 1 }
 0x423   : > { %v3697_v5 = vadd.f32 %v3696_v51, %v3648_v11  ;;  %v3745_v13 = vpop.f32.mrf.mxu3  ;;  %v3757_v25 = vpop.f32.mrf.mxu1 }
 0x424   : > { %v3758_v6 = vadd.f32 %v3757_v25, %v6553_v22  ;;  %v2883_v22 = vrot.slane %v2881_v17, 1  ;;  %v2902_v17 = vrot.slane %v2900_v50, 1 }
 0x425   : > { %v6677_v14 = vadd.f32 %v3745_v13, %v3697_v5  ;;  %v2996_v5 = vrot.slane %v2855_v7, 1  ;;  %v2312_v13 = vld [vmem:[#allocation3 + $0x44] sm:$0x1] }
 0x426   : > { %3952 = vmatmul.bf16.vlgmr.msra.gmra.mxu1 %v2872_v12  ;;  %v2884_v8 = vsel %vm498_vm0, %v2879_v55, %v2883_v22  ;;  %v2903_v55 = vor.u32 %v2902_v17, %v2898_v31 }
 0x427   : > { %4001 = vmatmul.bf16.vlgmr.msra.gmra.mxu2 %v2991_v3  ;;  %v2896_v3 = vsel %vm498_vm0, %v6441_v57, %v2895_v44  ;;  %v5158_v57 = vor.u32 %v5157_v61, %v6572_v37  ;;  %v2857_v37 = vpack.c.b16 %v2849_v47, %v2849_v47 }
 0x429   : > { %v2998_v22 = vrot.slane %v5158_v57, 1  ;;  %v3002_v44 = vrot.slane %v2857_v37, 1 }
 0x42a   : > { %v3806_v24 = vpop.f32.mrf.mxu2 }
 0x42b   : > { %v6681_v18 = vadd.f32 %v3806_v24, %v3758_v6  ;;  %v3759_v30 = vpop.f32.mrf.mxu1  ;;  %v2848_v6 = vunpack.c.l.b16 %v2312_v13 }
 0x42c   : > { %v3760_v23 = vadd.f32 %v3759_v30, %v6559_v53  ;;  %v5027_v53 = vld [vmem:[#allocation3 + $0x30] sm:$0xf0] }
 0x42d   : > { %v5029_v48 = vor.u32 %v5028_v21, %v5027_v53 }
 0x42f   : > { %v2995_v51 = vrot.slane %v5029_v48, 1 }
 0x431   : > { %v2997_v2 = vsel %vm629_vm1, %v2995_v51, %v2996_v5  ;;  %v2314_v51 = vld [vmem:[#allocation3 + $0x5c] sm:$0x1] }
 0x432   : > { %v3808_v35 = vpop.f32.mrf.mxu2 }
 0x433   : > { %v6686_v49 = vadd.f32 %v3808_v35, %v3760_v23  ;;  %v3762_v56 = vpop.f32.mrf.mxu1 }
 0x434   : > { %v3763_v58 = vadd.f32 %v3762_v56, %v6574_v42 }
 0x436   : > { %3957 = vmatmul.bf16.gmra.mxu1 %v2884_v8 }
 0x437   : > { %4006 = vmatmul.bf16.gmra.mxu2 %v2994_v26 }
 0x43a   : > { %v3811_v1 = vpop.f32.mrf.mxu2 }
 0x43b   : > { %v6691_v39 = vadd.f32 %v3811_v1, %v3763_v58  ;;  %v3764_v38 = vpop.f32.mrf.mxu1  ;;  %v5031_v58 = vld [vmem:[#allocation3 + $0x48] sm:$0xe]  ;;  %v2917_v1 = vshll.u32 %v2857_v37, 16 }
 0x43c   : > { %v3765_v11 = vadd.f32 %v3764_v38, %v6579_v20  ;;  %v2856_v20 = vpack.c.b16 %v2848_v6, %v2848_v6  ;;  %v5160_v6 = vld [vmem:[#allocation3 + $0x54] sm:$0xe] }
 0x43d   : > { %v2919_v48 = vrot.slane %v2917_v1, 1 }
 0x43e   : > { %v2905_v10 = vshll.u32 %v2856_v20, 16  ;;  %v2999_v29 = vrot.slane %v2856_v20, 1 }
 0x440   : > { %v3000_v26 = vsel %vm629_vm1, %v2998_v22, %v2999_v29 }
 0x442   : > { %v3813_v25 = vpop.f32.mrf.mxu2 }
 0x443   : > { %v6694_v12 = vadd.f32 %v3813_v25, %v3765_v11  ;;  %v3767_v42 = vpop.f32.mrf.mxu1  ;;  %v2920_v25 = vsel %vm498_vm0, %v6501_v60, %v2919_v48  ;;  %v5161_v60 = vor.u32 %v5160_v6, %v6608_v52 }
 0x444   : > { %v3768_v16 = vadd.f32 %v3767_v42, %v6589_v15  ;;  %v2907_v15 = vrot.slane %v2905_v10, 1 }
 0x445   : > { %v3004_v57 = vrot.slane %v5161_v60, 1 }
 0x446   : > { %3962 = vmatmul.bf16.gmra.mxu1 %v2896_v3  ;;  %v2908_v8 = vsel %vm498_vm0, %v2903_v55, %v2907_v15  ;;  %v2850_v3 = vunpack.c.l.b16 %v2314_v51  ;;  %v2315_v55 = vld [vmem:[#allocation3 + $0x68] sm:$0x1] }
 0x447   : > { %4011 = vmatmul.bf16.gmra.mxu2 %v2997_v2 }
 0x44a   : > { %v3816_v24 = vpop.f32.mrf.mxu2 }
 0x44b   : > { %v6701_v30 = vadd.f32 %v3816_v24, %v3768_v16  ;;  %v3769_v41 = vpop.f32.mrf.mxu1  ;;  %v2924_v16 = vshll.u32 %v6606_v54, 16  ;;  %v2922_v24 = vshrl.u32 %v6606_v54, 16  ;;  %v2851_v54 = vunpack.c.l.b16 %v2315_v55 }
 0x44c   : > { %v3770_v23 = vadd.f32 %v3769_v41, %v6595_v36  ;;  %v5030_v36 = vld [vmem:[#allocation3 + $0x48] sm:$0xf0] }
 0x44d   : > { %v5032_v38 = vor.u32 %v5031_v58, %v5030_v36  ;;  %v2926_v41 = vrot.slane %v2924_v16, 1  ;;  %v2859_v52 = vpack.c.b16 %v2851_v54, %v2851_v54 }
 0x44f   : > { %v3001_v11 = vrot.slane %v5032_v38, 1  ;;  %v2927_v10 = vor.u32 %v2926_v41, %v2922_v24  ;;  %v2941_v37 = vshll.u32 %v2859_v52, 16  ;;  %v3008_v1 = vrot.slane %v2859_v52, 1  ;;  %v2316_v38 = vld [vmem:[#allocation3 + $0x74] sm:$0x1] }
 0x451   : > { %v3003_v42 = vsel %vm629_vm1, %v3001_v11, %v3002_v44 }
 0x452   : > { %v3818_v59 = vpop.f32.mrf.mxu2 }
 0x453   : > { %v6706_v35 = vadd.f32 %v3818_v59, %v3770_v23  ;;  %v3772_v56 = vpop.f32.mrf.mxu1 }
 0x454   : > { %v3773_v40 = vadd.f32 %v3772_v56, %v6610_v19 }
 0x456   : > { %3967 = vmatmul.bf16.gmra.mxu1 %v2908_v8  ;;  %v5034_v8 = vld [vmem:[#allocation3 + $0x60] sm:$0xe] }
 0x457   : > { %4016 = vmatmul.bf16.gmra.mxu2 %v3000_v26 }
 0x45a   : > { %v3821_v7 = vpop.f32.mrf.mxu2 }
 0x45b   : > { %v6711_v53 = vadd.f32 %v3821_v7, %v3773_v40  ;;  %v3774_v21 = vpop.f32.mrf.mxu1  ;;  %v2943_v7 = vrot.slane %v2941_v37, 1 }
 0x45c   : > { %v3775_v27 = vadd.f32 %v3774_v21, %v6615_v0  ;;  %v2858_v0 = vpack.c.b16 %v2850_v3, %v2850_v3  ;;  %v2948_v3 = vshll.u32 %v6644_v34, 16 }
 0x45d   : > { %v2944_v44 = vsel %vm498_vm0, %v6661_v63, %v2943_v7  ;;  %v4043_v7 = vld [vmem:[#allocation2 + $0x31] sm:$0xff] }
 0x45e   : > { %v2929_v31 = vshll.u32 %v2858_v0, 16  ;;  %v3005_v23 = vrot.slane %v2858_v0, 1  ;;  %v2950_v63 = vrot.slane %v2948_v3, 1 }
 0x460   : > { %v3006_v59 = vsel %vm629_vm1, %v3004_v57, %v3005_v23 }
 0x462   : > { %v3823_v5 = vpop.f32.mrf.mxu2 }
 0x463   : > { %v6714_v13 = vadd.f32 %v3823_v5, %v3775_v27  ;;  %v3777_v19 = vpop.f32.mrf.mxu1  ;;  %v3855_v27 = vpop.f32.mrf.mxu3  ;;  %v2852_v5 = vunpack.c.l.b16 %v2316_v38 }
 0x464   : > { %v3778_v2 = vadd.f32 %v3777_v19, %v6625_v43  ;;  %v2931_v43 = vrot.slane %v2929_v31, 1 }
 0x466   : > { %3972 = vmatmul.bf16.gmra.mxu1 %v2920_v25  ;;  %v2932_v9 = vsel %vm498_vm0, %v2927_v10, %v2931_v43  ;;  %v5163_v25 = vld [vmem:[#allocation3 + $0x6c] sm:$0xe] }
 0x467   : > { %4021 = vmatmul.bf16.gmra.mxu2 %v3003_v42  ;;  %v3904_v42 = vpop.f32.mrf.mxu0  ;;  %v5164_v24 = vor.u32 %v5163_v25, %v6646_v33 }
 0x46a   : > { %v3826_v61 = vpop.f32.mrf.mxu2 }
 0x46b   : > { %v6721_v20 = vadd.f32 %v3826_v61, %v3778_v2  ;;  %v3779_v50 = vpop.f32.mrf.mxu1  ;;  %v3857_v0 = vpop.f32.mrf.mxu3  ;;  %v2946_v61 = vshrl.u32 %v6644_v34, 16 }
 0x46c   : > { %v3780_v17 = vadd.f32 %v3779_v50, %v6633_v4  ;;  %v5033_v4 = vld [vmem:[#allocation3 + $0x60] sm:$0xf0] }
 0x46d   : > { %v5035_v36 = vor.u32 %v5034_v8, %v5033_v4  ;;  %v2951_v31 = vor.u32 %v2950_v63, %v2946_v61  ;;  %v3856_v4 = vadd.f32 %v3855_v27, %v6681_v18  ;;  %v4044_v27 = vld [vmem:[#allocation2 + $0x39] sm:$0xff] }
 0x46f   : > { %v3007_v21 = vrot.slane %v5035_v36, 1  ;;  %v3906_v41 = vpop.f32.mrf.mxu0 }
 0x471   : > { %v3009_v51 = vsel %vm629_vm1, %v3007_v21, %v3008_v1  ;;  %v3858_v21 = vadd.f32 %v3857_v0, %v6686_v49  ;;  %v4045_v0 = vld [vmem:[#allocation2 + $0x49] sm:$0xff] }
 0x472   : > { %v3828_v15 = vpop.f32.mrf.mxu2 }
 0x473   : > { %v6726_v22 = vadd.f32 %v3828_v15, %v3780_v17  ;;  %v3782_v29 = vpop.f32.mrf.mxu1  ;;  %v3010_v17 = vrot.slane %v5164_v24, 1 }
 0x474   : > { %v3783_v56 = vadd.f32 %v3782_v29, %v6648_v32  ;;  %v3860_v29 = vpop.f32.mrf.mxu3 }
 0x476   : > { %3977 = vmatmul.bf16.gmra.mxu1 %v2932_v9 }
 0x477   : > { %4026 = vmatmul.bf16.gmra.mxu2 %v3006_v59  ;;  %v3909_v33 = vpop.f32.mrf.mxu0 }
 0x47a   : > { %v3831_v26 = vpop.f32.mrf.mxu2 }
 0x47b   : > { %v6731_v47 = vadd.f32 %v3831_v26, %v3783_v56  ;;  %v3784_v40 = vpop.f32.mrf.mxu1 }
 0x47c   : > { %v3785_v58 = vadd.f32 %v3784_v40, %v6653_v46  ;;  %v2860_v46 = vpack.c.b16 %v2852_v5, %v2852_v5  ;;  %v3862_v56 = vpop.f32.mrf.mxu3 }
 0x47e   : > { %v2953_v50 = vshll.u32 %v2860_v46, 16  ;;  %v3011_v10 = vrot.slane %v2860_v46, 1 }
 0x47f   : > { %v3911_v26 = vpop.f32.mrf.mxu0 }
 0x480   : > { %v2955_v60 = vrot.slane %v2953_v50, 1  ;;  %v3012_v15 = vsel %vm629_vm1, %v3010_v17, %v3011_v10 }
 0x482   : > { %v3833_v48 = vpop.f32.mrf.mxu2  ;;  %v2956_v55 = vsel %vm498_vm0, %v2951_v31, %v2955_v60  ;;  %v4046_v60 = vld [vmem:[#allocation2 + $0x51] sm:$0xff] }
 0x483   : > { %v6734_v32 = vadd.f32 %v3833_v48, %v3785_v58  ;;  %v3787_v11 = vpop.f32.mrf.mxu1 }
 0x484   : > { %v3788_v19 = vadd.f32 %v3787_v11, %v6659_v45  ;;  %v3865_v36 = vpop.f32.mrf.mxu3  ;;  %v3907_v11 = vadd.f32 %v3906_v41, %v3858_v21 }
 0x485   : > { %v3866_v17 = vadd.f32 %v3865_v36, %v6701_v30 }
 0x486   : > { %3982 = vmatmul.bf16.gmra.mxu1 %v2944_v44 }
 0x487   : > { %4031 = vmatmul.bf16.gmra.mxu2 %v3009_v51  ;;  %v3914_v48 = vpop.f32.mrf.mxu0  ;;  %v3861_v51 = vadd.f32 %v3860_v29, %v6691_v39  ;;  %v4047_v29 = vld [vmem:[#allocation2 + $0x61] sm:$0xff] }
 0x489   : > { %v3910_v46 = vadd.f32 %v3909_v33, %v3861_v51 }
 0x48a   : > { %v3836_v2 = vpop.f32.mrf.mxu2 }
 0x48b   : > { %v6741_v6 = vadd.f32 %v3836_v2, %v3788_v19  ;;  %v3789_v16 = vpop.f32.mrf.mxu1 }
 0x48c   : > { %v3790_v45 = vadd.f32 %v3789_v16, %v6666_v28  ;;  %v3867_v19 = vpop.f32.mrf.mxu3  ;;  %v3863_v16 = vadd.f32 %v3862_v56, %v6694_v12 }
 0x48d   : > { %v3868_v33 = vadd.f32 %v3867_v19, %v6706_v35  ;;  %v4050_v19 = vld [vmem:[#allocation2 + $0x81] sm:$0xff] }
 0x48f   : > { %v3916_v49 = vpop.f32.mrf.mxu0 }
 0x492   : > { %v3838_v43 = vpop.f32.mrf.mxu2 }
 0x493   : > { %v6746_v57 = vadd.f32 %v3838_v43, %v3790_v45  ;;  %v3792_v23 = vpop.f32.mrf.mxu1  ;;  %v3912_v45 = vadd.f32 %v3911_v26, %v3863_v16 }
 0x494   : > { %v3793_v34 = vadd.f32 %v3792_v23, %v6671_v62  ;;  %v3905_v62 = vadd.f32 %v3904_v42, %v3856_v4  ;;  %v3870_v24 = vpop.f32.mrf.mxu3 }
 0x496   : > { %3987 = vmatmul.bf16.gmra.mxu1 %v2956_v55  ;;  %v3915_v55 = vadd.f32 %v3914_v48, %v3866_v17 }
 0x497   : > { %4036 = vmatmul.bf16.gmra.mxu2 %v3012_v15  ;;  %v3919_v41 = vpop.f32.mrf.mxu0 }
 0x49a   : > { %v3841_v28 = vpop.f32.mrf.mxu2 }
 0x49b   : > { %v6751_v9 = vadd.f32 %v3841_v28, %v3793_v34  ;;  %v3794_v59 = vpop.f32.mrf.mxu1 }
 0x49c   : > { %v3795_v54 = vadd.f32 %v3794_v59, %v6677_v14  ;;  %v3872_v12 = vpop.f32.mrf.mxu3 }
 0x49f   : > { %v3921_v59 = vpop.f32.mrf.mxu0 }
 0x4a2   : > { %v3843_v52 = vpop.f32.mrf.mxu2 }
 0x4a3   : > { %v6755_v8 = vadd.f32 %v3843_v52, %v3795_v54  ;;  %v3953_v40 = vpop.f32.mrf.mxu1  ;;  %v3917_v52 = vadd.f32 %v3916_v49, %v3868_v33 }
 0x4a4   : > { %v3954_v37 = vadd.f32 %v3953_v40, %v3905_v62  ;;  %v3875_v4 = vpop.f32.mrf.mxu3  ;;  %v4048_v40 = vld [vmem:[#allocation2 + $0x69] sm:$0xff]  ;;  %v3871_v62 = vadd.f32 %v3870_v24, %v6711_v53 }
 0x4a6   : > { %v3920_v21 = vadd.f32 %v3919_v41, %v3871_v62 }
 0x4aa   : > { %v4002_v58 = vpop.f32.mrf.mxu2 }
 0x4ab   : > { %v4003_v1 = vadd.f32 %v4002_v58, %v3954_v37  ;;  %v3955_v38 = vpop.f32.mrf.mxu1 }
 0x4ac   : > { %v3956_v44 = vadd.f32 %v3955_v38, %v3907_v11  ;;  %v4049_v38 = vld [vmem:[#allocation2 + $0x79] sm:$0xff]  ;;  %v3877_v11 = vpop.f32.mrf.mxu3 }
 0x4ad   : > { %v4059_v14 = vadd.f32 %v4043_v7, %v4003_v1  ;;  %v3924_v7 = vpop.f32.mrf.mxu0 }
 0x4af   : > { %4075 = vst [vmem:[%s5417_s30] sm:$0xff] %v4059_v14  ;;  %v3873_v14 = vadd.f32 %v3872_v12, %v6714_v13 }
 0x4b2   : > { %v4004_v18 = vpop.f32.mrf.mxu2 }
 0x4b3   : > { %v4005_v5 = vadd.f32 %v4004_v18, %v3956_v44  ;;  %v3958_v25 = vpop.f32.mrf.mxu1 }
 0x4b4   : > { %v3959_v3 = vadd.f32 %v3958_v25, %v3910_v46  ;;  %v3876_v25 = vadd.f32 %v3875_v4, %v6721_v20  ;;  %v4054_v4 = vld [vmem:[#allocation2 + $0xb1] sm:$0xff] }
 0x4b5   : > { %v4060_v42 = vadd.f32 %v4044_v27, %v4005_v5  ;;  %v3922_v27 = vadd.f32 %v3921_v59, %v3873_v14  ;;  %v3926_v53 = vpop.f32.mrf.mxu0 }
 0x4b7   : > { %4076 = vst [vmem:[%s5417_s30 + $0x8] sm:$0xff] %v4060_v42 }
 0x4ba   : > { %v4007_v2 = vpop.f32.mrf.mxu2 }
 0x4bb   : > { %v4008_v61 = vadd.f32 %v4007_v2, %v3959_v3  ;;  %v3960_v63 = vpop.f32.mrf.mxu1  ;;  %v3880_v3 = vpop.f32.mrf.mxu3  ;;  %v3925_v2 = vadd.f32 %v3924_v7, %v3876_v25 }
 0x4bc   : > { %v3961_v39 = vadd.f32 %v3960_v63, %v3912_v45  ;;  %v3878_v63 = vadd.f32 %v3877_v11, %v6726_v22  ;;  %v3881_v17 = vadd.f32 %v3880_v3, %v6731_v47  ;;  %v4057_v3 = vld [vmem:[#allocation2 + $0xd9] sm:$0xff] }
 0x4bd   : > { %v4061_v50 = vadd.f32 %v4045_v0, %v4008_v61  ;;  %v3929_v0 = vpop.f32.mrf.mxu0  ;;  %v4051_v61 = vld [vmem:[#allocation2 + $0x91] sm:$0xff] }
 0x4be   : > { %v3930_v12 = vadd.f32 %v3929_v0, %v3881_v17 }
 0x4bf   : > { %4077 = vst [vmem:[%s5417_s30 + $0x10] sm:$0xff] %v4061_v50 }
 0x4c2   : > { %v4009_v31 = vpop.f32.mrf.mxu2 }
 0x4c3   : > { %v4010_v10 = vadd.f32 %v4009_v31, %v3961_v39  ;;  %v3963_v43 = vpop.f32.mrf.mxu1  ;;  %v3927_v39 = vadd.f32 %v3926_v53, %v3878_v63  ;;  %v3882_v20 = vpop.f32.mrf.mxu3  ;;  %v4056_v53 = vld [vmem:[#allocation2 + $0xc9] sm:$0xff] }
 0x4c4   : > { %v3964_v15 = vadd.f32 %v3963_v43, %v3915_v55  ;;  %v3883_v33 = vadd.f32 %v3882_v20, %v6734_v32 }
 0x4c5   : > { %v4062_v23 = vadd.f32 %v4046_v60, %v4010_v10  ;;  %v4052_v60 = vld [vmem:[#allocation2 + $0x99] sm:$0xff]  ;;  %v3931_v43 = vpop.f32.mrf.mxu0 }
 0x4c7   : > { %4078 = vst [vmem:[%s5417_s30 + $0x18] sm:$0xff] %v4062_v23 }
 0x4ca   : > { %v4012_v34 = vpop.f32.mrf.mxu2 }
 0x4cb   : > { %v4013_v28 = vadd.f32 %v4012_v34, %v3964_v15  ;;  %v3965_v54 = vpop.f32.mrf.mxu1  ;;  %v3885_v15 = vpop.f32.mrf.mxu3 }
 0x4cc   : > { %v3966_v30 = vadd.f32 %v3965_v54, %v3917_v52  ;;  %v3932_v52 = vadd.f32 %v3931_v43, %v3883_v33 }
 0x4cd   : > { %v4063_v56 = vadd.f32 %v4047_v29, %v4013_v28  ;;  %v4053_v29 = vld [vmem:[#allocation2 + $0xa9] sm:$0xff] }
 0x4cf   : > { %4079 = vst [vmem:[%s5417_s30 + $0x20] sm:$0xff] %v4063_v56  ;;  %v3934_v56 = vpop.f32.mrf.mxu0 }
 0x4d2   : > { %v4014_v26 = vpop.f32.mrf.mxu2 }
 0x4d3   : > { %v4015_v37 = vadd.f32 %v4014_v26, %v3966_v30  ;;  %v3968_v36 = vpop.f32.mrf.mxu1  ;;  %v3886_v26 = vadd.f32 %v3885_v15, %v6741_v6  ;;  %v3887_v62 = vpop.f32.mrf.mxu3 }
 0x4d4   : > { %v3969_v35 = vadd.f32 %v3968_v36, %v3920_v21 }
 0x4d5   : > { %v4064_v58 = vadd.f32 %v4048_v40, %v4015_v37 }
 0x4d7   : > { %4080 = vst [vmem:[%s5417_s30 + $0x28] sm:$0xff] %v4064_v58  ;;  %v3935_v58 = vadd.f32 %v3934_v56, %v3886_v26  ;;  %v3936_v32 = vpop.f32.mrf.mxu0 }
 0x4da   : > { %v4017_v1 = vpop.f32.mrf.mxu2 }
 0x4db   : > { %v4018_v48 = vadd.f32 %v4017_v1, %v3969_v35  ;;  %v3970_v44 = vpop.f32.mrf.mxu1  ;;  %v4055_v35 = vld [vmem:[#allocation2 + $0xc1] sm:$0xff]  ;;  %v3888_v1 = vadd.f32 %v3887_v62, %v6746_v57  ;;  %v3890_v6 = vpop.f32.mrf.mxu3 }
 0x4dc   : > { %v3971_v51 = vadd.f32 %v3970_v44, %v3922_v27 }
 0x4dd   : > { %v4065_v18 = vadd.f32 %v4049_v38, %v4018_v48  ;;  %v3937_v11 = vadd.f32 %v3936_v32, %v3888_v1 }
 0x4df   : > { %4081 = vst [vmem:[%s5417_s30 + $0x30] sm:$0xff] %v4065_v18  ;;  %v3939_v18 = vpop.f32.mrf.mxu0 }
 0x4e2   : > { %v4019_v5 = vpop.f32.mrf.mxu2 }
 0x4e3   : > { %v4020_v42 = vadd.f32 %v4019_v5, %v3971_v51  ;;  %v3973_v46 = vpop.f32.mrf.mxu1  ;;  %v3891_v51 = vadd.f32 %v3890_v6, %v6751_v9 }
 0x4e4   : > { %v3974_v13 = vadd.f32 %v3973_v46, %v3925_v2 }
 0x4e5   : > { %v4066_v49 = vadd.f32 %v4050_v19, %v4020_v42  ;;  %v3940_v57 = vadd.f32 %v3939_v18, %v3891_v51  ;;  %v3892_v42 = vpop.f32.mrf.mxu3 }
 0x4e6   : > { %v3893_v2 = vadd.f32 %v3892_v42, %v6755_v8 }
 0x4e7   : > { %4082 = vst [vmem:[%s5417_s30 + $0x38] sm:$0xff] %v4066_v49  ;;  %v3941_v9 = vpop.f32.mrf.mxu0 }
 0x4ea   : > { %v4022_v16 = vpop.f32.mrf.mxu2 }
 0x4eb   : > { %v4023_v50 = vadd.f32 %v4022_v16, %v3974_v13  ;;  %v3975_v24 = vpop.f32.mrf.mxu1 }
 0x4ec   : > { %v3976_v41 = vadd.f32 %v3975_v24, %v3927_v39  ;;  %v4058_v24 = vld [vmem:[#allocation2 + $0xe1] sm:$0xff] }
 0x4ed   : > { %v4067_v45 = vadd.f32 %v4051_v61, %v4023_v50  ;;  %v3942_v61 = vadd.f32 %v3941_v9, %v3893_v2 }
 0x4ef   : > { %4083 = vst [vmem:[%s5417_s30 + $0x40] sm:$0xff] %v4067_v45 }
 0x4f2   : > { %v4024_v31 = vpop.f32.mrf.mxu2 }
 0x4f3   : > { %v4025_v10 = vadd.f32 %v4024_v31, %v3976_v41  ;;  %v3978_v23 = vpop.f32.mrf.mxu1 }
 0x4f4   : > { %v3979_v22 = vadd.f32 %v3978_v23, %v3930_v12 }
 0x4f5   : > { %v4068_v55 = vadd.f32 %v4052_v60, %v4025_v10 }
 0x4f7   : > { %4084 = vst [vmem:[%s5417_s30 + $0x48] sm:$0xff] %v4068_v55 }
 0x4fa   : > { %v4027_v34 = vpop.f32.mrf.mxu2 }
 0x4fb   : > { %v4028_v28 = vadd.f32 %v4027_v34, %v3979_v22  ;;  %v3980_v59 = vpop.f32.mrf.mxu1 }
 0x4fc   : > { %v3981_v47 = vadd.f32 %v3980_v59, %v3932_v52 }
 0x4fd   : > { %v4069_v54 = vadd.f32 %v4053_v29, %v4028_v28 }
 0x4ff   : > { %4085 = vst [vmem:[%s5417_s30 + $0x50] sm:$0xff] %v4069_v54 }
 0x502   : > { %v4029_v30 = vpop.f32.mrf.mxu2 }
 0x503   : > { %v4030_v40 = vadd.f32 %v4029_v30, %v3981_v47  ;;  %v3983_v37 = vpop.f32.mrf.mxu1 }
 0x504   : > { %v3984_v7 = vadd.f32 %v3983_v37, %v3935_v58 }
 0x505   : > { %v4070_v36 = vadd.f32 %v4054_v4, %v4030_v40 }
 0x507   : > { %4086 = vst [vmem:[%s5417_s30 + $0x58] sm:$0xff] %v4070_v36 }
 0x50a   : > { %v4032_v21 = vpop.f32.mrf.mxu2 }
 0x50b   : > { %v4033_v38 = vadd.f32 %v4032_v21, %v3984_v7  ;;  %v3985_v14 = vpop.f32.mrf.mxu1 }
 0x50c   : > { %v3986_v44 = vadd.f32 %v3985_v14, %v3937_v11 }
 0x50d   : > { %v4071_v48 = vadd.f32 %v4055_v35, %v4033_v38 }
 0x50f   : > { %4087 = vst [vmem:[%s5417_s30 + $0x60] sm:$0xff] %v4071_v48 }
 0x512   : > { %v4034_v27 = vpop.f32.mrf.mxu2 }
 0x513   : > { %v4035_v5 = vadd.f32 %v4034_v27, %v3986_v44  ;;  %v3988_v19 = vpop.f32.mrf.mxu1 }
 0x514   : > { %v3989_v46 = vadd.f32 %v3988_v19, %v3940_v57 }
 0x515   : > { %v4072_v25 = vadd.f32 %v4056_v53, %v4035_v5 }
 0x517   : > { %4088 = vst [vmem:[%s5417_s30 + $0x68] sm:$0xff] %v4072_v25 }
 0x51a   : > { %v4037_v49 = vpop.f32.mrf.mxu2 }
 0x51b   : > { %v4038_v13 = vadd.f32 %v4037_v49, %v3989_v46  ;;  %v3990_v16 = vpop.f32.mrf.mxu1 }
 0x51c   : > { %v3991_v63 = vadd.f32 %v3990_v16, %v3942_v61 }
 0x51d   : > { %v4073_v0 = vadd.f32 %v4057_v3, %v4038_v13 }
 0x51f   : > { %4089 = vst [vmem:[%s5417_s30 + $0x70] sm:$0xff] %v4073_v0 }
 0x522   : > { %v4039_v50 = vpop.f32.mrf.mxu2 }
 0x523   : > { %v4040_v8 = vadd.f32 %v4039_v50, %v3991_v63 }
 0x525   : > { %v4074_v45 = vadd.f32 %v4058_v24, %v4040_v8 }
 0x527   : > { %4090 = vst [vmem:[%s5417_s30 + $0x78] sm:$0xff] %v4074_v45 }
 0x528   : > { %5192 = shalt.err (!%p5189_p7)
}
 0x529   : > { %s5265_s12 = smov 128   ;;  %s5266_s30 = smov 8  }
 0x52a   : > { %5052 = dma.vmem_to_hbm [thread:$0]  (%p5348_p3), %s4108_s14, 2048, %s4110_s26, %s4092_s27, %s5265_s12, %s5265_s12, %s5266_s30  }
 0x52b PF: > { %p5058_p9 = scmp.ge.s32.totalorder %s5261_s25, 2  ;;  %s4124_s22 = sand.u32 1, %s5233_s18  }
 0x52c   : > { %s4125_s17 = scalar_lea.sflag [#allocation6], %s4124_s22 }
 0x52d   : > { %p5055_p10 = pnand %p5058_p9, %p5357_p8 }
 0x52f   : > { %p5056_p11 = pneg %p5055_p10 }
 0x531   : > { %5228 = dma.done.wait (%p5056_p11), %s4125_s17, 2048  }
 0x532   : > { %5230 = vsyncadd (%p5056_p11), %s4125_s17, 4294965248  ;;  %s18_s25 = sadd.s32 1, %s5261_s25   ;;  %s6860_s18 = smov %s5237_s19 }
 0x533   : > { %p15_p12 = scmp.ge.s32.totalorder %s18_s25, 6   ;;  %s6861_s19 = smov %s5241_s20 }
 0x534   : > { %s6862_s20 = smov %s5366_s11  ;;  %s6863_s21 = smov %s5253_s23 }
 0x535   : > { %s6864_s22 = smov %s5257_s24  ;;  %s6865_s23 = smov %s6868_s28 }
 0x536   : > { %s6866_s24 = smov %s6872_s29  ;;  %17 = sbr.rel (!%p15_p12) target bundleno = 5 (0x5), region = 113 }
 0x53b   :  { %4131 = vsyncpa [#allocation6], 1 }
 0x53c   :  { %4133 = vsyncpa [#allocation6 + $0x1], 1 }
 0x53d   :  { %4134 = vsyncmov [#allocation4] }
 0x540   :  { %s4135_s6 = vpop.sfrf %4134 }
 0x541   :  { %p4796_p3 = scmp.ne.s32.totalorder %s4135_s6, 0 }
 0x543   :  { %4139 = shalt.err (%p4796_p3)  }

</bundles_post_ra>
